<compile_context>
chip_gen: v7x
topology: tpu7x:2x2x1
jax: 0.10.0
libtpu: 0.0.40
codegen_flags: <defaults>
</compile_context>

<pallas_src>
import functools

import jax
import jax.numpy as jnp
import numpy as np
from jax.experimental import pallas as pl
from jax.experimental.pallas import tpu as pltpu


# --------------------- Pallas kernel: one batch tile ------------------------
def convnet_kernel(x_ref, w1_ref, b1_ref, w2_ref, b2_ref, wfc_ref, bfc_ref,
                   out_ref):
    x = x_ref[...]                                          # (TN, 16) f32

    # conv1 (1->512, k=5, valid) as ONE Toeplitz-expanded MXU matmul that
    # produces all 12 positions x 512 channels at once, + bias + ReLU.
    h1 = jnp.dot(x, w1_ref[...], preferred_element_type=jnp.float32)
    h1 = jnp.maximum(h1 + b1_ref[...], 0.0)                 # (TN, 6144)

    # F.max_pool2d(2,2) over (channel, length): conv1 output lanes are ordered
    # [c_parity(2), l_parity(2), l//2(6), c//2(256)], so both pooling halves
    # are plain lane-half elementwise maxes (VPU, zero relayout).
    hc = jnp.maximum(h1[:, :3072], h1[:, 3072:])            # channel-pair max
    pooled = jnp.maximum(hc[:, :1536], hc[:, 1536:])        # length-pair max

    # conv2 (256->128, k=3, valid) as ONE Toeplitz-expanded MXU matmul + ReLU.
    h2 = jnp.dot(pooled, w2_ref[...], preferred_element_type=jnp.float32)
    h2 = jnp.maximum(h2 + b2_ref[...], 0.0)                 # (TN, 512)

    # fc1 (512 -> 3); output dim lane-padded to 128 for a dense vst store.
    out_ref[...] = (jnp.dot(h2, wfc_ref[...],
                            preferred_element_type=jnp.float32)
                    + bfc_ref[...])                          # (TN, 128)


# ------------------- one-time parameter re-layout (host) --------------------
def prepare_params(w1, b1, w2, b2, wfc, bfc):
    """Re-lay PyTorch-shaped params into kernel layouts. Call ONCE at load."""
    w1 = np.asarray(w1, np.float32)      # (512, 1, 5)
    b1 = np.asarray(b1, np.float32)      # (512,)
    w2 = np.asarray(w2, np.float32)      # (128, 256, 3)
    b2 = np.asarray(b2, np.float32)      # (128,)
    wfc = np.asarray(wfc, np.float32)    # (3, 512)
    bfc = np.asarray(bfc, np.float32)    # (3,)

    # conv1 Toeplitz weight, lane j = pc*3072 + pl*1536 + lp*256 + ch2 with
    # original channel c = 2*ch2 + pc and position l = 2*lp + pl.
    w1_big = np.zeros((16, 2, 2, 6, 256), np.float32)       # [p, pc, pl, lp, c2]
    b1_big = np.zeros((2, 2, 6, 256), np.float32)
    for pc in range(2):
        b1_big[pc] = b1[pc::2][None, None, :]
        for pl_ in range(2):
            for lp in range(6):
                l = 2 * lp + pl_
                for k in range(5):
                    w1_big[l + k, pc, pl_, lp, :] = w1[pc::2, 0, k]
    w1_big = w1_big.reshape(16, 6144)
    b1_big = b1_big.reshape(1, 6144)

    # conv2 Toeplitz weight: pooled lane i = lp*256 + cp, output lane
    # m = t*128 + o;  W2[i, m] = w2[o, cp, lp - t] for 0 <= lp - t <= 2.
    w2_big = np.zeros((6, 256, 4, 128), np.float32)          # [lp, cp, t, o]
    for t in range(4):
        for k in range(3):
            w2_big[t + k, :, t, :] = w2[:, :, k].T            # (256, 128)
    w2_big = w2_big.reshape(1536, 512)
    b2_big = np.tile(b2[None, :], (4, 1)).reshape(1, 512)

    # fc weight: fold PyTorch channel-major flatten (flat = o*4 + t) and pad
    # the 3-wide output to 128 lanes for a lane-dense store.
    wfc_big = np.zeros((4, 128, 128), np.float32)             # [t, o, j_pad]
    wfc_big[:, :, :3] = np.transpose(wfc.reshape(3, 128, 4), (2, 1, 0))
    wfc_big = wfc_big.reshape(512, 128)
    bfc_big = np.zeros((1, 128), np.float32)
    bfc_big[0, :3] = bfc

    return tuple(jnp.asarray(a) for a in
                 (w1_big, b1_big, w2_big, b2_big, wfc_big, bfc_big))


def _round_up(n, m):
    return ((n + m - 1) // m) * m


# ------------------------------ forward wrapper ------------------------------
@functools.partial(jax.jit, static_argnames=("block_n",))
def convnet_forward(x, params, block_n=256):
    """x: (N, 1, 16) NCL; params from prepare_params(). Returns (N, 3)."""
    w1, b1, w2, b2, wfc, bfc = params
    N = x.shape[0]
    x2d = x[:, 0, :].astype(jnp.float32)                    # (N, 16)

    tn = min(block_n, _round_up(N, 8))                      # batch tile
    npad = _round_up(N, tn)
    if npad != N:
        x2d = jnp.pad(x2d, ((0, npad - N), (0, 0)))

    out = pl.pallas_call(
        convnet_kernel,
        out_shape=jax.ShapeDtypeStruct((npad, 128), jnp.float32),
        grid=(npad // tn,),
        in_specs=[
            pl.BlockSpec((tn, 16), lambda i: (i, 0)),        # x: batch-tiled
            pl.BlockSpec((16, 6144), lambda i: (0, 0)),      # weights resident
            pl.BlockSpec((1, 6144), lambda i: (0, 0)),
            pl.BlockSpec((1536, 512), lambda i: (0, 0)),
            pl.BlockSpec((1, 512), lambda i: (0, 0)),
            pl.BlockSpec((512, 128), lambda i: (0, 0)),
            pl.BlockSpec((1, 128), lambda i: (0, 0)),
        ],
        out_specs=pl.BlockSpec((tn, 128), lambda i: (i, 0)),
        compiler_params=pltpu.CompilerParams(
            dimension_semantics=("parallel",),               # megacore-friendly
            vmem_limit_bytes=48 * 1024 * 1024,               # fits 64MiB v7x
        ),
    )(x2d, w1, b1, w2, b2, wfc, bfc)
    return out[:N, :3]


# --------------------------- plain-JAX reference -----------------------------
def reference_forward(x, w1, b1, w2, b2, wfc, bfc):
    """Mirror of the PyTorch forward (NCL layout)."""
    N = x.shape[0]
    h = jax.lax.conv_general_dilated(
        x, w1, window_strides=(1,), padding='VALID',
        dimension_numbers=('NCH', 'OIH', 'NCH')) + b1[None, :, None]
    h = jnp.maximum(h, 0.0)                                  # (N, 512, 12)
    h = jax.lax.reduce_window(h, -jnp.inf, jax.lax.max,
                              (1, 2, 2), (1, 2, 2), 'VALID')  # (N, 256, 6)
    h = jax.lax.conv_general_dilated(
        h, w2, window_strides=(1,), padding='VALID',
        dimension_numbers=('NCH', 'OIH', 'NCH')) + b2[None, :, None]
    h = jnp.maximum(h, 0.0)                                  # (N, 128, 4)
    h = h.reshape(N, -1)                                     # (N, 512)
    return h @ wfc.T + bfc[None, :]


if __name__ == "__main__":
    keys = jax.random.split(jax.random.PRNGKey(0), 8)

    def uinit(key, shape, fan_in):
        bound = fan_in ** -0.5
        return jax.random.uniform(key, shape, jnp.float32, -bound, bound)

    # Parameters with the PyTorch-module shapes.
    w1 = uinit(keys[0], (512, 1, 5), 1 * 5)        # Conv1d(1, 512, 5)
    b1 = uinit(keys[1], (512,), 1 * 5)
    w2 = uinit(keys[2], (128, 256, 3), 256 * 3)    # Conv1d(256, 128, 3)
    b2 = uinit(keys[3], (128,), 256 * 3)
    wfc = uinit(keys[4], (3, 512), 512)            # Linear(512, 3)
    bfc = uinit(keys[5], (3,), 512)

    # One-time weight re-layout (hoisted out of the per-call jitted path).
    params = prepare_params(w1, b1, w2, b2, wfc, bfc)

    # Small test: batch=2, in_channels=1, length=16 (flatten yields 512).
    x = jax.random.normal(keys[6], (2, 1, 16), jnp.float32)
    out = jax.block_until_ready(convnet_forward(x, params))
    ref = jax.block_until_ready(reference_forward(x, w1, b1, w2, b2, wfc, bfc))
    assert out.shape == (2, 3), out.shape
    assert jnp.allclose(out, ref, rtol=1e-4, atol=1e-4), (out, ref)

    # Multi-tile + padding path: batch=50 with a 16-row tile -> grid of 4.
    xb = jax.random.normal(keys[7], (50, 1, 16), jnp.float32)
    outb = jax.block_until_ready(convnet_forward(xb, params, block_n=16))
    refb = jax.block_until_ready(
        reference_forward(xb, w1, b1, w2, b2, wfc, bfc))
    assert outb.shape == (50, 3), outb.shape
    assert jnp.allclose(outb, refb, rtol=1e-4, atol=1e-4)

    print("KERNEL_OK")
</pallas_src>

<mosaic_0001>
module attributes {stable_mosaic.version = 11 : i64} {
  func.func @convnet_kernel(%arg0: i32, %arg1: memref<8x16xf32, #tpu.memory_space<vmem>>, %arg2: memref<16x6144xf32, #tpu.memory_space<vmem>>, %arg3: memref<1x6144xf32, #tpu.memory_space<vmem>>, %arg4: memref<1536x512xf32, #tpu.memory_space<vmem>>, %arg5: memref<1x512xf32, #tpu.memory_space<vmem>>, %arg6: memref<512x128xf32, #tpu.memory_space<vmem>>, %arg7: memref<1x128xf32, #tpu.memory_space<vmem>>, %arg8: memref<8x128xf32, #tpu.memory_space<vmem>>) attributes {dimension_semantics = [#tpu.dimension_semantics<parallel>], iteration_bounds = array<i64: 1>, scalar_prefetch = 0 : i64, scratch_operands = 0 : i64, tpu.core_type = #tpu.core_type<tc>, window_params = [{transform_indices = @transform_0, window_bounds = array<i64: 8, 16>}, {pipeline_mode = #tpu.pipeline_mode<synchronous>, transform_indices = @transform_1, window_bounds = array<i64: 16, 6144>}, {pipeline_mode = #tpu.pipeline_mode<synchronous>, transform_indices = @transform_2, window_bounds = array<i64: 1, 6144>}, {pipeline_mode = #tpu.pipeline_mode<synchronous>, transform_indices = @transform_3, window_bounds = array<i64: 1536, 512>}, {pipeline_mode = #tpu.pipeline_mode<synchronous>, transform_indices = @transform_4, window_bounds = array<i64: 1, 512>}, {pipeline_mode = #tpu.pipeline_mode<synchronous>, transform_indices = @transform_5, window_bounds = array<i64: 512, 128>}, {pipeline_mode = #tpu.pipeline_mode<synchronous>, transform_indices = @transform_6, window_bounds = array<i64: 1, 128>}, {transform_indices = @transform_7, window_bounds = array<i64: 8, 128>}]} {
    %c0 = arith.constant 0 : index
    %c0_0 = arith.constant 0 : index
    %0 = vector.load %arg1[%c0, %c0_0] : memref<8x16xf32, #tpu.memory_space<vmem>>, vector<8x16xf32>
    %c0_1 = arith.constant 0 : index
    %c0_2 = arith.constant 0 : index
    %1 = vector.load %arg2[%c0_1, %c0_2] : memref<16x6144xf32, #tpu.memory_space<vmem>>, vector<16x6144xf32>
    %cst = arith.constant dense<0.000000e+00> : vector<8x6144xf32>
    %2 = tpu.matmul %0, %1, %cst {dimension_numbers = #tpu.dot_dimension_numbers<[1], [0], [0], [1], [0, 0, 1, 1], [], []>} : vector<8x16xf32>, vector<16x6144xf32>, vector<8x6144xf32> -> vector<8x6144xf32>
    %c0_3 = arith.constant 0 : index
    %c0_4 = arith.constant 0 : index
    %3 = vector.load %arg3[%c0_3, %c0_4] : memref<1x6144xf32, #tpu.memory_space<vmem>>, vector<1x6144xf32>
    %4 = vector.broadcast %3 : vector<1x6144xf32> to vector<8x6144xf32>
    %5 = arith.addf %2, %4 : vector<8x6144xf32>
    %cst_5 = arith.constant 0.000000e+00 : f32
    %6 = vector.broadcast %cst_5 : f32 to vector<8x6144xf32>
    %7 = arith.maximumf %5, %6 : vector<8x6144xf32>
    %8 = vector.extract_strided_slice %7 {offsets = [0, 0], sizes = [8, 3072], strides = [1, 1]} : vector<8x6144xf32> to vector<8x3072xf32>
    %9 = vector.extract_strided_slice %7 {offsets = [0, 3072], sizes = [8, 3072], strides = [1, 1]} : vector<8x6144xf32> to vector<8x3072xf32>
    %10 = arith.maximumf %8, %9 : vector<8x3072xf32>
    %11 = vector.extract_strided_slice %10 {offsets = [0, 0], sizes = [8, 1536], strides = [1, 1]} : vector<8x3072xf32> to vector<8x1536xf32>
    %12 = vector.extract_strided_slice %10 {offsets = [0, 1536], sizes = [8, 1536], strides = [1, 1]} : vector<8x3072xf32> to vector<8x1536xf32>
    %13 = arith.maximumf %11, %12 : vector<8x1536xf32>
    %c0_6 = arith.constant 0 : index
    %c0_7 = arith.constant 0 : index
    %14 = vector.load %arg4[%c0_6, %c0_7] : memref<1536x512xf32, #tpu.memory_space<vmem>>, vector<1536x512xf32>
    %cst_8 = arith.constant dense<0.000000e+00> : vector<8x512xf32>
    %15 = tpu.matmul %13, %14, %cst_8 {dimension_numbers = #tpu.dot_dimension_numbers<[1], [0], [0], [1], [0, 0, 1, 1], [], []>} : vector<8x1536xf32>, vector<1536x512xf32>, vector<8x512xf32> -> vector<8x512xf32>
    %c0_9 = arith.constant 0 : index
    %c0_10 = arith.constant 0 : index
    %16 = vector.load %arg5[%c0_9, %c0_10] : memref<1x512xf32, #tpu.memory_space<vmem>>, vector<1x512xf32>
    %17 = vector.broadcast %16 : vector<1x512xf32> to vector<8x512xf32>
    %18 = arith.addf %15, %17 : vector<8x512xf32>
    %cst_11 = arith.constant 0.000000e+00 : f32
    %19 = vector.broadcast %cst_11 : f32 to vector<8x512xf32>
    %20 = arith.maximumf %18, %19 : vector<8x512xf32>
    %c0_12 = arith.constant 0 : index
    %c0_13 = arith.constant 0 : index
    %21 = vector.load %arg6[%c0_12, %c0_13] : memref<512x128xf32, #tpu.memory_space<vmem>>, vector<512x128xf32>
    %cst_14 = arith.constant dense<0.000000e+00> : vector<8x128xf32>
    %22 = tpu.matmul %20, %21, %cst_14 {dimension_numbers = #tpu.dot_dimension_numbers<[1], [0], [0], [1], [0, 0, 1, 1], [], []>} : vector<8x512xf32>, vector<512x128xf32>, vector<8x128xf32> -> vector<8x128xf32>
    %c0_15 = arith.constant 0 : index
    %c0_16 = arith.constant 0 : index
    %23 = vector.load %arg7[%c0_15, %c0_16] : memref<1x128xf32, #tpu.memory_space<vmem>>, vector<1x128xf32>
    %24 = vector.broadcast %23 : vector<1x128xf32> to vector<8x128xf32>
    %25 = arith.addf %22, %24 : vector<8x128xf32>
    %c0_17 = arith.constant 0 : index
    %c0_18 = arith.constant 0 : index
    %26 = vector.load %arg8[%c0_17, %c0_18] : memref<8x128xf32, #tpu.memory_space<vmem>>, vector<8x128xf32>
    tpu.vector_store %arg8[%c0_17, %c0_18], %25 {strides = array<i32>} : memref<8x128xf32, #tpu.memory_space<vmem>>, vector<8x128xf32>,
    return
  }
  func.func @transform_0(%arg0: i32) -> (i32, i32) {
    %c0_i32 = arith.constant 0 : i32
    %c0_i32_0 = arith.constant 0 : i32
    return %arg0, %c0_i32 : i32, i32
  }
  func.func @transform_1(%arg0: i32) -> (i32, i32) {
    %c0_i32 = arith.constant 0 : i32
    %c0_i32_0 = arith.constant 0 : i32
    %c0_i32_1 = arith.constant 0 : i32
    return %c0_i32, %c0_i32_0 : i32, i32
  }
  func.func @transform_2(%arg0: i32) -> (i32, i32) {
    %c0_i32 = arith.constant 0 : i32
    %c0_i32_0 = arith.constant 0 : i32
    %c0_i32_1 = arith.constant 0 : i32
    return %c0_i32, %c0_i32_0 : i32, i32
  }
  func.func @transform_3(%arg0: i32) -> (i32, i32) {
    %c0_i32 = arith.constant 0 : i32
    %c0_i32_0 = arith.constant 0 : i32
    %c0_i32_1 = arith.constant 0 : i32
    return %c0_i32, %c0_i32_0 : i32, i32
  }
  func.func @transform_4(%arg0: i32) -> (i32, i32) {
    %c0_i32 = arith.constant 0 : i32
    %c0_i32_0 = arith.constant 0 : i32
    %c0_i32_1 = arith.constant 0 : i32
    return %c0_i32, %c0_i32_0 : i32, i32
  }
  func.func @transform_5(%arg0: i32) -> (i32, i32) {
    %c0_i32 = arith.constant 0 : i32
    %c0_i32_0 = arith.constant 0 : i32
    %c0_i32_1 = arith.constant 0 : i32
    return %c0_i32, %c0_i32_0 : i32, i32
  }
  func.func @transform_6(%arg0: i32) -> (i32, i32) {
    %c0_i32 = arith.constant 0 : i32
    %c0_i32_0 = arith.constant 0 : i32
    %c0_i32_1 = arith.constant 0 : i32
    return %c0_i32, %c0_i32_0 : i32, i32
  }
  func.func @transform_7(%arg0: i32) -> (i32, i32) {
    %c0_i32 = arith.constant 0 : i32
    %c0_i32_0 = arith.constant 0 : i32
    return %arg0, %c0_i32 : i32, i32
  }
}

</mosaic_0001>

<bundles_post_ra>
// kernel: convnet_forward.1
= control target key start
LH: loop header
LB: loop body
LE: loop exit
PB: predicated region body
PF: predicated region fallthrough
CT: control target
= control target key end

     0   :  { %12 = vsyncpa [#allocation3], 0  ;;  %s5946_s0 = inlined_call_operand.vmem [shape: f32[8,16], index: 0, kind: input, shape index: {}]   ;;  %s5947_s1 = inlined_call_operand.hbm [shape: f32[16,6144], index: 1, kind: input, shape index: {}]   ;;  %s5948_s2 = inlined_call_operand.hbm [shape: f32[1,6144], index: 2, kind: input, shape index: {}]   ;;  %s5949_s3 = inlined_call_operand.hbm [shape: f32[1536,512], index: 3, kind: input, shape index: {}]   ;;  %s5950_s4 = inlined_call_operand.hbm [shape: f32[1,512], index: 4, kind: input, shape index: {}]   ;;  %s5951_s5 = inlined_call_operand.hbm [shape: f32[512,128], index: 5, kind: input, shape index: {}]   ;;  %s5952_s6 = inlined_call_operand.hbm [shape: f32[1,128], index: 6, kind: input, shape index: {}]   ;;  %s5953_s7 = inlined_call_operand.vmem [shape: f32[8,128], index: 7, kind: output, shape index: {}]  }
   0x1   :  { %13 = vsyncpa [#allocation5], 0 }
   0x2   :  { %14 = vsyncpa [#allocation8], 0 }
   0x3   :  { %15 = vsyncpa [#allocation11], 0  ;;  %s5309_s24 = smov [#allocation4]   ;;  %s5310_s26 = smov [#allocation7]  }
   0x4   :  { %s36_s25 = sshll.u32 %s5309_s24, 4  ;;  %s58_s27 = sshll.u32 %s5310_s26, 4  ;;  %s37_s25 = int_to_ptr.vmem [resolvable:$true] %s36_s25  ;;  %s59_s27 = int_to_ptr.vmem [resolvable:$true] %s58_s27 }
   0x5   :  { %s5169_s30 = scalar_lea.hbm %s5948_s2, 768 }
   0x6   :  { %p5170_p0 = scmp.ne.s32.totalorder %s5948_s2, %s5169_s30  ;;  %p5173_p1 = scmp.lt.u32.totalorder %s5169_s30, %s5948_s2 }
   0x8   :  { %p5175_p2 = pnand %p5173_p1, %p5170_p0 }
   0xa   :  { %5178 = shalt.err (!%p5175_p2)
}
   0xb   :  { %s5179_s12 = scalar_lea.vmem %s37_s25, 768  ;;  %p5184_p4 = scmp.lt.s32.totalorder %s37_s25, %s37_s25 }
   0xc   :  { %p5180_p3 = scmp.ne.s32.totalorder %s37_s25, %s5179_s12  ;;  %p5185_p5 = scmp.lt.s32.totalorder %s5179_s12, %s5179_s12 }
   0xe   :  { %p5186_p6 = por %p5185_p5, %p5184_p4 }
  0x10   :  { %p5187_p7 = pnand %p5186_p6, %p5180_p3 }
  0x12   :  { %5190 = shalt.err (!%p5187_p7)
}
  0x13   :  { %39 = dma.hbm_to_vmem [thread:$0]  %s5948_s2, 768, %s37_s25, [#allocation5]  }
  0x14   :  { %s5191_s17 = scalar_lea.hbm %s5950_s4, 64 }
  0x15   :  { %p5192_p8 = scmp.ne.s32.totalorder %s5950_s4, %s5191_s17  ;;  %p5195_p9 = scmp.lt.u32.totalorder %s5191_s17, %s5950_s4 }
  0x17   :  { %p5197_p10 = pnand %p5195_p9, %p5192_p8 }
  0x19   :  { %5200 = shalt.err (!%p5197_p10)
}
  0x1a   :  { %s5201_s22 = scalar_lea.vmem %s59_s27, 64  ;;  %p5206_p12 = scmp.lt.s32.totalorder %s59_s27, %s59_s27 }
  0x1b   :  { %p5202_p11 = scmp.ne.s32.totalorder %s59_s27, %s5201_s22  ;;  %p5207_p13 = scmp.lt.s32.totalorder %s5201_s22, %s5201_s22 }
  0x1d   :  { %p5208_p0 = por %p5207_p13, %p5206_p12 }
  0x1f   :  { %p5209_p1 = pnand %p5208_p0, %p5202_p11 }
  0x21   :  { %5212 = shalt.err (!%p5209_p1)
}
  0x22   :  { %61 = dma.hbm_to_vmem [thread:$0]  %s5950_s4, 64, %s59_s27, [#allocation8]  }
  0x23   :  { %s5311_s24 = smov [#allocation2]   ;;  %s5213_s29 = scalar_lea.hbm %s5947_s1, 12288 }
  0x24   :  { %s23_s25 = sshll.u32 %s5311_s24, 4  ;;  %p5214_p2 = scmp.ne.s32.totalorder %s5947_s1, %s5213_s29  ;;  %s24_s25 = int_to_ptr.vmem [resolvable:$true] %s23_s25 }
  0x25   :  { %p5217_p3 = scmp.lt.u32.totalorder %s5213_s29, %s5947_s1 }
  0x27   :  { %p5219_p4 = pnand %p5217_p3, %p5214_p2 }
  0x29   :  { %5222 = shalt.err (!%p5219_p4)
}
  0x2a   :  { %s5223_s11 = scalar_lea.vmem %s24_s25, 12288  ;;  %p5228_p6 = scmp.lt.s32.totalorder %s24_s25, %s24_s25 }
  0x2b   :  { %p5224_p5 = scmp.ne.s32.totalorder %s24_s25, %s5223_s11  ;;  %p5229_p7 = scmp.lt.s32.totalorder %s5223_s11, %s5223_s11 }
  0x2d   :  { %p5230_p8 = por %p5229_p7, %p5228_p6 }
  0x2f   :  { %p5231_p9 = pnand %p5230_p8, %p5224_p5 }
  0x31   :  { %5234 = shalt.err (!%p5231_p9)
}
  0x32   :  { %s5312_s4 = smov 6144   ;;  %s5313_s27 = smov 384  }
  0x33   :  { %29 = dma.hbm_to_vmem [thread:$0]  %s5947_s1, 12288, %s24_s25, [#allocation3], %s5312_s4, %s5312_s4, %s5313_s27  }
  0x34   :  { %s5314_s14 = smov [#allocation6]   ;;  %s5235_s18 = scalar_lea.hbm %s5949_s3, 98304 }
  0x35   :  { %s45_s15 = sshll.u32 %s5314_s14, 4  ;;  %p5236_p10 = scmp.ne.s32.totalorder %s5949_s3, %s5235_s18  ;;  %s46_s15 = int_to_ptr.vmem [resolvable:$true] %s45_s15 }
  0x36   :  { %p5239_p11 = scmp.lt.u32.totalorder %s5235_s18, %s5949_s3 }
  0x38   :  { %p5241_p12 = pnand %p5239_p11, %p5236_p10 }
  0x3a   :  { %5244 = shalt.err (!%p5241_p12)
}
  0x3b   :  { %s5245_s2 = scalar_lea.vmem %s46_s15, 98304  ;;  %p5250_p0 = scmp.lt.s32.totalorder %s46_s15, %s46_s15 }
  0x3c   :  { %p5246_p13 = scmp.ne.s32.totalorder %s46_s15, %s5245_s2  ;;  %p5251_p1 = scmp.lt.s32.totalorder %s5245_s2, %s5245_s2 }
  0x3e   :  { %p5252_p2 = por %p5251_p1, %p5250_p0 }
  0x40   :  { %p5253_p3 = pnand %p5252_p2, %p5246_p13 }
  0x42   :  { %5256 = shalt.err (!%p5253_p3)
}
  0x43   :  { %s5315_s1 = smov 512   ;;  %s5316_s23 = smov 32  }
  0x44   :  { %51 = dma.hbm_to_vmem [thread:$0]  %s5949_s3, 98304, %s46_s15, [#allocation5], %s5315_s1, %s5315_s1, %s5316_s23  }
  0x45   :  { %s5317_s26 = smov [#allocation9]   ;;  %s5257_s8 = scalar_lea.hbm %s5951_s5, 8192 }
  0x46   :  { %s67_s28 = sshll.u32 %s5317_s26, 4  ;;  %p5258_p4 = scmp.ne.s32.totalorder %s5951_s5, %s5257_s8  ;;  %s68_s28 = int_to_ptr.vmem [resolvable:$true] %s67_s28 }
  0x47   :  { %p5261_p5 = scmp.lt.u32.totalorder %s5257_s8, %s5951_s5 }
  0x49   :  { %p5263_p6 = pnand %p5261_p5, %p5258_p4 }
  0x4b   :  { %5266 = shalt.err (!%p5263_p6)
}
  0x4c   :  { %s5267_s27 = scalar_lea.vmem %s68_s28, 8192  ;;  %p5272_p8 = scmp.lt.s32.totalorder %s68_s28, %s68_s28 }
  0x4d   :  { %p5268_p7 = scmp.ne.s32.totalorder %s68_s28, %s5267_s27  ;;  %p5273_p9 = scmp.lt.s32.totalorder %s5267_s27, %s5267_s27 }
  0x4f   :  { %p5274_p10 = por %p5273_p9, %p5272_p8 }
  0x51   :  { %p5275_p11 = pnand %p5274_p10, %p5268_p7 }
  0x53   :  { %5278 = shalt.err (!%p5275_p11)
}
  0x54   :  { %s5318_s3 = smov 128   ;;  %s5319_s12 = smov 8  }
  0x55   :  { %73 = dma.hbm_to_vmem [thread:$0]  %s5951_s5, 8192, %s68_s28, [#allocation8], %s5318_s3, %s5318_s3, %s5319_s12  }
  0x56   :  { %s5320_s15 = smov [#allocation10]   ;;  %s5279_s19 = scalar_lea.hbm %s5952_s6, 16 }
  0x57   :  { %s80_s16 = sshll.u32 %s5320_s15, 4  ;;  %p5280_p12 = scmp.ne.s32.totalorder %s5952_s6, %s5279_s19  ;;  %s81_s16 = int_to_ptr.vmem [resolvable:$true] %s80_s16 }
  0x58   :  { %p5283_p13 = scmp.lt.u32.totalorder %s5279_s19, %s5952_s6 }
  0x5a   :  { %p5285_p0 = pnand %p5283_p13, %p5280_p12 }
  0x5c   :  { %5288 = shalt.err (!%p5285_p0)
}
  0x5d   :  { %s5289_s1 = scalar_lea.vmem %s81_s16, 16  ;;  %s5293_s5 = scalar_lea.vmem %s81_s16, 32 }
  0x5e   :  { %p5290_p1 = scmp.ne.s32.totalorder %s81_s16, %s5289_s1  ;;  %p5294_p2 = scmp.lt.s32.totalorder %s81_s16, %s81_s16 }
  0x5f   :  { %p5295_p3 = scmp.lt.s32.totalorder %s5293_s5, %s5289_s1 }
  0x61   :  { %p5296_p4 = por %p5295_p3, %p5294_p2 }
  0x63   :  { %p5297_p5 = pnand %p5296_p4, %p5290_p1 }
  0x65   :  { %5300 = shalt.err (!%p5297_p5)
}
  0x66   :  { %83 = dma.hbm_to_vmem [thread:$0]  %s5952_s6, 16, %s81_s16, [#allocation11]  }
  0x67   :  { %5301 = dma.done.wait [#allocation3], 12288  }
  0x68   :  { %5302 = vsyncadd [#allocation3], 4294955008 }
  0x69   :  { %5303 = dma.done.wait [#allocation5], 99072  }
  0x6a   :  { %5304 = vsyncadd [#allocation5], 4294868224 }
  0x6b   :  { %5305 = dma.done.wait [#allocation8], 8256  }
  0x6c   :  { %5306 = vsyncadd [#allocation8], 4294959040 }
  0x6d   :  { %5307 = dma.done.wait [#allocation11], 16  }
  0x6e   :  { %5308 = vsyncadd [#allocation11], 4294967280  ;;  %v5321_v0 = vmov 0.0   ;;  %v104_v1 = vld [vmem:[#allocation2 + $0x8] sm:$0xff]  ;;  %v103_v3 = vld [vmem:[#allocation2] sm:$0xff]  ;;  %vm451_vm0 = vcmask 130048  }
  0x6f   :  { %519 = vmatprep.mubr.f32.mxu0 %v5321_v0  ;;  %590 = vmatprep.mubr.f32.mxu1 %v5321_v0  ;;  %v152_v2 = vld [vmem:[#allocation2 + $0x188] sm:$0xff]  ;;  %v151_v5 = vld [vmem:[#allocation2 + $0x180] sm:$0xff]  ;;  %v106_v25 = vld [vmem:[#allocation2 + $0x18] sm:$0xff] }
  0x70   :  { %v4204_v4 = vpack.c.bf16 %v152_v2, %v104_v1  ;;  %v108_v6 = vld [vmem:[#allocation2 + $0x28] sm:$0xff]  ;;  %v4206_v7 = vpack.c.bf16 %v151_v5, %v103_v3  ;;  %v107_v9 = vld [vmem:[#allocation2 + $0x20] sm:$0xff]  ;;  %v154_v28 = vld [vmem:[#allocation2 + $0x198] sm:$0xff] }
  0x71   :  { %v156_v8 = vld [vmem:[#allocation2 + $0x1a8] sm:$0xff]  ;;  %v155_v10 = vld [vmem:[#allocation2 + $0x1a0] sm:$0xff]  ;;  %v4208_v29 = vpack.c.bf16 %v154_v28, %v106_v25  ;;  %v105_v30 = vld [vmem:[#allocation2 + $0x10] sm:$0xff] }
  0x72   :  { %4205 = vmatprep.subr.bf16.mxu0 %v4204_v4  ;;  %v4212_v11 = vpack.c.bf16 %v156_v8, %v108_v6  ;;  %v112_v12 = vld [vmem:[#allocation2 + $0x48] sm:$0xff]  ;;  %v5439_v14 = vld [vmem:[%s5946_s0] sm:$0xff]  ;;  %v4214_v15 = vpack.c.bf16 %v155_v10, %v107_v9  ;;  %v153_v31 = vld [vmem:[#allocation2 + $0x190] sm:$0xff] }
  0x73   :  { %v160_v13 = vld [vmem:[#allocation2 + $0x1c8] sm:$0xff]  ;;  %4207 = vmatpush1.bf16.msra.mxu0 %v4206_v7  ;;  %v111_v17 = vld [vmem:[#allocation2 + $0x40] sm:$0xff]  ;;  %v4210_v33 = vpack.c.bf16 %v153_v31, %v105_v30  ;;  %v110_v34 = vld [vmem:[#allocation2 + $0x38] sm:$0xff]  ;;  %4209 = vmatprep.subr.bf16.mxu1 %v4208_v29 }
  0x74   :  { %4213 = vmatprep.subr.bf16.mxu0 %v4212_v11  ;;  %v4220_v16 = vpack.c.bf16 %v160_v13, %v112_v12  ;;  %v159_v18 = vld [vmem:[#allocation2 + $0x1c0] sm:$0xff]  ;;  %v116_v19 = vld [vmem:[#allocation2 + $0x68] sm:$0xff]  ;;  %v158_v35 = vld [vmem:[#allocation2 + $0x1b8] sm:$0xff] }
  0x75   :  { %v164_v20 = vld [vmem:[#allocation2 + $0x1e8] sm:$0xff]  ;;  %v4222_v21 = vpack.c.bf16 %v159_v18, %v111_v17  ;;  %v115_v23 = vld [vmem:[#allocation2 + $0x60] sm:$0xff]  ;;  %v4216_v39 = vpack.c.bf16 %v158_v35, %v110_v34  ;;  %v109_v40 = vld [vmem:[#allocation2 + $0x30] sm:$0xff]  ;;  %4211 = vmatpush1.bf16.msra.mxu1 %v4210_v33 }
  0x76   :  { %4109 = vmatmul.mubr.msk.f32.vlgmr.msra.gmra.mrb[0].mxu0 %vm451_vm0, %v5439_v14  ;;  %v4228_v22 = vpack.c.bf16 %v164_v20, %v116_v19  ;;  %v163_v24 = vld [vmem:[#allocation2 + $0x1e0] sm:$0xff]  ;;  %v120_v26 = vld [vmem:[#allocation2 + $0x88] sm:$0xff]  ;;  %v157_v43 = vld [vmem:[#allocation2 + $0x1b0] sm:$0xff] }
  0x77   :  { %4215 = vmatpush1.bf16.msra.mxu0 %v4214_v15  ;;  %661 = vmatprep.mubr.f32.mxu0 %v5321_v0  ;;  %v168_v27 = vld [vmem:[#allocation2 + $0x208] sm:$0xff]  ;;  %v4230_v32 = vpack.c.bf16 %v163_v24, %v115_v23  ;;  %v119_v37 = vld [vmem:[#allocation2 + $0x80] sm:$0xff]  ;;  %v4218_v44 = vpack.c.bf16 %v157_v43, %v109_v40  ;;  %v114_v45 = vld [vmem:[#allocation2 + $0x58] sm:$0xff] }
  0x78   :  { %4221 = vmatprep.subr.bf16.mxu0 %v4220_v16  ;;  %v4236_v36 = vpack.c.bf16 %v168_v27, %v120_v26  ;;  %v167_v38 = vld [vmem:[#allocation2 + $0x200] sm:$0xff]  ;;  %v124_v41 = vld [vmem:[#allocation2 + $0xa8] sm:$0xff]  ;;  %4217 = vmatprep.subr.bf16.mxu1 %v4216_v39  ;;  %v162_v46 = vld [vmem:[#allocation2 + $0x1d8] sm:$0xff] }
  0x79   :  { %v172_v42 = vld [vmem:[#allocation2 + $0x228] sm:$0xff]  ;;  %v4238_v47 = vpack.c.bf16 %v167_v38, %v119_v37  ;;  %v4224_v48 = vpack.c.bf16 %v162_v46, %v114_v45  ;;  %v113_v49 = vld [vmem:[#allocation2 + $0x50] sm:$0xff]  ;;  %v123_v52 = vld [vmem:[#allocation2 + $0xa0] sm:$0xff]  ;;  %4110 = vmatmul.mubr.msk.f32.vlgmr.msra.gmra.mrb[0].mxu1 %vm451_vm0, %v5439_v14 }
  0x7a   :  { %4111 = vmatmul.mubr.msk.f32.vlgmr.msra.gmra.mrb[2].mxu0 %vm451_vm0, %v5439_v14  ;;  %v161_v50 = vld [vmem:[#allocation2 + $0x1d0] sm:$0xff]  ;;  %v4244_v51 = vpack.c.bf16 %v172_v42, %v124_v41  ;;  %v171_v53 = vld [vmem:[#allocation2 + $0x220] sm:$0xff]  ;;  %v118_v54 = vld [vmem:[#allocation2 + $0x78] sm:$0xff]  ;;  %4219 = vmatpush1.bf16.msra.mxu1 %v4218_v44 }
  0x7b   :  { %4223 = vmatpush1.bf16.msra.mxu0 %v4222_v21  ;;  %803 = vmatprep.mubr.f32.mxu0 %v5321_v0  ;;  %v128_v55 = vld [vmem:[#allocation2 + $0xc8] sm:$0xff]  ;;  %v4226_v57 = vpack.c.bf16 %v161_v50, %v113_v49  ;;  %v166_v58 = vld [vmem:[#allocation2 + $0x1f8] sm:$0xff]  ;;  %v117_v60 = vld [vmem:[#allocation2 + $0x70] sm:$0xff]  ;;  %v4246_v62 = vpack.c.bf16 %v171_v53, %v123_v52 }
  0x7c   :  { %4229 = vmatprep.subr.bf16.mxu0 %v4228_v22  ;;  %v176_v56 = vld [vmem:[#allocation2 + $0x248] sm:$0xff]  ;;  %732 = vmatprep.mubr.f32.mxu1 %v5321_v0  ;;  %v4232_v59 = vpack.c.bf16 %v166_v58, %v118_v54  ;;  %v165_v61 = vld [vmem:[#allocation2 + $0x1f0] sm:$0xff]  ;;  %v122_v63 = vld [vmem:[#allocation2 + $0x98] sm:$0xff] }
  0x7d   :  { %4225 = vmatprep.subr.bf16.mxu1 %v4224_v48  ;;  %v170_v1 = vld [vmem:[#allocation2 + $0x218] sm:$0xff]  ;;  %v4252_v2 = vpack.c.bf16 %v176_v56, %v128_v55  ;;  %v127_v3 = vld [vmem:[#allocation2 + $0xc0] sm:$0xff]  ;;  %4112 = vmatmul.mubr.msk.f32.vlgmr.msra.gmra.mrb[2].mxu1 %vm451_vm0, %v5439_v14  ;;  %v132_v5 = vld [vmem:[#allocation2 + $0xe8] sm:$0xff]  ;;  %v4234_v7 = vpack.c.bf16 %v165_v61, %v117_v60 }
  0x7e   :  { %4113 = vmatmul.mubr.msk.f32.vlgmr.msra.gmra.mrb[4].mxu0 %vm451_vm0, %v5439_v14  ;;  %v175_v4 = vld [vmem:[#allocation2 + $0x240] sm:$0xff]  ;;  %v180_v6 = vld [vmem:[#allocation2 + $0x268] sm:$0xff]  ;;  %4227 = vmatpush1.bf16.msra.mxu1 %v4226_v57  ;;  %v4240_v8 = vpack.c.bf16 %v170_v1, %v122_v63  ;;  %v121_v9 = vld [vmem:[#allocation2 + $0x90] sm:$0xff] }
  0x7f   :  { %4231 = vmatpush1.bf16.msra.mxu0 %v4230_v32  ;;  %945 = vmatprep.mubr.f32.mxu0 %v5321_v0  ;;  %v169_v10 = vld [vmem:[#allocation2 + $0x210] sm:$0xff]  ;;  %v4254_v11 = vpack.c.bf16 %v175_v4, %v127_v3  ;;  %v126_v12 = vld [vmem:[#allocation2 + $0xb8] sm:$0xff]  ;;  %v4260_v15 = vpack.c.bf16 %v180_v6, %v132_v5  ;;  %v131_v16 = vld [vmem:[#allocation2 + $0xe0] sm:$0xff] }
  0x80   :  { %4237 = vmatprep.subr.bf16.mxu0 %v4236_v36  ;;  %874 = vmatprep.mubr.f32.mxu1 %v5321_v0  ;;  %v174_v13 = vld [vmem:[#allocation2 + $0x238] sm:$0xff]  ;;  %v179_v17 = vld [vmem:[#allocation2 + $0x260] sm:$0xff]  ;;  %v136_v18 = vld [vmem:[#allocation2 + $0x108] sm:$0xff]  ;;  %v4242_v20 = vpack.c.bf16 %v169_v10, %v121_v9 }
  0x81   :  { %4233 = vmatprep.subr.bf16.mxu1 %v4232_v59  ;;  %4114 = vmatmul.mubr.msk.f32.vlgmr.msra.gmra.mrb[4].mxu1 %vm451_vm0, %v5439_v14  ;;  %v184_v19 = vld [vmem:[#allocation2 + $0x288] sm:$0xff]  ;;  %v4248_v21 = vpack.c.bf16 %v174_v13, %v126_v12  ;;  %v125_v22 = vld [vmem:[#allocation2 + $0xb0] sm:$0xff]  ;;  %v4262_v24 = vpack.c.bf16 %v179_v17, %v131_v16  ;;  %v130_v25 = vld [vmem:[#allocation2 + $0xd8] sm:$0xff] }
  0x82   :  { %4115 = vmatmul.mubr.msk.f32.vlgmr.msra.gmra.mrb[6].mxu0 %vm451_vm0, %v5439_v14  ;;  %4235 = vmatpush1.bf16.msra.mxu1 %v4234_v7  ;;  %v173_v23 = vld [vmem:[#allocation2 + $0x230] sm:$0xff]  ;;  %v178_v26 = vld [vmem:[#allocation2 + $0x258] sm:$0xff]  ;;  %v4268_v27 = vpack.c.bf16 %v184_v19, %v136_v18  ;;  %v135_v28 = vld [vmem:[#allocation2 + $0x100] sm:$0xff] }
  0x83   :  { %4239 = vmatpush1.bf16.msra.mxu0 %v4238_v47  ;;  %1087 = vmatprep.mubr.f32.mxu0 %v5321_v0  ;;  %v183_v29 = vld [vmem:[#allocation2 + $0x280] sm:$0xff]  ;;  %v140_v30 = vld [vmem:[#allocation2 + $0x128] sm:$0xff]  ;;  %v4250_v32 = vpack.c.bf16 %v173_v23, %v125_v22  ;;  %v4256_v33 = vpack.c.bf16 %v178_v26, %v130_v25  ;;  %v129_v34 = vld [vmem:[#allocation2 + $0xd0] sm:$0xff] }
  0x84   :  { %4245 = vmatprep.subr.bf16.mxu0 %v4244_v51  ;;  %1016 = vmatprep.mubr.f32.mxu1 %v5321_v0  ;;  %v188_v31 = vld [vmem:[#allocation2 + $0x2a8] sm:$0xff]  ;;  %v177_v35 = vld [vmem:[#allocation2 + $0x250] sm:$0xff]  ;;  %v4270_v36 = vpack.c.bf16 %v183_v29, %v135_v28  ;;  %v134_v37 = vld [vmem:[#allocation2 + $0xf8] sm:$0xff] }
  0x85   :  { %4241 = vmatprep.subr.bf16.mxu1 %v4240_v8  ;;  %4116 = vmatmul.mubr.msk.f32.vlgmr.msra.gmra.mrb[6].mxu1 %vm451_vm0, %v5439_v14  ;;  %v182_v38 = vld [vmem:[#allocation2 + $0x278] sm:$0xff]  ;;  %v4276_v39 = vpack.c.bf16 %v188_v31, %v140_v30  ;;  %v139_v40 = vld [vmem:[#allocation2 + $0x120] sm:$0xff]  ;;  %v144_v42 = vld [vmem:[#allocation2 + $0x148] sm:$0xff]  ;;  %v4258_v44 = vpack.c.bf16 %v177_v35, %v129_v34 }
  0x86   :  { %4117 = vmatmul.mubr.msk.f32.vlgmr.msra.gmra.mrb[8].mxu0 %vm451_vm0, %v5439_v14  ;;  %4243 = vmatpush1.bf16.msra.mxu1 %v4242_v20  ;;  %v187_v41 = vld [vmem:[#allocation2 + $0x2a0] sm:$0xff]  ;;  %v192_v43 = vld [vmem:[#allocation2 + $0x2c8] sm:$0xff]  ;;  %v4264_v45 = vpack.c.bf16 %v182_v38, %v134_v37  ;;  %v133_v46 = vld [vmem:[#allocation2 + $0xf0] sm:$0xff] }
  0x87   :  { %4247 = vmatpush1.bf16.msra.mxu0 %v4246_v62  ;;  %1229 = vmatprep.mubr.f32.mxu0 %v5321_v0  ;;  %v181_v47 = vld [vmem:[#allocation2 + $0x270] sm:$0xff]  ;;  %v4278_v48 = vpack.c.bf16 %v187_v41, %v139_v40  ;;  %v138_v49 = vld [vmem:[#allocation2 + $0x118] sm:$0xff]  ;;  %v4284_v51 = vpack.c.bf16 %v192_v43, %v144_v42  ;;  %v143_v52 = vld [vmem:[#allocation2 + $0x140] sm:$0xff] }
  0x88   :  { %4253 = vmatprep.subr.bf16.mxu0 %v4252_v2  ;;  %1158 = vmatprep.mubr.f32.mxu1 %v5321_v0  ;;  %v186_v50 = vld [vmem:[#allocation2 + $0x298] sm:$0xff]  ;;  %v191_v53 = vld [vmem:[#allocation2 + $0x2c0] sm:$0xff]  ;;  %v148_v54 = vld [vmem:[#allocation2 + $0x168] sm:$0xff]  ;;  %v4266_v56 = vpack.c.bf16 %v181_v47, %v133_v46 }
  0x89   :  { %4249 = vmatprep.subr.bf16.mxu1 %v4248_v21  ;;  %4118 = vmatmul.mubr.msk.f32.vlgmr.msra.gmra.mrb[8].mxu1 %vm451_vm0, %v5439_v14  ;;  %v196_v55 = vld [vmem:[#allocation2 + $0x2e8] sm:$0xff]  ;;  %v4272_v57 = vpack.c.bf16 %v186_v50, %v138_v49  ;;  %v137_v58 = vld [vmem:[#allocation2 + $0x110] sm:$0xff]  ;;  %v4286_v60 = vpack.c.bf16 %v191_v53, %v143_v52  ;;  %v142_v61 = vld [vmem:[#allocation2 + $0x138] sm:$0xff] }
  0x8a   :  { %4119 = vmatmul.mubr.msk.f32.vlgmr.msra.gmra.mrb[10].mxu0 %vm451_vm0, %v5439_v14  ;;  %4251 = vmatpush1.bf16.msra.mxu1 %v4250_v32  ;;  %v185_v59 = vld [vmem:[#allocation2 + $0x290] sm:$0xff]  ;;  %v190_v62 = vld [vmem:[#allocation2 + $0x2b8] sm:$0xff]  ;;  %v4292_v63 = vpack.c.bf16 %v196_v55, %v148_v54  ;;  %v147_v1 = vld [vmem:[#allocation2 + $0x160] sm:$0xff] }
  0x8b   :  { %4255 = vmatpush1.bf16.msra.mxu0 %v4254_v11  ;;  %1371 = vmatprep.mubr.f32.mxu0 %v5321_v0  ;;  %v195_v2 = vld [vmem:[#allocation2 + $0x2e0] sm:$0xff]  ;;  %v4274_v3 = vpack.c.bf16 %v185_v59, %v137_v58  ;;  %v2244_v4 = vld [vmem:[#allocation6 + $0x8] sm:$0xff]  ;;  %v4280_v6 = vpack.c.bf16 %v190_v62, %v142_v61  ;;  %v141_v7 = vld [vmem:[#allocation2 + $0x130] sm:$0xff] }
  0x8c   :  { %4261 = vmatprep.subr.bf16.mxu0 %v4260_v15  ;;  %1300 = vmatprep.mubr.f32.mxu1 %v5321_v0  ;;  %v2248_v5 = vld [vmem:[#allocation6 + $0x28] sm:$0xff]  ;;  %v189_v8 = vld [vmem:[#allocation2 + $0x2b0] sm:$0xff]  ;;  %v4294_v9 = vpack.c.bf16 %v195_v2, %v147_v1  ;;  %v2246_v34 = vld [vmem:[#allocation6 + $0x18] sm:$0xff] }
  0x8d   :  { %4257 = vmatprep.subr.bf16.mxu1 %v4256_v33  ;;  %4120 = vmatmul.mubr.msk.f32.vlgmr.msra.gmra.mrb[10].mxu1 %vm451_vm0, %v5439_v14  ;;  %v146_v10 = vld [vmem:[#allocation2 + $0x158] sm:$0xff]  ;;  %v4300_v12 = vpack.c.bf16 %v2248_v5, %v2244_v4  ;;  %v2243_v13 = vld [vmem:[#allocation6] sm:$0xff]  ;;  %v4282_v16 = vpack.c.bf16 %v189_v8, %v141_v7  ;;  %v2250_v35 = vld [vmem:[#allocation6 + $0x38] sm:$0xff] }
  0x8e   :  { %4121 = vmatmul.mubr.msk.f32.vlgmr.msra.gmra.mrb[12].mxu0 %vm451_vm0, %v5439_v14  ;;  %4259 = vmatpush1.bf16.msra.mxu1 %v4258_v44  ;;  %v194_v11 = vld [vmem:[#allocation2 + $0x2d8] sm:$0xff]  ;;  %v2247_v15 = vld [vmem:[#allocation6 + $0x20] sm:$0xff]  ;;  %v4684_v43 = vpack.c.bf16 %v2250_v35, %v2246_v34  ;;  %v2245_v44 = vld [vmem:[#allocation6 + $0x10] sm:$0xff] }
  0x8f   :  { %4263 = vmatpush1.bf16.msra.mxu0 %v4262_v24  ;;  %1513 = vmatprep.mubr.f32.mxu0 %v5321_v0  ;;  %v2252_v17 = vld [vmem:[#allocation6 + $0x48] sm:$0xff]  ;;  %v4288_v19 = vpack.c.bf16 %v194_v11, %v146_v10  ;;  %v145_v20 = vld [vmem:[#allocation2 + $0x150] sm:$0xff]  ;;  %v4302_v24 = vpack.c.bf16 %v2247_v15, %v2243_v13  ;;  %v2254_v46 = vld [vmem:[#allocation6 + $0x58] sm:$0xff] }
  0x90   :  { %4269 = vmatprep.subr.bf16.mxu0 %v4268_v27  ;;  %1442 = vmatprep.mubr.f32.mxu1 %v5321_v0  ;;  %v2256_v18 = vld [vmem:[#allocation6 + $0x68] sm:$0xff]  ;;  %v193_v21 = vld [vmem:[#allocation2 + $0x2d0] sm:$0xff]  ;;  %v2258_v47 = vld [vmem:[#allocation6 + $0x78] sm:$0xff] }
  0x91   :  { %4265 = vmatprep.subr.bf16.mxu1 %v4264_v45  ;;  %4122 = vmatmul.mubr.msk.f32.vlgmr.msra.gmra.mrb[12].mxu1 %vm451_vm0, %v5439_v14  ;;  %v150_v22 = vld [vmem:[#allocation2 + $0x178] sm:$0xff]  ;;  %v4304_v25 = vpack.c.bf16 %v2256_v18, %v2252_v17  ;;  %v2251_v26 = vld [vmem:[#allocation6 + $0x40] sm:$0xff]  ;;  %v4290_v28 = vpack.c.bf16 %v193_v21, %v145_v20  ;;  %v2249_v45 = vld [vmem:[#allocation6 + $0x30] sm:$0xff]  ;;  %v4688_v55 = vpack.c.bf16 %v2258_v47, %v2254_v46 }
  0x92   :  { %4123 = vmatmul.mubr.msk.f32.vlgmr.msra.gmra.mrb[14].mxu0 %vm451_vm0, %v5439_v14  ;;  %4267 = vmatpush1.bf16.msra.mxu1 %v4266_v56  ;;  %v198_v23 = vld [vmem:[#allocation2 + $0x2f8] sm:$0xff]  ;;  %v2255_v27 = vld [vmem:[#allocation6 + $0x60] sm:$0xff]  ;;  %v4686_v52 = vpack.c.bf16 %v2249_v45, %v2245_v44  ;;  %v2253_v56 = vld [vmem:[#allocation6 + $0x50] sm:$0xff] }
  0x93   :  { %4271 = vmatpush1.bf16.msra.mxu0 %v4270_v36  ;;  %1655 = vmatprep.mubr.f32.mxu0 %v5321_v0  ;;  %v2260_v29 = vld [vmem:[#allocation6 + $0x88] sm:$0xff]  ;;  %v4296_v31 = vpack.c.bf16 %v198_v23, %v150_v22  ;;  %v149_v32 = vld [vmem:[#allocation2 + $0x170] sm:$0xff]  ;;  %v4306_v36 = vpack.c.bf16 %v2255_v27, %v2251_v26  ;;  %v2262_v58 = vld [vmem:[#allocation6 + $0x98] sm:$0xff] }
  0x94   :  { %4277 = vmatprep.subr.bf16.mxu0 %v4276_v39  ;;  %1584 = vmatprep.mubr.f32.mxu1 %v5321_v0  ;;  %v2264_v30 = vld [vmem:[#allocation6 + $0xa8] sm:$0xff]  ;;  %v197_v33 = vld [vmem:[#allocation2 + $0x2f0] sm:$0xff]  ;;  %v2266_v59 = vld [vmem:[#allocation6 + $0xb8] sm:$0xff] }
  0x95   :  { %4273 = vmatprep.subr.bf16.mxu1 %v4272_v57  ;;  %4124 = vmatmul.mubr.msk.f32.vlgmr.msra.gmra.mrb[14].mxu1 %vm451_vm0, %v5439_v14  ;;  %v4308_v37 = vpack.c.bf16 %v2264_v30, %v2260_v29  ;;  %v2259_v38 = vld [vmem:[#allocation6 + $0x80] sm:$0xff]  ;;  %v4298_v40 = vpack.c.bf16 %v197_v33, %v149_v32  ;;  %v2268_v41 = vld [vmem:[#allocation6 + $0xc8] sm:$0xff]  ;;  %v2257_v57 = vld [vmem:[#allocation6 + $0x70] sm:$0xff]  ;;  %v4692_v1 = vpack.c.bf16 %v2266_v59, %v2262_v58 }
  0x96   :  { %4125 = vmatmul.mubr.msk.f32.vlgmr.msra.gmra.mrb[16].mxu0 %vm451_vm0, %v5439_v14  ;;  %4275 = vmatpush1.bf16.msra.mxu1 %v4274_v3  ;;  %v2263_v39 = vld [vmem:[#allocation6 + $0xa0] sm:$0xff]  ;;  %v2272_v42 = vld [vmem:[#allocation6 + $0xe8] sm:$0xff]  ;;  %v2261_v2 = vld [vmem:[#allocation6 + $0x90] sm:$0xff] }
  0x97   :  { %4279 = vmatpush1.bf16.msra.mxu0 %v4278_v48  ;;  %1797 = vmatprep.mubr.f32.mxu0 %v5321_v0  ;;  %v4310_v48 = vpack.c.bf16 %v2263_v39, %v2259_v38  ;;  %v4312_v49 = vpack.c.bf16 %v2272_v42, %v2268_v41  ;;  %v2267_v50 = vld [vmem:[#allocation6 + $0xc0] sm:$0xff]  ;;  %v2276_v53 = vld [vmem:[#allocation6 + $0x108] sm:$0xff]  ;;  %v2265_v3 = vld [vmem:[#allocation6 + $0xb0] sm:$0xff] }
  0x98   :  { %4285 = vmatprep.subr.bf16.mxu0 %v4284_v51  ;;  %1726 = vmatprep.mubr.f32.mxu1 %v5321_v0  ;;  %v2271_v51 = vld [vmem:[#allocation6 + $0xe0] sm:$0xff]  ;;  %v2280_v54 = vld [vmem:[#allocation6 + $0x128] sm:$0xff]  ;;  %v2270_v4 = vld [vmem:[#allocation6 + $0xd8] sm:$0xff]  ;;  %v4694_v7 = vpack.c.bf16 %v2265_v3, %v2261_v2 }
  0x99   :  { %4281 = vmatprep.subr.bf16.mxu1 %v4280_v6  ;;  %4126 = vmatmul.mubr.msk.f32.vlgmr.msra.gmra.mrb[16].mxu1 %vm451_vm0, %v5439_v14  ;;  %v4316_v61 = vpack.c.bf16 %v2280_v54, %v2276_v53  ;;  %v2275_v62 = vld [vmem:[#allocation6 + $0x100] sm:$0xff]  ;;  %v2274_v5 = vld [vmem:[#allocation6 + $0xf8] sm:$0xff]  ;;  %v2277_v15 = vld [vmem:[#allocation6 + $0x110] sm:$0xff]  ;;  %v211_v54 = vlaneseq }
  0x9a   :  { %4127 = vmatmul.mubr.msk.f32.vlgmr.msra.gmra.mrb[18].mxu0 %vm451_vm0, %v5439_v14  ;;  %4283 = vmatpush1.bf16.msra.mxu1 %v4282_v16  ;;  %v4696_v8 = vpack.c.bf16 %v2274_v5, %v2270_v4  ;;  %v2278_v10 = vld [vmem:[#allocation6 + $0x118] sm:$0xff]  ;;  %v2281_v16 = vld [vmem:[#allocation6 + $0x130] sm:$0xff]  ;;  %v2284_v18 = vld [vmem:[#allocation6 + $0x148] sm:$0xff] }
  0x9b   :  { %4287 = vmatpush1.bf16.msra.mxu0 %v4286_v60  ;;  %1939 = vmatprep.mubr.f32.mxu0 %v5321_v0  ;;  %v4314_v60 = vpack.c.bf16 %v2271_v51, %v2267_v50  ;;  %v2282_v11 = vld [vmem:[#allocation6 + $0x138] sm:$0xff]  ;;  %v4702_v17 = vpack.c.bf16 %v2281_v16, %v2277_v15  ;;  %v2283_v23 = vld [vmem:[#allocation6 + $0x140] sm:$0xff]  ;;  %v2285_v27 = vld [vmem:[#allocation6 + $0x150] sm:$0xff]  ;;  %v5511_v3 = vshrl.u32 %v211_v54, 7 }
  0x9c   :  { %4293 = vmatprep.subr.bf16.mxu0 %v4292_v63  ;;  %1868 = vmatprep.mubr.f32.mxu1 %v5321_v0  ;;  %v2279_v63 = vld [vmem:[#allocation6 + $0x120] sm:$0xff]  ;;  %v4700_v13 = vpack.c.bf16 %v2282_v11, %v2278_v10  ;;  %v2286_v20 = vld [vmem:[#allocation6 + $0x158] sm:$0xff]  ;;  %v2292_v30 = vld [vmem:[#allocation6 + $0x188] sm:$0xff] }
  0x9d   :  { %4289 = vmatprep.subr.bf16.mxu1 %v4288_v19  ;;  %4128 = vmatmul.mubr.msk.f32.vlgmr.msra.gmra.mrb[18].mxu1 %vm451_vm0, %v5439_v14  ;;  %v4318_v6 = vpack.c.bf16 %v2279_v63, %v2275_v62  ;;  %v2288_v19 = vld [vmem:[#allocation6 + $0x168] sm:$0xff]  ;;  %v2290_v22 = vld [vmem:[#allocation6 + $0x178] sm:$0xff]  ;;  %v2291_v35 = vld [vmem:[#allocation6 + $0x180] sm:$0xff]  ;;  %v5514_v10 = vsub.s32 4, %v5511_v3  ;;  %v5517_v16 = vsub.s32 5, %v5511_v3 }
  0x9e   :  { %4129 = vmatmul.mubr.msk.f32.vlgmr.msra.gmra.mrb[20].mxu0 %vm451_vm0, %v5439_v14  ;;  %4291 = vmatpush1.bf16.msra.mxu1 %v4290_v28  ;;  %v4320_v21 = vpack.c.bf16 %v2288_v19, %v2284_v18  ;;  %v2289_v28 = vld [vmem:[#allocation6 + $0x170] sm:$0xff]  ;;  %v2294_v32 = vld [vmem:[#allocation6 + $0x198] sm:$0xff]  ;;  %v2300_v42 = vld [vmem:[#allocation6 + $0x1c8] sm:$0xff] }
  0x9f   :  { %4295 = vmatpush1.bf16.msra.mxu0 %v4294_v9  ;;  %2081 = vmatprep.mubr.f32.mxu0 %v5321_v0  ;;  %v2273_v9 = vld [vmem:[#allocation6 + $0xf0] sm:$0xff]  ;;  %v4706_v29 = vpack.c.bf16 %v2289_v28, %v2285_v27  ;;  %v2298_v34 = vld [vmem:[#allocation6 + $0x1b8] sm:$0xff]  ;;  %v2299_v47 = vld [vmem:[#allocation6 + $0x1c0] sm:$0xff] }
  0xa0   :  { %4301 = vmatprep.subr.bf16.mxu0 %v4300_v12  ;;  %2010 = vmatprep.mubr.f32.mxu1 %v5321_v0  ;;  %v2293_v39 = vld [vmem:[#allocation6 + $0x190] sm:$0xff]  ;;  %v2302_v44 = vld [vmem:[#allocation6 + $0x1d8] sm:$0xff]  ;;  %v2316_v4 = vld [vmem:[#allocation6 + $0x248] sm:$0xff] }
  0xa1   :  { %4297 = vmatprep.subr.bf16.mxu1 %v4296_v31  ;;  %4130 = vmatmul.mubr.msk.f32.vlgmr.msra.gmra.mrb[20].mxu1 %vm451_vm0, %v5439_v14  ;;  %v2296_v31 = vld [vmem:[#allocation6 + $0x1a8] sm:$0xff]  ;;  %v2306_v46 = vld [vmem:[#allocation6 + $0x1f8] sm:$0xff]  ;;  %v2301_v51 = vld [vmem:[#allocation6 + $0x1d0] sm:$0xff] }
  0xa2   :  { %4131 = vmatmul.mubr.msk.f32.vlgmr.msra.gmra.mrb[22].mxu0 %vm451_vm0, %v5439_v14  ;;  %4299 = vmatpush1.bf16.msra.mxu1 %v4298_v40  ;;  %v4324_v33 = vpack.c.bf16 %v2296_v31, %v2292_v30  ;;  %v2297_v40 = vld [vmem:[#allocation6 + $0x1b0] sm:$0xff]  ;;  %v2314_v59 = vld [vmem:[#allocation6 + $0x238] sm:$0xff]  ;;  %v2320_v5 = vld [vmem:[#allocation6 + $0x268] sm:$0xff] }
  0xa3   :  { %4303 = vmatpush1.bf16.msra.mxu0 %v4302_v24  ;;  %2152 = vmatprep.mubr.f32.mxu1 %v5321_v0  ;;  %v4690_v0 = vpack.c.bf16 %v2257_v57, %v2253_v56  ;;  %v2287_v24 = vld [vmem:[#allocation6 + $0x160] sm:$0xff]  ;;  %v4710_v41 = vpack.c.bf16 %v2297_v40, %v2293_v39  ;;  %v2312_v56 = vld [vmem:[#allocation6 + $0x228] sm:$0xff]  ;;  %v2310_v57 = vld [vmem:[#allocation6 + $0x218] sm:$0xff] }
  0xa4   :  { %4305 = vmatprep.subr.bf16.mxu0 %v4304_v25  ;;  %4685 = vmatprep.subr.bf16.mxu1 %v4684_v43  ;;  %v4704_v25 = vpack.c.bf16 %v2290_v22, %v2286_v20  ;;  %v4322_v26 = vpack.c.bf16 %v2287_v24, %v2283_v23  ;;  %v2304_v43 = vld [vmem:[#allocation6 + $0x1e8] sm:$0xff]  ;;  %v4716_v62 = vpack.c.bf16 %v2314_v59, %v2310_v57  ;;  %v2321_v15 = vld [vmem:[#allocation6 + $0x270] sm:$0xff]  ;;  %v2326_v22 = vld [vmem:[#allocation6 + $0x298] sm:$0xff] }
  0xa5   :  { %4132 = vmatmul.mubr.msk.f32.vlgmr.msra.gmra.mrb[22].mxu1 %vm451_vm0, %v5439_v14  ;;  %v2269_v14 = vld [vmem:[#allocation6 + $0xd0] sm:$0xff]  ;;  %v4328_v45 = vpack.c.bf16 %v2304_v43, %v2300_v42  ;;  %v2324_v20 = vld [vmem:[#allocation6 + $0x288] sm:$0xff]  ;;  %v2327_v27 = vld [vmem:[#allocation6 + $0x2a0] sm:$0xff] }
  0xa6   :  { %4687 = vmatpush1.bf16.msra.mxu1 %v4686_v52  ;;  %v4698_v12 = vpack.c.bf16 %v2273_v9, %v2269_v14  ;;  %v2305_v52 = vld [vmem:[#allocation6 + $0x1f0] sm:$0xff]  ;;  %v2315_v14 = vld [vmem:[#allocation6 + $0x240] sm:$0xff] }
  0xa7   :  { %4307 = vmatpush1.bf16.msra.mxu0 %v4306_v36  ;;  %4689 = vmatprep.subr.bf16.mxu1 %v4688_v55  ;;  %v2295_v36 = vld [vmem:[#allocation6 + $0x1a0] sm:$0xff]  ;;  %v4714_v53 = vpack.c.bf16 %v2305_v52, %v2301_v51  ;;  %v2308_v55 = vld [vmem:[#allocation6 + $0x208] sm:$0xff]  ;;  %v2325_v30 = vld [vmem:[#allocation6 + $0x290] sm:$0xff] }
  0xa8   :  { %4309 = vmatprep.subr.bf16.mxu0 %v4308_v37  ;;  %v4708_v37 = vpack.c.bf16 %v2298_v34, %v2294_v32  ;;  %v4326_v38 = vpack.c.bf16 %v2295_v36, %v2291_v35  ;;  %v4332_v58 = vpack.c.bf16 %v2312_v56, %v2308_v55  ;;  %v2319_v9 = vld [vmem:[#allocation6 + $0x260] sm:$0xff]  ;;  %v2329_v31 = vld [vmem:[#allocation6 + $0x2b0] sm:$0xff]  ;;  %v2336_v34 = vld [vmem:[#allocation6 + $0x2e8] sm:$0xff] }
  0xa9   :  { %v4726_v32 = vpack.c.bf16 %v2329_v31, %v2325_v30  ;;  %v2334_v35 = vld [vmem:[#allocation6 + $0x2d8] sm:$0xff]  ;;  %v2335_v39 = vld [vmem:[#allocation6 + $0x2e0] sm:$0xff]  ;;  %v2333_v42 = vld [vmem:[#allocation6 + $0x2d0] sm:$0xff] }
  0xaa   :  { %4691 = vmatpush1.bf16.msra.mxu1 %v4690_v0  ;;  %v2309_v0 = vld [vmem:[#allocation6 + $0x210] sm:$0xff]  ;;  %v2346_v52 = vld [vmem:[#allocation6 + $0x338] sm:$0xff]  ;;  %v2343_v54 = vld [vmem:[#allocation6 + $0x320] sm:$0xff] }
  0xab   :  { %4311 = vmatpush1.bf16.msra.mxu0 %v4310_v48  ;;  %4693 = vmatprep.subr.bf16.mxu1 %v4692_v1  ;;  %v2303_v48 = vld [vmem:[#allocation6 + $0x1e0] sm:$0xff]  ;;  %v2313_v1 = vld [vmem:[#allocation6 + $0x230] sm:$0xff]  ;;  %v2370_v30 = vld [vmem:[#allocation6 + $0x3f8] sm:$0xff] }
  0xac   :  { %4313 = vmatprep.subr.bf16.mxu0 %v4312_v49  ;;  %v4712_v49 = vpack.c.bf16 %v2306_v46, %v2302_v44  ;;  %v4330_v50 = vpack.c.bf16 %v2303_v48, %v2299_v47  ;;  %v4718_v2 = vpack.c.bf16 %v2313_v1, %v2309_v0  ;;  %v2337_v43 = vld [vmem:[#allocation6 + $0x2f0] sm:$0xff]  ;;  %v5525_v44 = vld [vmem:[#allocation4 + $0x18] sm:$0xff]  ;;  %v2354_v0 = vld [vmem:[#allocation6 + $0x378] sm:$0xff] }
  0xad   :  { %v2340_v47 = vld [vmem:[#allocation6 + $0x308] sm:$0xff]  ;;  %v2341_v57 = vld [vmem:[#allocation6 + $0x310] sm:$0xff]  ;;  %v2347_v1 = vld [vmem:[#allocation6 + $0x340] sm:$0xff] }
  0xae   :  { %4695 = vmatpush1.bf16.msra.mxu1 %v4694_v7  ;;  %v4336_v7 = vpack.c.bf16 %v2320_v5, %v2316_v4  ;;  %v2344_v48 = vld [vmem:[#allocation6 + $0x328] sm:$0xff]  ;;  %v2363_v31 = vld [vmem:[#allocation6 + $0x3c0] sm:$0xff] }
  0xaf   :  { %4315 = vmatpush1.bf16.msra.mxu0 %v4314_v60  ;;  %4697 = vmatprep.subr.bf16.mxu1 %v4696_v8  ;;  %v2307_v60 = vld [vmem:[#allocation6 + $0x200] sm:$0xff]  ;;  %v2322_v8 = vld [vmem:[#allocation6 + $0x278] sm:$0xff]  ;;  %v4348_v51 = vpack.c.bf16 %v2344_v48, %v2340_v47 }
  0xb0   :  { %4317 = vmatprep.subr.bf16.mxu0 %v4316_v61  ;;  %v2311_v61 = vld [vmem:[#allocation6 + $0x220] sm:$0xff]  ;;  %v2378_v47 = vld [vmem:[#allocation6 + $0x438] sm:$0xff] }
  0xb1   :  { %v4334_v63 = vpack.c.bf16 %v2311_v61, %v2307_v60  ;;  %v2348_v60 = vld [vmem:[#allocation6 + $0x348] sm:$0xff] }
  0xb2   :  { %4699 = vmatpush1.bf16.msra.mxu1 %v4698_v12  ;;  %v4338_v12 = vpack.c.bf16 %v2319_v9, %v2315_v14  ;;  %v2352_v61 = vld [vmem:[#allocation6 + $0x368] sm:$0xff] }
  0xb3   :  { %4319 = vmatpush1.bf16.msra.mxu0 %v4318_v6  ;;  %4701 = vmatprep.subr.bf16.mxu1 %v4700_v13  ;;  %v2318_v6 = vld [vmem:[#allocation6 + $0x258] sm:$0xff]  ;;  %v2317_v13 = vld [vmem:[#allocation6 + $0x250] sm:$0xff]  ;;  %v2356_v14 = vld [vmem:[#allocation6 + $0x388] sm:$0xff] }
  0xb4   :  { %4321 = vmatprep.subr.bf16.mxu0 %v4320_v21  ;;  %v4720_v11 = vpack.c.bf16 %v2322_v8, %v2318_v6  ;;  %v4722_v18 = vpack.c.bf16 %v2321_v15, %v2317_v13  ;;  %v2328_v21 = vld [vmem:[#allocation6 + $0x2a8] sm:$0xff]  ;;  %v2349_v6 = vld [vmem:[#allocation6 + $0x350] sm:$0xff]  ;;  %v2362_v13 = vld [vmem:[#allocation6 + $0x3b8] sm:$0xff] }
  0xb5   :  { %v4340_v24 = vpack.c.bf16 %v2328_v21, %v2324_v20  ;;  %v2360_v9 = vld [vmem:[#allocation6 + $0x3a8] sm:$0xff]  ;;  %v2355_v15 = vld [vmem:[#allocation6 + $0x380] sm:$0xff] }
  0xb6   :  { %4703 = vmatpush1.bf16.msra.mxu1 %v4702_v17  ;;  %v5519_v17 = vld [vmem:[#allocation4 + $0x10] sm:$0xff] }
  0xb7   :  { %4705 = vmatprep.subr.bf16.mxu1 %v4704_v25  ;;  %4323 = vmatpush1.bf16.msra.mxu0 %v4322_v26  ;;  %v294_v19 = vrot.slane %v5519_v17, %v5514_v10  ;;  %v298_v23 = vrot.slane %v5519_v17, %v5517_v16  ;;  %v2330_v25 = vld [vmem:[#allocation6 + $0x2b8] sm:$0xff]  ;;  %v2323_v26 = vld [vmem:[#allocation6 + $0x280] sm:$0xff] }
  0xb8   :  { %4325 = vmatprep.subr.bf16.mxu0 %v4324_v33  ;;  %v4724_v28 = vpack.c.bf16 %v2330_v25, %v2326_v22  ;;  %v2332_v33 = vld [vmem:[#allocation6 + $0x2c8] sm:$0xff]  ;;  %v2357_v22 = vld [vmem:[#allocation6 + $0x390] sm:$0xff] }
  0xb9   :  { %v4344_v36 = vpack.c.bf16 %v2336_v34, %v2332_v33 }
  0xba   :  { %4707 = vmatpush1.bf16.msra.mxu1 %v4706_v29  ;;  %v4342_v29 = vpack.c.bf16 %v2327_v27, %v2323_v26  ;;  %v2364_v26 = vld [vmem:[#allocation6 + $0x3c8] sm:$0xff] }
  0xbb   :  { %4709 = vmatprep.subr.bf16.mxu1 %v4708_v37  ;;  %4327 = vmatpush1.bf16.msra.mxu0 %v4326_v38  ;;  %v2338_v37 = vld [vmem:[#allocation6 + $0x2f8] sm:$0xff]  ;;  %v2331_v38 = vld [vmem:[#allocation6 + $0x2c0] sm:$0xff]  ;;  %v2368_v27 = vld [vmem:[#allocation6 + $0x3e8] sm:$0xff] }
  0xbc   :  { %4329 = vmatprep.subr.bf16.mxu0 %v4328_v45  ;;  %v4728_v40 = vpack.c.bf16 %v2338_v37, %v2334_v35  ;;  %v4730_v45 = vpack.c.bf16 %v2337_v43, %v2333_v42  ;;  %v2365_v35 = vld [vmem:[#allocation6 + $0x3d0] sm:$0xff]  ;;  %v5531_v37 = vld [vmem:[#allocation4 + $0x28] sm:$0xff]  ;;  %v5661_v43 = vld [vmem:[#allocation6 + $0x460] sm:$0xff] }
  0xbd   :  { %v2374_v42 = vld [vmem:[#allocation6 + $0x418] sm:$0xff] }
  0xbe   :  { %4711 = vmatpush1.bf16.msra.mxu1 %v4710_v41  ;;  %v4346_v41 = vpack.c.bf16 %v2335_v39, %v2331_v38  ;;  %v4748_v48 = vpack.c.bf16 %v2378_v47, %v2374_v42  ;;  %v5663_v39 = vld [vmem:[#allocation6 + $0x450] sm:$0xff] }
  0xbf   :  { %4713 = vmatprep.subr.bf16.mxu1 %v4712_v49  ;;  %4331 = vmatpush1.bf16.msra.mxu0 %v4330_v50  ;;  %v2342_v49 = vld [vmem:[#allocation6 + $0x318] sm:$0xff]  ;;  %5958 = vst [vmem:[#allocation17_spill] sm:$0xff] %v5663_v39 }
  0xc0   :  { %4333 = vmatprep.subr.bf16.mxu0 %v4332_v58  ;;  %v4732_v55 = vpack.c.bf16 %v2346_v52, %v2342_v49  ;;  %v2345_v58 = vld [vmem:[#allocation6 + $0x330] sm:$0xff]  ;;  %v5538_v49 = vsub.s32 6, %v5511_v3 }
  0xc1   :  { %v4734_v59 = vpack.c.bf16 %v2345_v58, %v2341_v57  ;;  %v5555_v58 = vld [vmem:[#allocation4] sm:$0xff] }
  0xc2   :  { %4715 = vmatpush1.bf16.msra.mxu1 %v4714_v53  ;;  %v2339_v53 = vld [vmem:[#allocation6 + $0x300] sm:$0xff] }
  0xc3   :  { %4717 = vmatprep.subr.bf16.mxu1 %v4716_v62  ;;  %4335 = vmatpush1.bf16.msra.mxu0 %v4334_v63  ;;  %v4350_v56 = vpack.c.bf16 %v2343_v54, %v2339_v53  ;;  %v2350_v62 = vld [vmem:[#allocation6 + $0x358] sm:$0xff]  ;;  %v4352_v63 = vpack.c.bf16 %v2352_v61, %v2348_v60  ;;  %v230_v61 = vrot.slane %v5555_v58, %v5514_v10 }
  0xc4   :  { %4337 = vmatprep.subr.bf16.mxu0 %v4336_v7  ;;  %v4736_v4 = vpack.c.bf16 %v2354_v0, %v2350_v62  ;;  %v2353_v7 = vld [vmem:[#allocation6 + $0x370] sm:$0xff]  ;;  %v234_v62 = vrot.slane %v5555_v58, %v5517_v16  ;;  %v5568_v0 = vsub.s32 0, %v5511_v3 }
  0xc5   :  { %v4738_v8 = vpack.c.bf16 %v2353_v7, %v2349_v6 }
  0xc6   :  { %4719 = vmatpush1.bf16.msra.mxu1 %v4718_v2  ;;  %v2351_v2 = vld [vmem:[#allocation6 + $0x360] sm:$0xff] }
  0xc7   :  { %4721 = vmatprep.subr.bf16.mxu1 %v4720_v11  ;;  %4339 = vmatpush1.bf16.msra.mxu0 %v4338_v12  ;;  %v4354_v5 = vpack.c.bf16 %v2351_v2, %v2347_v1  ;;  %v2358_v11 = vld [vmem:[#allocation6 + $0x398] sm:$0xff]  ;;  %v4356_v12 = vpack.c.bf16 %v2360_v9, %v2356_v14  ;;  %v5571_v1 = vsub.s32 1, %v5511_v3 }
  0xc8   :  { %4341 = vmatprep.subr.bf16.mxu0 %v4340_v24  ;;  %v4740_v20 = vpack.c.bf16 %v2362_v13, %v2358_v11  ;;  %v2361_v24 = vld [vmem:[#allocation6 + $0x3b0] sm:$0xff] }
  0xc9   :  { %v4742_v25 = vpack.c.bf16 %v2361_v24, %v2357_v22  ;;  %v5598_v24 = vsub.s32 2, %v5511_v3 }
  0xca   :  { %4723 = vmatpush1.bf16.msra.mxu1 %v4722_v18  ;;  %v2359_v18 = vld [vmem:[#allocation6 + $0x3a0] sm:$0xff] }
  0xcb   :  { %4725 = vmatprep.subr.bf16.mxu1 %v4724_v28  ;;  %4343 = vmatpush1.bf16.msra.mxu0 %v4342_v29  ;;  %v4358_v21 = vpack.c.bf16 %v2359_v18, %v2355_v15  ;;  %v2366_v28 = vld [vmem:[#allocation6 + $0x3d8] sm:$0xff]  ;;  %v4360_v29 = vpack.c.bf16 %v2368_v27, %v2364_v26  ;;  %v238_v18 = vrot.slane %v5555_v58, %v5538_v49  ;;  %v5603_v27 = vld [vmem:[#allocation4 + $0x20] sm:$0xff] }
  0xcc   :  { %4345 = vmatprep.subr.bf16.mxu0 %v4344_v36  ;;  %v4744_v33 = vpack.c.bf16 %v2370_v30, %v2366_v28  ;;  %v2369_v36 = vld [vmem:[#allocation6 + $0x3f0] sm:$0xff] }
  0xcd   :  { %v4746_v38 = vpack.c.bf16 %v2369_v36, %v2365_v35  ;;  %v5619_v35 = vld [vmem:[#allocation6 + $0x410] sm:$0xff] }
  0xce   :  { %4727 = vmatpush1.bf16.msra.mxu1 %v4726_v32  ;;  %v2367_v32 = vld [vmem:[#allocation6 + $0x3e0] sm:$0xff] }
  0xcf   :  { %4729 = vmatprep.subr.bf16.mxu1 %v4728_v40  ;;  %4347 = vmatpush1.bf16.msra.mxu0 %v4346_v41  ;;  %v4362_v34 = vpack.c.bf16 %v2367_v32, %v2363_v31  ;;  %v2372_v40 = vld [vmem:[#allocation6 + $0x408] sm:$0xff]  ;;  %v214_v31 = vrot.slane %v5555_v58, %v5568_v0  ;;  %v218_v32 = vrot.slane %v5555_v58, %v5571_v1 }
  0xd0   :  { %4349 = vmatprep.subr.bf16.mxu0 %v4348_v51  ;;  %v2376_v41 = vld [vmem:[#allocation6 + $0x428] sm:$0xff]  ;;  %v5541_v51 = vsub.s32 7, %v5511_v3 }
  0xd2   :  { %4731 = vmatpush1.bf16.msra.mxu1 %v4730_v45  ;;  %v4364_v45 = vpack.c.bf16 %v2376_v41, %v2372_v40 }
  0xd3   :  { %4733 = vmatprep.subr.bf16.mxu1 %v4732_v55  ;;  %4351 = vmatpush1.bf16.msra.mxu0 %v4350_v56  ;;  %v5665_v55 = vld [vmem:[#allocation6 + $0x470] sm:$0xff] }
  0xd4   :  { %4353 = vmatprep.subr.bf16.mxu0 %v4352_v63  ;;  %v5565_v63 = vld [vmem:[#allocation4 + $0x8] sm:$0xff]  ;;  %5959 = vst [vmem:[#allocation18_spill] sm:$0xff] %v5665_v55 }
  0xd5   :  { %v246_v6 = vrot.slane %v5565_v63, %v5568_v0  ;;  %v254_v30 = vrot.slane %v5565_v63, %v5598_v24  ;;  %v270_v54 = vrot.slane %v5565_v63, %v5538_v49 }
  0xd6   :  { %4735 = vmatpush1.bf16.msra.mxu1 %v4734_v59 }
  0xd7   :  { %4737 = vmatprep.subr.bf16.mxu1 %v4736_v4  ;;  %4355 = vmatpush1.bf16.msra.mxu0 %v4354_v5 }
  0xd8   :  { %4357 = vmatprep.subr.bf16.mxu0 %v4356_v12 }
  0xda   :  { %4739 = vmatpush1.bf16.msra.mxu1 %v4738_v8  ;;  %v250_v8 = vrot.slane %v5565_v63, %v5571_v1 }
  0xdb   :  { %4741 = vmatprep.subr.bf16.mxu1 %v4740_v20  ;;  %4359 = vmatpush1.bf16.msra.mxu0 %v4358_v21  ;;  %v242_v21 = vrot.slane %v5555_v58, %v5541_v51 }
  0xdc   :  { %4361 = vmatprep.subr.bf16.mxu0 %v4360_v29 }
  0xde   :  { %4743 = vmatpush1.bf16.msra.mxu1 %v4742_v25  ;;  %v5601_v25 = vsub.s32 3, %v5511_v3  ;;  %v5617_v3 = vld [vmem:[#allocation6 + $0x420] sm:$0xff] }
  0xdf   :  { %4745 = vmatprep.subr.bf16.mxu1 %v4744_v33  ;;  %4363 = vmatpush1.bf16.msra.mxu0 %v4362_v34  ;;  %v5615_v34 = vld [vmem:[#allocation6 + $0x400] sm:$0xff] }
  0xe0   :  { %4365 = vmatprep.subr.bf16.mxu0 %v4364_v45 }
  0xe2   :  { %4747 = vmatpush1.bf16.msra.mxu1 %v4746_v38  ;;  %v258_v38 = vrot.slane %v5565_v63, %v5601_v25 }
  0xe3   :  { %4749 = vmatprep.subr.bf16.mxu1 %v4748_v48  ;;  %v5635_v48 = vld [vmem:[#allocation6 + $0x430] sm:$0xff] }
 0x149   :  { %v5557_v59 = vpop.f32.mrb[0].mxu0 }
 0x14a   :  { %v5559_v60 = vpop.f32.mrb[1].mxu0 }
 0x14c   :  { %v5585_v13 = vpop.f32.mrb[0].mxu1 }
 0x14d   :  { %v663_v2 = vpop.f32.mrb[2].mxu0  ;;  %v5587_v15 = vpop.f32.mrb[1].mxu1 }
 0x14e   :  { %v5573_v4 = vadd.f32 %v663_v2, %v230_v61  ;;  %v665_v5 = vpop.f32.mrb[3].mxu0  ;;  %v5637_v61 = vld [vmem:[#allocation6 + $0x448] sm:$0xff]  ;;  %v310_v2 = vrot.slane %v5525_v44, %v5568_v0 }
 0x14f   :  { %v5577_v7 = vadd.f32 %v665_v5, %v234_v62  ;;  %v5639_v62 = vld [vmem:[#allocation6 + $0x468] sm:$0xff]  ;;  %v314_v5 = vrot.slane %v5525_v44, %v5571_v1 }
 0x150   :  { %v734_v26 = vpop.f32.mrb[2].mxu1 }
 0x151   :  { %v805_v14 = vpop.f32.mrb[4].mxu0  ;;  %v5605_v28 = vadd.f32 %v734_v26, %v238_v18  ;;  %v736_v29 = vpop.f32.mrb[3].mxu1  ;;  %v5651_v18 = vld [vmem:[#allocation6 + $0x478] sm:$0xff]  ;;  %v226_v26 = vrot.slane %v5555_v58, %v5601_v25  ;;  %v2164_v50 = vmax.f32 %v5577_v7, 0.0 }
 0x152   :  { %v5581_v9 = vadd.f32 %v805_v14, %v246_v6  ;;  %v807_v11 = vpop.f32.mrb[5].mxu0  ;;  %v5621_v36 = vadd.f32 %v736_v29, %v242_v21  ;;  %v5653_v21 = vld [vmem:[#allocation6 + $0x440] sm:$0xff]  ;;  %v522_v6 = vadd.f32 %v5557_v59, %v214_v31  ;;  %v318_v59 = vrot.slane %v5525_v44, %v5598_v24 }
 0x153   :  { %v5583_v12 = vadd.f32 %v807_v11, %v250_v8  ;;  %v5649_v11 = vld [vmem:[#allocation6 + $0x458] sm:$0xff]  ;;  %5957 = vst [vmem:[#allocation16_spill] sm:$0xff] %v5653_v21 }
 0x154   :  { %v876_v14 = vpop.f32.mrb[4].mxu1 }
 0x155   :  { %v5591_v20 = vpop.f32.mrb[6].mxu0  ;;  %v5659_v57 = vadd.f32 %v876_v14, %v254_v30  ;;  %v878_v56 = vpop.f32.mrb[5].mxu1 }
 0x156   :  { %v5595_v22 = vpop.f32.mrb[7].mxu0  ;;  %v5675_v14 = vadd.f32 %v878_v56, %v258_v38  ;;  %v222_v38 = vrot.slane %v5555_v58, %v5598_v24 }
 0x158   :  { %v1018_v53 = vpop.f32.mrb[6].mxu1 }
 0x159   :  { %v5613_v33 = vpop.f32.mrb[8].mxu0  ;;  %v5702_v30 = vadd.f32 %v1018_v53, %v270_v54  ;;  %v5704_v42 = vpop.f32.mrb[7].mxu1  ;;  %v322_v54 = vrot.slane %v5525_v44, %v5601_v25 }
 0x15a   :  { %v5633_v47 = vpop.f32.mrb[9].mxu0 }
 0x15c   :  { %v1160_v41 = vpop.f32.mrb[8].mxu1 }
 0x15d   :  { %v1231_v8 = vpop.f32.mrb[10].mxu0  ;;  %v1162_v39 = vpop.f32.mrb[9].mxu1 }
 0x15e   :  { %v5680_v29 = vadd.f32 %v1231_v8, %v294_v19  ;;  %v1233_v45 = vpop.f32.mrb[11].mxu0  ;;  %v290_v8 = vrot.slane %v5519_v17, %v5601_v25 }
 0x15f   :  { %v5691_v56 = vadd.f32 %v1233_v45, %v298_v23  ;;  %v286_v23 = vrot.slane %v5519_v17, %v5598_v24  ;;  %v524_v45 = vadd.f32 %v5559_v60, %v218_v32 }
 0x160   :  { %v5732_v19 = vadd.f32 %v1162_v39, %v290_v8  ;;  %v5962_v39 = vrot.slane %v5525_v44, %v5517_v16  ;;  %v1302_v8 = vpop.f32.mrb[10].mxu1 }
 0x161   :  { %v1373_v52 = vpop.f32.mrb[12].mxu0  ;;  %v5727_v46 = vadd.f32 %v1160_v41, %v286_v23  ;;  %v2160_v60 = vmax.f32 %v524_v45, 0.0  ;;  %v5961_v45 = vrot.slane %v5565_v63, %v5514_v10 }
 0x162   :  { %v1374_v58 = vadd.f32 %v1373_v52, %v310_v2  ;;  %v1375_v53 = vpop.f32.mrb[13].mxu0  ;;  %v2159_v2 = vmax.f32 %v522_v6, 0.0  ;;  %v5960_v6 = vrot.slane %v5525_v44, %v5514_v10 }
 0x163   :  { %v1376_v32 = vadd.f32 %v1375_v53, %v314_v5  ;;  %v2163_v5 = vmax.f32 %v5573_v4, 0.0  ;;  %v948_v4 = vadd.f32 %v5591_v20, %v5961_v45  ;;  %v5964_v20 = vrot.slane %v5519_v17, %v5538_v49 }
 0x164   :  { %v2183_v40 = vmax.f32 %v1374_v58, 0.0  ;;  %v593_v58 = vadd.f32 %v5585_v13, %v222_v38  ;;  %v5968_v45 = vrot.slane %v5519_v17, %v5571_v1 }
 0x165   :  { %v2184_v53 = vmax.f32 %v1376_v32, 0.0  ;;  %v1515_v55 = vpop.f32.mrb[14].mxu0 }
 0x166   :  { %v5735_v21 = vmax.f32 %v2159_v2, %v2183_v40  ;;  %v1516_v41 = vadd.f32 %v1515_v55, %v5960_v6  ;;  %v1517_v23 = vpop.f32.mrb[15].mxu0  ;;  %v595_v40 = vadd.f32 %v5587_v15, %v226_v26  ;;  %v2167_v2 = vmax.f32 %v5581_v9, 0.0 }
 0x167   :  { %v5745_v32 = vmax.f32 %v2160_v60, %v2184_v53  ;;  %v1518_v7 = vadd.f32 %v1517_v23, %v5962_v39  ;;  %v5963_v55 = vrot.slane %v5565_v63, %v5517_v16  ;;  %v5759_v60 = vadd.f32 %v1302_v8, %v5964_v20  ;;  %v1304_v53 = vpop.f32.mrb[11].mxu1 }
 0x168   :  { %v2187_v38 = vmax.f32 %v1516_v41, 0.0  ;;  %v2168_v6 = vmax.f32 %v5583_v12, 0.0  ;;  %v5965_v15 = vrot.slane %v5519_v17, %v5568_v0  ;;  %v5777_v39 = vadd.f32 %v5633_v47, %v5968_v45 }
 0x169   :  { %v950_v13 = vadd.f32 %v5595_v22, %v5963_v55  ;;  %v2188_v9 = vmax.f32 %v1518_v7, 0.0  ;;  %v1657_v23 = vpop.f32.mrb[16].mxu0  ;;  %v5966_v22 = vrot.slane %v5519_v17, %v5541_v51  ;;  %v5969_v8 = vrot.slane %v5603_v27, %v5568_v0  ;;  %v1444_v17 = vpop.f32.mrb[12].mxu1 }
 0x16a   :  { %v5766_v26 = vadd.f32 %v5613_v33, %v5965_v15  ;;  %v5779_v12 = vmax.f32 %v2163_v5, %v2187_v38  ;;  %v1659_v55 = vpop.f32.mrb[17].mxu0  ;;  %v2161_v7 = vmax.f32 %v593_v58, 0.0  ;;  %v2171_v20 = vmax.f32 %v948_v4, 0.0  ;;  %v1446_v45 = vpop.f32.mrb[13].mxu1 }
 0x16b   :  { %v5771_v41 = vadd.f32 %v1304_v53, %v5966_v22  ;;  %v1658_v33 = vadd.f32 %v1657_v23, %v5969_v8  ;;  %v5784_v15 = vmax.f32 %v2164_v50, %v2188_v9  ;;  %v5970_v53 = vrot.slane %v5603_v27, %v5571_v1 }
 0x16c   :  { %v2162_v31 = vmax.f32 %v595_v40, 0.0  ;;  %v2172_v52 = vmax.f32 %v950_v13, 0.0  ;;  %v2165_v5 = vmax.f32 %v5605_v28, 0.0  ;;  %v1445_v38 = vadd.f32 %v1444_v17, %v318_v59 }
 0x16d   :  { %5967 = vst [vmem:[#allocation19_spill] sm:$0xff] %v5771_v41  ;;  %v1660_v22 = vadd.f32 %v1659_v55, %v5970_v53  ;;  %v2191_v47 = vmax.f32 %v1658_v33, 0.0  ;;  %v2175_v41 = vmax.f32 %v5766_v26, 0.0  ;;  %v1799_v8 = vpop.f32.mrb[18].mxu0  ;;  %v2166_v58 = vmax.f32 %v5621_v36, 0.0 }
 0x16e   :  { %v1447_v50 = vadd.f32 %v1446_v45, %v322_v54  ;;  %v2176_v4 = vmax.f32 %v5777_v39, 0.0  ;;  %v5971_v40 = vrot.slane %v5603_v27, %v5514_v10  ;;  %v1801_v33 = vpop.f32.mrb[19].mxu0  ;;  %v2185_v55 = vmax.f32 %v1445_v38, 0.0  ;;  %v1586_v54 = vpop.f32.mrb[14].mxu1 }
 0x16f   :  { %v2192_v23 = vmax.f32 %v1660_v22, 0.0  ;;  %v5793_v9 = vmax.f32 %v2167_v2, %v2191_v47  ;;  %v5972_v59 = vrot.slane %v5603_v27, %v5517_v16  ;;  %v2169_v53 = vmax.f32 %v5659_v57, 0.0  ;;  %v1588_v38 = vpop.f32.mrb[15].mxu1 }
 0x170   :  { %v1800_v13 = vadd.f32 %v1799_v8, %v5971_v40  ;;  %v2186_v36 = vmax.f32 %v1447_v50, 0.0  ;;  %v2170_v2 = vmax.f32 %v5675_v14, 0.0  ;;  %v5805_v39 = vmax.f32 %v2161_v7, %v2185_v55 }
 0x171   :  { %v5798_v28 = vmax.f32 %v2168_v6, %v2192_v23  ;;  %v1802_v26 = vadd.f32 %v1801_v33, %v5972_v59  ;;  %v5973_v17 = vrot.slane %v5525_v44, %v5538_v49  ;;  %v2179_v6 = vmax.f32 %v5680_v29, 0.0  ;;  %v1941_v23 = vpop.f32.mrb[20].mxu0 }
 0x172   :  { %v2195_v22 = vmax.f32 %v1800_v13, 0.0  ;;  %v5811_v8 = vmax.f32 %v2162_v31, %v2186_v36  ;;  %v5974_v57 = vrot.slane %v5525_v44, %v5541_v51  ;;  %v2180_v40 = vmax.f32 %v5691_v56, 0.0  ;;  %v1943_v33 = vpop.f32.mrb[21].mxu0  ;;  %v1728_v56 = vpop.f32.mrb[16].mxu1 }
 0x173   :  { %v1587_v47 = vadd.f32 %v1586_v54, %v5973_v17  ;;  %v2196_v45 = vmax.f32 %v1802_v26, 0.0  ;;  %v5975_v7 = vrot.slane %v5531_v37, %v5568_v0  ;;  %v5976_v29 = vrot.slane %v5531_v37, %v5571_v1 }
 0x174   :  { %v1589_v50 = vadd.f32 %v1588_v38, %v5974_v57  ;;  %v2219_v14 = vmax.f32 %v2171_v20, %v2195_v22  ;;  %v5977_v31 = vrot.slane %v5565_v63, %v5541_v51 }
 0x175   :  { %v1942_v13 = vadd.f32 %v1941_v23, %v5975_v7  ;;  %v2189_v55 = vmax.f32 %v1587_v47, 0.0  ;;  %v2220_v59 = vmax.f32 %v2172_v52, %v2196_v45  ;;  %v1944_v26 = vadd.f32 %v1943_v33, %v5976_v29  ;;  %v1730_v47 = vpop.f32.mrb[17].mxu1  ;;  %v2083_v45 = vpop.f32.mrb[22].mxu0  ;;  %v2392_v29 = vld [vmem:[#allocation6 + $0x4a8] sm:$0xff] }
 0x176   :  { %v5827_v44 = vadd.f32 %v5704_v42, %v5977_v31  ;;  %v2190_v36 = vmax.f32 %v1589_v50, 0.0  ;;  %v2231_v20 = vmax.f32 %v5735_v21, %v2219_v14  ;;  %v5978_v52 = vrot.slane %v5603_v27, %v5598_v24  ;;  %v2085_v14 = vpop.f32.mrb[23].mxu0 }
 0x177   :  { %v2199_v54 = vmax.f32 %v1942_v13, 0.0  ;;  %v5830_v22 = vmax.f32 %v2165_v5, %v2189_v55  ;;  %v2200_v38 = vmax.f32 %v1944_v26, 0.0  ;;  %v2232_v23 = vmax.f32 %v5745_v32, %v2220_v59  ;;  %v2388_v13 = vld [vmem:[#allocation6 + $0x488] sm:$0xff]  ;;  %v2394_v26 = vld [vmem:[#allocation6 + $0x4b8] sm:$0xff] }
 0x178   :  { %v1729_v17 = vadd.f32 %v1728_v56, %v5978_v52  ;;  %v5836_v63 = vmax.f32 %v2166_v58, %v2190_v36  ;;  %v5979_v42 = vrot.slane %v5603_v27, %v5601_v25  ;;  %v5980_v21 = vrot.slane %v5531_v37, %v5514_v10  ;;  %v1870_v10 = vpop.f32.mrb[18].mxu1  ;;  %v2391_v56 = vld [vmem:[#allocation6 + $0x4a0] sm:$0xff] }
 0x179   :  { %v2223_v50 = vmax.f32 %v2175_v41, %v2199_v54  ;;  %v2173_v7 = vmax.f32 %v5702_v30, 0.0  ;;  %v2224_v55 = vmax.f32 %v2176_v4, %v2200_v38  ;;  %v5981_v32 = vrot.slane %v5531_v37, %v5517_v16  ;;  %3097 = vmatprep.mubr.f32.mxu0 %v2232_v23  ;;  %3523 = vmatprep.mubr.f32.mxu1 %v2232_v23  ;;  %v2390_v41 = vld [vmem:[#allocation6 + $0x498] sm:$0xff]  ;;  %v2387_v4 = vld [vmem:[#allocation6 + $0x480] sm:$0xff] }
 0x17a   :  { %v1731_v57 = vadd.f32 %v1730_v47, %v5979_v42  ;;  %v2084_v5 = vadd.f32 %v2083_v45, %v5980_v21  ;;  %v2193_v33 = vmax.f32 %v1729_v17, 0.0  ;;  %v2174_v59 = vmax.f32 %v5827_v44, 0.0  ;;  %3098 = vmatmul.mubr.f32.vlgmr.msra.gmra.mrb[24].mxu0 %v2231_v20  ;;  %3524 = vmatmul.mubr.f32.vlgmr.msra.gmra.mrb[24].mxu1 %v2231_v20  ;;  %v1872_v44 = vpop.f32.mrb[19].mxu1 }
 0x17b   :  { %v2086_v58 = vadd.f32 %v2085_v14, %v5981_v32  ;;  %v5850_v36 = vmax.f32 %v5779_v12, %v2223_v50  ;;  %v5982_v16 = vrot.slane %v5603_v27, %v5538_v49  ;;  %v5983_v47 = vpack.c.bf16 %v5617_v3, %v5615_v34  ;;  %v2402_v14 = vld [vmem:[#allocation6 + $0x4f8] sm:$0xff] }
 0x17c   :  { %v2194_v31 = vmax.f32 %v1731_v57, 0.0  ;;  %v2203_v30 = vmax.f32 %v2084_v5, 0.0  ;;  %v5852_v54 = vmax.f32 %v2169_v53, %v2193_v33  ;;  %v5984_v12 = vpack.c.bf16 %v5635_v48, %v5619_v35  ;;  %v2389_v48 = vld [vmem:[#allocation6 + $0x490] sm:$0xff]  ;;  %v2396_v57 = vld [vmem:[#allocation6 + $0x4c8] sm:$0xff]  ;;  %v2012_v33 = vpop.f32.mrb[20].mxu1 }
 0x17d   :  { %v1871_v52 = vadd.f32 %v1870_v10, %v5982_v16  ;;  %v2204_v17 = vmax.f32 %v2086_v58, 0.0  ;;  %4367 = vmatpush1.bf16.msra.mxu0 %v5983_v47  ;;  %v5985_v53 = vrot.slane %v5603_v27, %v5541_v51  ;;  %v5869_v45 = vmax.f32 %v5784_v15, %v2224_v55  ;;  %v2400_v5 = vld [vmem:[#allocation6 + $0x4e8] sm:$0xff]  ;;  %v2398_v15 = vld [vmem:[#allocation6 + $0x4d8] sm:$0xff]  ;;  %v2014_v58 = vpop.f32.mrb[21].mxu1 }
 0x17e   :  { %4751 = vmatpush1.bf16.msra.mxu1 %v5984_v12  ;;  %v5863_v38 = vmax.f32 %v2170_v2, %v2194_v31  ;;  %v2227_v23 = vmax.f32 %v2179_v6, %v2203_v30  ;;  %v5986_v42 = vpack.c.bf16 %v5639_v62, %v5637_v61  ;;  %v5987_v34 = vpack.c.bf16 %v5651_v18, %v5649_v11  ;;  %v2393_v2 = vld [vmem:[#allocation6 + $0x4b0] sm:$0xff]  ;;  %v2395_v11 = vld [vmem:[#allocation6 + $0x4c0] sm:$0xff] }
 0x17f   :  { %v1873_v20 = vadd.f32 %v1872_v44, %v5985_v53  ;;  %v4372_v3 = vpack.c.bf16 %v2392_v29, %v2388_v13  ;;  %v4756_v35 = vpack.c.bf16 %v2394_v26, %v2390_v41  ;;  %v2197_v50 = vmax.f32 %v1871_v52, 0.0  ;;  %v2399_v18 = vld [vmem:[#allocation6 + $0x4e0] sm:$0xff]  ;;  %v5991_v41 = vld [vmem:[#allocation18_spill] sm:$0xff]  ;;  %v5992_v26 = vld [vmem:[#allocation17_spill] sm:$0xff] }
 0x180   :  { %4369 = vmatprep.subr.bf16.mxu0 %v5986_v42  ;;  %4753 = vmatprep.subr.bf16.mxu1 %v5987_v34  ;;  %v2228_v27 = vmax.f32 %v2180_v40, %v2204_v17  ;;  %v4374_v21 = vpack.c.bf16 %v2391_v56, %v2387_v4  ;;  %v5878_v61 = vmax.f32 %v5793_v9, %v2227_v23  ;;  %v2177_v62 = vmax.f32 %v5727_v46, 0.0  ;;  %v5989_v40 = vld [vmem:[#allocation16_spill] sm:$0xff]  ;;  %v2397_v46 = vld [vmem:[#allocation6 + $0x4d0] sm:$0xff]  ;;  %v2410_v53 = vld [vmem:[#allocation6 + $0x538] sm:$0xff]  ;;  %v2154_v23 = vpop.f32.mrb[22].mxu1 }
 0x181   :  { %v2198_v6 = vmax.f32 %v1873_v20, 0.0  ;;  %v2221_v13 = vmax.f32 %v2173_v7, %v2197_v50  ;;  %v5988_v55 = vrot.slane %v5531_v37, %v5598_v24  ;;  %v5990_v29 = vpack.c.bf16 %v5661_v43, %v5989_v40  ;;  %v2401_v30 = vld [vmem:[#allocation6 + $0x4f0] sm:$0xff]  ;;  %v2404_v43 = vld [vmem:[#allocation6 + $0x508] sm:$0xff] }
 0x182   :  { %v5993_v31 = vpack.c.bf16 %v5991_v41, %v5992_v26  ;;  %v2178_v9 = vmax.f32 %v5732_v19, 0.0  ;;  %v4758_v10 = vpack.c.bf16 %v2393_v2, %v2389_v48  ;;  %v5994_v7 = vrot.slane %v5531_v37, %v5601_v25  ;;  %v2408_v44 = vld [vmem:[#allocation6 + $0x528] sm:$0xff]  ;;  %v2406_v19 = vld [vmem:[#allocation6 + $0x518] sm:$0xff]  ;;  %v2156_v2 = vpop.f32.mrb[23].mxu1  ;;  %v2415_v41 = vld [vmem:[#allocation6 + $0x560] sm:$0xff] }
 0x183   :  { %v2013_v32 = vadd.f32 %v2012_v33, %v5988_v55  ;;  %4371 = vmatpush1.bf16.msra.mxu0 %v5990_v29  ;;  %v2222_v4 = vmax.f32 %v2174_v59, %v2198_v6  ;;  %v4376_v16 = vpack.c.bf16 %v2400_v5, %v2396_v57  ;;  %v4760_v52 = vpack.c.bf16 %v2402_v14, %v2398_v15  ;;  %v2403_v5 = vld [vmem:[#allocation6 + $0x500] sm:$0xff]  ;;  %v2405_v33 = vld [vmem:[#allocation6 + $0x510] sm:$0xff]  ;;  %v2414_v55 = vld [vmem:[#allocation6 + $0x558] sm:$0xff] }
 0x184   :  { %4755 = vmatpush1.bf16.msra.mxu1 %v5993_v31  ;;  %v2015_v56 = vadd.f32 %v2014_v58, %v5994_v7  ;;  %4373 = vmatprep.subr.bf16.mxu0 %v4372_v3  ;;  %v5895_v17 = vmax.f32 %v5805_v39, %v2221_v13  ;;  %v4378_v12 = vpack.c.bf16 %v2399_v18, %v2395_v11  ;;  %v2181_v42 = vmax.f32 %v5759_v60, 0.0  ;;  %v5996_v39 = vld [vmem:[#allocation19_spill] sm:$0xff]  ;;  %v2416_v13 = vld [vmem:[#allocation6 + $0x568] sm:$0xff]  ;;  %v2413_v31 = vld [vmem:[#allocation6 + $0x550] sm:$0xff] }
 0x185   :  { %4757 = vmatprep.subr.bf16.mxu1 %v4756_v35  ;;  %v2201_v47 = vmax.f32 %v2013_v32, 0.0  ;;  %v2234_v59 = vmax.f32 %v5811_v8, %v2222_v4  ;;  %v4762_v34 = vpack.c.bf16 %v2401_v30, %v2397_v46  ;;  %v5995_v35 = vrot.slane %v5531_v37, %v5538_v49  ;;  %v2407_v15 = vld [vmem:[#allocation6 + $0x520] sm:$0xff]  ;;  %v2412_v49 = vld [vmem:[#allocation6 + $0x548] sm:$0xff]  ;;  %v2418_v32 = vld [vmem:[#allocation6 + $0x578] sm:$0xff] }
 0x186   :  { %v2202_v20 = vmax.f32 %v2015_v56, 0.0  ;;  %v2182_v57 = vmax.f32 %v5996_v39, 0.0  ;;  %v4380_v50 = vpack.c.bf16 %v2408_v44, %v2404_v43  ;;  %v5997_v8 = vrot.slane %v5531_v37, %v5541_v51  ;;  %v2422_v30 = vld [vmem:[#allocation6 + $0x598] sm:$0xff]  ;;  %v2423_v43 = vld [vmem:[#allocation6 + $0x5a0] sm:$0xff]  ;;  %v2436_v39 = vld [vmem:[#allocation6 + $0x608] sm:$0xff] }
 0x187   :  { %v2225_v3 = vmax.f32 %v2177_v62, %v2201_v47  ;;  %v2155_v48 = vadd.f32 %v2154_v23, %v5995_v35  ;;  %4375 = vmatpush1.bf16.msra.mxu0 %v4374_v21  ;;  %v4764_v60 = vpack.c.bf16 %v2410_v53, %v2406_v19  ;;  %v2409_v62 = vld [vmem:[#allocation6 + $0x530] sm:$0xff]  ;;  %v5910_v18 = vmax.f32 %v5798_v28, %v2228_v27  ;;  %v2426_v4 = vld [vmem:[#allocation6 + $0x5b8] sm:$0xff]  ;;  %v2432_v53 = vld [vmem:[#allocation6 + $0x5e8] sm:$0xff] }
 0x188   :  { %4759 = vmatpush1.bf16.msra.mxu1 %v4758_v10  ;;  %v2226_v14 = vmax.f32 %v2178_v9, %v2202_v20  ;;  %v2157_v6 = vadd.f32 %v2156_v2, %v5997_v8  ;;  %4377 = vmatprep.subr.bf16.mxu0 %v4376_v16  ;;  %v4382_v40 = vpack.c.bf16 %v2407_v15, %v2403_v5  ;;  %v2417_v9 = vld [vmem:[#allocation6 + $0x570] sm:$0xff]  ;;  %v2420_v10 = vld [vmem:[#allocation6 + $0x588] sm:$0xff]  ;;  %v2430_v20 = vld [vmem:[#allocation6 + $0x5d8] sm:$0xff] }
 0x189   :  { %4761 = vmatprep.subr.bf16.mxu1 %v4760_v52  ;;  %v5907_v11 = vmax.f32 %v5830_v22, %v2225_v3  ;;  %v2205_v21 = vmax.f32 %v2155_v48, 0.0  ;;  %3168 = vmatprep.mubr.f32.mxu0 %v2234_v59  ;;  %v4766_v29 = vpack.c.bf16 %v2409_v62, %v2405_v33  ;;  %v2411_v22 = vld [vmem:[#allocation6 + $0x540] sm:$0xff]  ;;  %v4384_v28 = vpack.c.bf16 %v2416_v13, %v2412_v49  ;;  %v2425_v19 = vld [vmem:[#allocation6 + $0x5b0] sm:$0xff]  ;;  %v2434_v23 = vld [vmem:[#allocation6 + $0x5f8] sm:$0xff] }
 0x18a   :  { %v2206_v58 = vmax.f32 %v2157_v6, 0.0  ;;  %3594 = vmatprep.mubr.f32.mxu1 %v2234_v59  ;;  %v5913_v37 = vmax.f32 %v5836_v63, %v2226_v14  ;;  %v4768_v27 = vpack.c.bf16 %v2418_v32, %v2414_v55  ;;  %v2424_v63 = vld [vmem:[#allocation6 + $0x5a8] sm:$0xff]  ;;  %v4386_v56 = vpack.c.bf16 %v2415_v41, %v2411_v22  ;;  %v2419_v52 = vld [vmem:[#allocation6 + $0x580] sm:$0xff]  ;;  %v2429_v48 = vld [vmem:[#allocation6 + $0x5d0] sm:$0xff] }
 0x18b   :  { %v2229_v51 = vmax.f32 %v2181_v42, %v2205_v21  ;;  %4379 = vmatpush1.bf16.msra.mxu0 %v4378_v12  ;;  %v4770_v16 = vpack.c.bf16 %v2417_v9, %v2413_v31  ;;  %v4388_v44 = vpack.c.bf16 %v2424_v63, %v2420_v10  ;;  %v4772_v47 = vpack.c.bf16 %v2426_v4, %v2422_v30  ;;  %v2421_v12 = vld [vmem:[#allocation6 + $0x590] sm:$0xff]  ;;  %v2427_v42 = vld [vmem:[#allocation6 + $0x5c0] sm:$0xff]  ;;  %v2442_v5 = vld [vmem:[#allocation6 + $0x638] sm:$0xff] }
 0x18c   :  { %4763 = vmatpush1.bf16.msra.mxu1 %v4762_v34  ;;  %v2230_v26 = vmax.f32 %v2182_v57, %v2206_v58  ;;  %4381 = vmatprep.subr.bf16.mxu0 %v4380_v50  ;;  %v4774_v59 = vpack.c.bf16 %v2425_v19, %v2421_v12  ;;  %v2431_v34 = vld [vmem:[#allocation6 + $0x5e0] sm:$0xff]  ;;  %v4776_v35 = vpack.c.bf16 %v2434_v23, %v2430_v20  ;;  %v2433_v2 = vld [vmem:[#allocation6 + $0x5f0] sm:$0xff]  ;;  %v2440_v57 = vld [vmem:[#allocation6 + $0x628] sm:$0xff] }
 0x18d   :  { %4765 = vmatprep.subr.bf16.mxu1 %v4764_v60  ;;  %v5916_v46 = vmax.f32 %v5852_v54, %v2229_v51  ;;  %v2428_v54 = vld [vmem:[#allocation6 + $0x5c8] sm:$0xff]  ;;  %v2438_v50 = vld [vmem:[#allocation6 + $0x618] sm:$0xff]  ;;  %v4394_v15 = vpack.c.bf16 %v2431_v34, %v2427_v42  ;;  %v4778_v14 = vpack.c.bf16 %v2433_v2, %v2429_v48  ;;  %v2435_v8 = vld [vmem:[#allocation6 + $0x600] sm:$0xff]  ;;  %v4396_v60 = vpack.c.bf16 %v2440_v57, %v2436_v39 }
 0x18e   :  { %v5919_v7 = vmax.f32 %v5863_v38, %v2230_v26  ;;  %v4390_v38 = vpack.c.bf16 %v2423_v43, %v2419_v52  ;;  %v4392_v3 = vpack.c.bf16 %v2432_v53, %v2428_v54  ;;  %v2439_v6 = vld [vmem:[#allocation6 + $0x620] sm:$0xff]  ;;  %v4780_v33 = vpack.c.bf16 %v2442_v5, %v2438_v50  ;;  %v2437_v62 = vld [vmem:[#allocation6 + $0x610] sm:$0xff]  ;;  %v2444_v21 = vld [vmem:[#allocation6 + $0x648] sm:$0xff] }
 0x18f   :  { %4383 = vmatpush1.bf16.msra.mxu0 %v4382_v40  ;;  %v2441_v49 = vld [vmem:[#allocation6 + $0x630] sm:$0xff]  ;;  %v2448_v13 = vld [vmem:[#allocation6 + $0x668] sm:$0xff]  ;;  %v2446_v55 = vld [vmem:[#allocation6 + $0x658] sm:$0xff]  ;;  %v4398_v58 = vpack.c.bf16 %v2439_v6, %v2435_v8 }
 0x190   :  { %4767 = vmatpush1.bf16.msra.mxu1 %v4766_v29  ;;  %4385 = vmatprep.subr.bf16.mxu0 %v4384_v28  ;;  %v2450_v32 = vld [vmem:[#allocation6 + $0x678] sm:$0xff]  ;;  %v4782_v51 = vpack.c.bf16 %v2441_v49, %v2437_v62  ;;  %v2443_v40 = vld [vmem:[#allocation6 + $0x640] sm:$0xff]  ;;  %v4400_v22 = vpack.c.bf16 %v2448_v13, %v2444_v21  ;;  %v2445_v26 = vld [vmem:[#allocation6 + $0x650] sm:$0xff] }
 0x191   :  { %4769 = vmatprep.subr.bf16.mxu1 %v4768_v27  ;;  %v2447_v29 = vld [vmem:[#allocation6 + $0x660] sm:$0xff]  ;;  %v4784_v41 = vpack.c.bf16 %v2450_v32, %v2446_v55  ;;  %v2449_v28 = vld [vmem:[#allocation6 + $0x670] sm:$0xff]  ;;  %v2452_v27 = vld [vmem:[#allocation6 + $0x688] sm:$0xff] }
 0x192   :  { %v2456_v31 = vld [vmem:[#allocation6 + $0x6a8] sm:$0xff]  ;;  %v2454_v9 = vld [vmem:[#allocation6 + $0x698] sm:$0xff]  ;;  %v4402_v63 = vpack.c.bf16 %v2447_v29, %v2443_v40  ;;  %v4786_v30 = vpack.c.bf16 %v2449_v28, %v2445_v26  ;;  %v2451_v4 = vld [vmem:[#allocation6 + $0x680] sm:$0xff] }
 0x193   :  { %4387 = vmatpush1.bf16.msra.mxu0 %v4386_v56  ;;  %v2458_v10 = vld [vmem:[#allocation6 + $0x6b8] sm:$0xff]  ;;  %v2455_v56 = vld [vmem:[#allocation6 + $0x6a0] sm:$0xff]  ;;  %v2453_v43 = vld [vmem:[#allocation6 + $0x690] sm:$0xff] }
 0x194   :  { %4771 = vmatpush1.bf16.msra.mxu1 %v4770_v16  ;;  %4389 = vmatprep.subr.bf16.mxu0 %v4388_v44  ;;  %v4404_v16 = vpack.c.bf16 %v2456_v31, %v2452_v27  ;;  %v4788_v52 = vpack.c.bf16 %v2458_v10, %v2454_v9  ;;  %v2457_v44 = vld [vmem:[#allocation6 + $0x6b0] sm:$0xff]  ;;  %v2464_v12 = vld [vmem:[#allocation6 + $0x6e8] sm:$0xff]  ;;  %v2462_v19 = vld [vmem:[#allocation6 + $0x6d8] sm:$0xff]  ;;  %v4406_v53 = vpack.c.bf16 %v2455_v56, %v2451_v4 }
 0x195   :  { %4773 = vmatprep.subr.bf16.mxu1 %v4772_v47  ;;  %v2460_v47 = vld [vmem:[#allocation6 + $0x6c8] sm:$0xff]  ;;  %v2466_v54 = vld [vmem:[#allocation6 + $0x6f8] sm:$0xff]  ;;  %v4790_v20 = vpack.c.bf16 %v2457_v44, %v2453_v43  ;;  %v2459_v23 = vld [vmem:[#allocation6 + $0x6c0] sm:$0xff] }
 0x196   :  { %v4792_v42 = vpack.c.bf16 %v2466_v54, %v2462_v19  ;;  %v2461_v34 = vld [vmem:[#allocation6 + $0x6d0] sm:$0xff]  ;;  %v2472_v48 = vld [vmem:[#allocation6 + $0x728] sm:$0xff]  ;;  %v2470_v2 = vld [vmem:[#allocation6 + $0x718] sm:$0xff] }
 0x197   :  { %4391 = vmatpush1.bf16.msra.mxu0 %v4390_v38  ;;  %v2463_v38 = vld [vmem:[#allocation6 + $0x6e0] sm:$0xff]  ;;  %v2474_v39 = vld [vmem:[#allocation6 + $0x738] sm:$0xff]  ;;  %v2469_v6 = vld [vmem:[#allocation6 + $0x710] sm:$0xff] }
 0x198   :  { %4775 = vmatpush1.bf16.msra.mxu1 %v4774_v59  ;;  %4393 = vmatprep.subr.bf16.mxu0 %v4392_v3  ;;  %v4408_v59 = vpack.c.bf16 %v2464_v12, %v2460_v47  ;;  %v2465_v3 = vld [vmem:[#allocation6 + $0x6f0] sm:$0xff]  ;;  %v4410_v57 = vpack.c.bf16 %v2463_v38, %v2459_v23  ;;  %v2467_v5 = vld [vmem:[#allocation6 + $0x700] sm:$0xff]  ;;  %v4796_v8 = vpack.c.bf16 %v2474_v39, %v2470_v2  ;;  %v2480_v62 = vld [vmem:[#allocation6 + $0x768] sm:$0xff] }
 0x199   :  { %4777 = vmatprep.subr.bf16.mxu1 %v4776_v35  ;;  %v2468_v35 = vld [vmem:[#allocation6 + $0x708] sm:$0xff]  ;;  %v4794_v50 = vpack.c.bf16 %v2465_v3, %v2461_v34  ;;  %v2478_v49 = vld [vmem:[#allocation6 + $0x758] sm:$0xff]  ;;  %v2475_v32 = vld [vmem:[#allocation6 + $0x740] sm:$0xff] }
 0x19a   :  { %v2482_v21 = vld [vmem:[#allocation6 + $0x778] sm:$0xff]  ;;  %v2477_v29 = vld [vmem:[#allocation6 + $0x750] sm:$0xff]  ;;  %v2488_v26 = vld [vmem:[#allocation6 + $0x7a8] sm:$0xff] }
 0x19b   :  { %4395 = vmatpush1.bf16.msra.mxu0 %v4394_v15  ;;  %v2471_v15 = vld [vmem:[#allocation6 + $0x720] sm:$0xff]  ;;  %v4800_v40 = vpack.c.bf16 %v2482_v21, %v2478_v49  ;;  %v2486_v28 = vld [vmem:[#allocation6 + $0x798] sm:$0xff]  ;;  %v2485_v56 = vld [vmem:[#allocation6 + $0x790] sm:$0xff] }
 0x19c   :  { %4779 = vmatpush1.bf16.msra.mxu1 %v4778_v14  ;;  %4397 = vmatprep.subr.bf16.mxu0 %v4396_v60  ;;  %v4412_v14 = vpack.c.bf16 %v2472_v48, %v2468_v35  ;;  %v2473_v60 = vld [vmem:[#allocation6 + $0x730] sm:$0xff]  ;;  %v4414_v13 = vpack.c.bf16 %v2471_v15, %v2467_v5  ;;  %v2490_v27 = vld [vmem:[#allocation6 + $0x7b8] sm:$0xff]  ;;  %v2483_v10 = vld [vmem:[#allocation6 + $0x780] sm:$0xff] }
 0x19d   :  { %4781 = vmatprep.subr.bf16.mxu1 %v4780_v33  ;;  %v2476_v33 = vld [vmem:[#allocation6 + $0x748] sm:$0xff]  ;;  %v4798_v55 = vpack.c.bf16 %v2473_v60, %v2469_v6  ;;  %v4804_v4 = vpack.c.bf16 %v2490_v27, %v2486_v28  ;;  %v2494_v44 = vld [vmem:[#allocation6 + $0x7d8] sm:$0xff]  ;;  %v2491_v54 = vld [vmem:[#allocation6 + $0x7c0] sm:$0xff] }
 0x19e   :  { %v2496_v43 = vld [vmem:[#allocation6 + $0x7e8] sm:$0xff]  ;;  %v2498_v47 = vld [vmem:[#allocation6 + $0x7f8] sm:$0xff]  ;;  %v2493_v38 = vld [vmem:[#allocation6 + $0x7d0] sm:$0xff] }
 0x19f   :  { %4399 = vmatpush1.bf16.msra.mxu0 %v4398_v58  ;;  %v2479_v58 = vld [vmem:[#allocation6 + $0x760] sm:$0xff]  ;;  %v4808_v23 = vpack.c.bf16 %v2498_v47, %v2494_v44  ;;  %v2504_v34 = vld [vmem:[#allocation6 + $0x828] sm:$0xff]  ;;  %v2502_v3 = vld [vmem:[#allocation6 + $0x818] sm:$0xff] }
 0x1a0   :  { %4783 = vmatpush1.bf16.msra.mxu1 %v4782_v51  ;;  %4401 = vmatprep.subr.bf16.mxu0 %v4400_v22  ;;  %v4416_v51 = vpack.c.bf16 %v2480_v62, %v2476_v33  ;;  %v2481_v22 = vld [vmem:[#allocation6 + $0x770] sm:$0xff]  ;;  %v4418_v31 = vpack.c.bf16 %v2479_v58, %v2475_v32  ;;  %v2506_v35 = vld [vmem:[#allocation6 + $0x838] sm:$0xff]  ;;  %v2503_v5 = vld [vmem:[#allocation6 + $0x820] sm:$0xff] }
 0x1a1   :  { %4785 = vmatprep.subr.bf16.mxu1 %v4784_v41  ;;  %v2484_v41 = vld [vmem:[#allocation6 + $0x788] sm:$0xff]  ;;  %v4802_v9 = vpack.c.bf16 %v2481_v22, %v2477_v29  ;;  %v2501_v15 = vld [vmem:[#allocation6 + $0x810] sm:$0xff]  ;;  %v2510_v60 = vld [vmem:[#allocation6 + $0x858] sm:$0xff] }
 0x1a2   :  { %v2512_v6 = vld [vmem:[#allocation6 + $0x868] sm:$0xff]  ;;  %v2514_v33 = vld [vmem:[#allocation6 + $0x878] sm:$0xff]  ;;  %v2507_v21 = vld [vmem:[#allocation6 + $0x840] sm:$0xff] }
 0x1a3   :  { %4403 = vmatpush1.bf16.msra.mxu0 %v4402_v63  ;;  %v2487_v63 = vld [vmem:[#allocation6 + $0x7a0] sm:$0xff]  ;;  %v4816_v58 = vpack.c.bf16 %v2514_v33, %v2510_v60  ;;  %v2520_v29 = vld [vmem:[#allocation6 + $0x8a8] sm:$0xff]  ;;  %v2518_v22 = vld [vmem:[#allocation6 + $0x898] sm:$0xff] }
 0x1a4   :  { %4787 = vmatpush1.bf16.msra.mxu1 %v4786_v30  ;;  %4405 = vmatprep.subr.bf16.mxu0 %v4404_v16  ;;  %v4420_v30 = vpack.c.bf16 %v2488_v26, %v2484_v41  ;;  %v2489_v16 = vld [vmem:[#allocation6 + $0x7b0] sm:$0xff]  ;;  %v4422_v12 = vpack.c.bf16 %v2487_v63, %v2483_v10  ;;  %v2522_v41 = vld [vmem:[#allocation6 + $0x8b8] sm:$0xff]  ;;  %v2527_v47 = vld [vmem:[#allocation6 + $0x8e0] sm:$0xff] }
 0x1a5   :  { %4789 = vmatprep.subr.bf16.mxu1 %v4788_v52  ;;  %v2492_v52 = vld [vmem:[#allocation6 + $0x7c8] sm:$0xff]  ;;  %v4806_v19 = vpack.c.bf16 %v2489_v16, %v2485_v56  ;;  %v2517_v10 = vld [vmem:[#allocation6 + $0x890] sm:$0xff]  ;;  %v4820_v63 = vpack.c.bf16 %v2522_v41, %v2518_v22  ;;  %v2526_v56 = vld [vmem:[#allocation6 + $0x8d8] sm:$0xff] }
 0x1a6   :  { %v2530_v16 = vld [vmem:[#allocation6 + $0x8f8] sm:$0xff]  ;;  %v2539_v60 = vld [vmem:[#allocation6 + $0x940] sm:$0xff] }
 0x1a7   :  { %4407 = vmatpush1.bf16.msra.mxu0 %v4406_v53  ;;  %v2495_v53 = vld [vmem:[#allocation6 + $0x7e0] sm:$0xff] }
 0x1a8   :  { %4791 = vmatpush1.bf16.msra.mxu1 %v4790_v20  ;;  %4409 = vmatprep.subr.bf16.mxu0 %v4408_v59  ;;  %v4424_v20 = vpack.c.bf16 %v2496_v43, %v2492_v52  ;;  %v2497_v59 = vld [vmem:[#allocation6 + $0x7f0] sm:$0xff]  ;;  %v4426_v48 = vpack.c.bf16 %v2495_v53, %v2491_v54  ;;  %v2532_v53 = vld [vmem:[#allocation6 + $0x908] sm:$0xff]  ;;  %v2543_v33 = vld [vmem:[#allocation6 + $0x960] sm:$0xff] }
 0x1a9   :  { %4793 = vmatprep.subr.bf16.mxu1 %v4792_v42  ;;  %v2500_v42 = vld [vmem:[#allocation6 + $0x808] sm:$0xff]  ;;  %v4810_v2 = vpack.c.bf16 %v2497_v59, %v2493_v38  ;;  %v2529_v54 = vld [vmem:[#allocation6 + $0x8f0] sm:$0xff]  ;;  %v2538_v38 = vld [vmem:[#allocation6 + $0x938] sm:$0xff] }
 0x1aa   :  { %v4428_v39 = vpack.c.bf16 %v2504_v34, %v2500_v42  ;;  %v2547_v22 = vld [vmem:[#allocation6 + $0x980] sm:$0xff] }
 0x1ab   :  { %4411 = vmatpush1.bf16.msra.mxu0 %v4410_v57  ;;  %v4812_v57 = vpack.c.bf16 %v2506_v35, %v2502_v3  ;;  %v2531_v3 = vld [vmem:[#allocation6 + $0x900] sm:$0xff] }
 0x1ac   :  { %4795 = vmatpush1.bf16.msra.mxu1 %v4794_v50  ;;  %4413 = vmatprep.subr.bf16.mxu0 %v4412_v14  ;;  %v2499_v50 = vld [vmem:[#allocation6 + $0x800] sm:$0xff]  ;;  %v2505_v14 = vld [vmem:[#allocation6 + $0x830] sm:$0xff] }
 0x1ad   :  { %4797 = vmatprep.subr.bf16.mxu1 %v4796_v8  ;;  %v2508_v8 = vld [vmem:[#allocation6 + $0x848] sm:$0xff]  ;;  %v4430_v62 = vpack.c.bf16 %v2503_v5, %v2499_v50  ;;  %v4814_v49 = vpack.c.bf16 %v2505_v14, %v2501_v15  ;;  %v2535_v35 = vld [vmem:[#allocation6 + $0x920] sm:$0xff]  ;;  %v2542_v5 = vld [vmem:[#allocation6 + $0x958] sm:$0xff] }
 0x1ae   :  { %v4432_v32 = vpack.c.bf16 %v2512_v6, %v2508_v8  ;;  %v2544_v50 = vld [vmem:[#allocation6 + $0x968] sm:$0xff]  ;;  %v2546_v15 = vld [vmem:[#allocation6 + $0x978] sm:$0xff]  ;;  %v4446_v14 = vpack.c.bf16 %v2535_v35, %v2531_v3  ;;  %v2551_v41 = vld [vmem:[#allocation6 + $0x9a0] sm:$0xff] }
 0x1af   :  { %4415 = vmatpush1.bf16.msra.mxu0 %v4414_v13  ;;  %v2511_v13 = vld [vmem:[#allocation6 + $0x860] sm:$0xff]  ;;  %v2572_v3 = vld [vmem:[#allocation6 + $0xa48] sm:$0xff] }
 0x1b0   :  { %4799 = vmatpush1.bf16.msra.mxu1 %v4798_v55  ;;  %4417 = vmatprep.subr.bf16.mxu0 %v4416_v51  ;;  %v2509_v55 = vld [vmem:[#allocation6 + $0x850] sm:$0xff]  ;;  %v4434_v26 = vpack.c.bf16 %v2511_v13, %v2507_v21  ;;  %v2548_v13 = vld [vmem:[#allocation6 + $0x988] sm:$0xff] }
 0x1b1   :  { %4801 = vmatprep.subr.bf16.mxu1 %v4800_v40  ;;  %v2513_v51 = vld [vmem:[#allocation6 + $0x870] sm:$0xff]  ;;  %v2516_v40 = vld [vmem:[#allocation6 + $0x888] sm:$0xff] }
 0x1b2   :  { %v4818_v28 = vpack.c.bf16 %v2513_v51, %v2509_v55  ;;  %v4436_v27 = vpack.c.bf16 %v2520_v29, %v2516_v40  ;;  %v2545_v21 = vld [vmem:[#allocation6 + $0x970] sm:$0xff]  ;;  %v2552_v55 = vld [vmem:[#allocation6 + $0x9a8] sm:$0xff]  ;;  %v4450_v51 = vpack.c.bf16 %v2543_v33, %v2539_v60 }
 0x1b3   :  { %4419 = vmatpush1.bf16.msra.mxu0 %v4418_v31  ;;  %v2515_v31 = vld [vmem:[#allocation6 + $0x880] sm:$0xff]  ;;  %v4452_v29 = vpack.c.bf16 %v2552_v55, %v2548_v13  ;;  %v2576_v35 = vld [vmem:[#allocation6 + $0xa68] sm:$0xff] }
 0x1b4   :  { %4803 = vmatpush1.bf16.msra.mxu1 %v4802_v9  ;;  %4421 = vmatprep.subr.bf16.mxu0 %v4420_v30  ;;  %v2519_v9 = vld [vmem:[#allocation6 + $0x8a0] sm:$0xff]  ;;  %v2521_v30 = vld [vmem:[#allocation6 + $0x8b0] sm:$0xff]  ;;  %v2580_v60 = vld [vmem:[#allocation6 + $0xa88] sm:$0xff] }
 0x1b5   :  { %4805 = vmatprep.subr.bf16.mxu1 %v4804_v4  ;;  %v2524_v4 = vld [vmem:[#allocation6 + $0x8c8] sm:$0xff]  ;;  %v4438_v52 = vpack.c.bf16 %v2519_v9, %v2515_v31  ;;  %v4822_v43 = vpack.c.bf16 %v2521_v30, %v2517_v10  ;;  %v2558_v10 = vld [vmem:[#allocation6 + $0x9d8] sm:$0xff]  ;;  %v4454_v30 = vpack.c.bf16 %v2551_v41, %v2547_v22 }
 0x1b6   :  { %v2556_v31 = vld [vmem:[#allocation6 + $0x9c8] sm:$0xff] }
 0x1b7   :  { %4423 = vmatpush1.bf16.msra.mxu0 %v4422_v12  ;;  %v2525_v12 = vld [vmem:[#allocation6 + $0x8d0] sm:$0xff]  ;;  %v2560_v9 = vld [vmem:[#allocation6 + $0x9e8] sm:$0xff] }
 0x1b8   :  { %4807 = vmatpush1.bf16.msra.mxu1 %v4806_v19  ;;  %4425 = vmatprep.subr.bf16.mxu0 %v4424_v20  ;;  %v4824_v19 = vpack.c.bf16 %v2530_v16, %v2526_v56  ;;  %v2536_v20 = vld [vmem:[#allocation6 + $0x928] sm:$0xff]  ;;  %v4826_v42 = vpack.c.bf16 %v2529_v54, %v2525_v12  ;;  %v2555_v56 = vld [vmem:[#allocation6 + $0x9c0] sm:$0xff]  ;;  %v2566_v12 = vld [vmem:[#allocation6 + $0xa18] sm:$0xff] }
 0x1b9   :  { %4809 = vmatprep.subr.bf16.mxu1 %v4808_v23  ;;  %v2534_v23 = vld [vmem:[#allocation6 + $0x918] sm:$0xff]  ;;  %v4444_v34 = vpack.c.bf16 %v2536_v20, %v2532_v53  ;;  %v2559_v16 = vld [vmem:[#allocation6 + $0x9e0] sm:$0xff]  ;;  %v2584_v33 = vld [vmem:[#allocation6 + $0xaa8] sm:$0xff] }
 0x1ba   :  { %v4458_v54 = vpack.c.bf16 %v2559_v16, %v2555_v56  ;;  %v4468_v55 = vpack.c.bf16 %v2584_v33, %v2580_v60  ;;  %v2588_v22 = vld [vmem:[#allocation6 + $0xac8] sm:$0xff] }
 0x1bb   :  { %4427 = vmatpush1.bf16.msra.mxu0 %v4426_v48  ;;  %v2533_v48 = vld [vmem:[#allocation6 + $0x910] sm:$0xff]  ;;  %v2592_v41 = vld [vmem:[#allocation6 + $0xae8] sm:$0xff] }
 0x1bc   :  { %4811 = vmatpush1.bf16.msra.mxu1 %v4810_v2  ;;  %4429 = vmatprep.subr.bf16.mxu0 %v4428_v39  ;;  %v4828_v2 = vpack.c.bf16 %v2538_v38, %v2534_v23  ;;  %v2537_v39 = vld [vmem:[#allocation6 + $0x930] sm:$0xff]  ;;  %v2563_v23 = vld [vmem:[#allocation6 + $0xa00] sm:$0xff]  ;;  %v2596_v56 = vld [vmem:[#allocation6 + $0xb08] sm:$0xff] }
 0x1bd   :  { %4813 = vmatprep.subr.bf16.mxu1 %v4812_v57  ;;  %v2540_v57 = vld [vmem:[#allocation6 + $0x948] sm:$0xff]  ;;  %v4830_v8 = vpack.c.bf16 %v2537_v39, %v2533_v48  ;;  %v2567_v38 = vld [vmem:[#allocation6 + $0xa20] sm:$0xff]  ;;  %v2574_v48 = vld [vmem:[#allocation6 + $0xa58] sm:$0xff] }
 0x1be   :  { %3169 = vmatmul.mubr.f32.vlgmr.msra.gmra.mrb[24].mxu0 %v5895_v17  ;;  %v4448_v6 = vpack.c.bf16 %v2544_v50, %v2540_v57  ;;  %v4462_v39 = vpack.c.bf16 %v2567_v38, %v2563_v23  ;;  %v4464_v50 = vpack.c.bf16 %v2576_v35, %v2572_v3  ;;  %v2600_v16 = vld [vmem:[#allocation6 + $0xb28] sm:$0xff] }
 0x1bf   :  { %3595 = vmatmul.mubr.f32.vlgmr.msra.gmra.mrb[24].mxu1 %v5895_v17  ;;  %4431 = vmatpush1.bf16.msra.mxu0 %v4430_v62  ;;  %v2528_v17 = vld [vmem:[#allocation6 + $0x8e8] sm:$0xff]  ;;  %v2541_v62 = vld [vmem:[#allocation6 + $0x950] sm:$0xff] }
 0x1c0   :  { %3239 = vmatprep.mubr.f32.mxu0 %v5869_v45  ;;  %4815 = vmatpush1.bf16.msra.mxu1 %v4814_v49  ;;  %v4440_v44 = vpack.c.bf16 %v2528_v17, %v2524_v4  ;;  %v4832_v49 = vpack.c.bf16 %v2546_v15, %v2542_v5  ;;  %v4834_v40 = vpack.c.bf16 %v2545_v21, %v2541_v62  ;;  %v2571_v5 = vld [vmem:[#allocation6 + $0xa40] sm:$0xff]  ;;  %v2582_v62 = vld [vmem:[#allocation6 + $0xa98] sm:$0xff]  ;;  %v2604_v23 = vld [vmem:[#allocation6 + $0xb48] sm:$0xff] }
 0x1c1   :  { %3665 = vmatprep.mubr.f32.mxu1 %v5869_v45  ;;  %4433 = vmatprep.subr.bf16.mxu0 %v4432_v32  ;;  %v2523_v45 = vld [vmem:[#allocation6 + $0x8c0] sm:$0xff]  ;;  %v2550_v32 = vld [vmem:[#allocation6 + $0x998] sm:$0xff]  ;;  %v4456_v17 = vpack.c.bf16 %v2560_v9, %v2556_v31  ;;  %v4472_v9 = vpack.c.bf16 %v2592_v41, %v2588_v22  ;;  %v2608_v38 = vld [vmem:[#allocation6 + $0xb68] sm:$0xff] }
 0x1c2   :  { %4817 = vmatprep.subr.bf16.mxu1 %v4816_v58  ;;  %v4442_v59 = vpack.c.bf16 %v2527_v47, %v2523_v45  ;;  %v2554_v58 = vld [vmem:[#allocation6 + $0x9b8] sm:$0xff]  ;;  %v2564_v45 = vld [vmem:[#allocation6 + $0xa08] sm:$0xff]  ;;  %v2575_v15 = vld [vmem:[#allocation6 + $0xa60] sm:$0xff]  ;;  %v4480_v35 = vpack.c.bf16 %v2608_v38, %v2604_v23 }
 0x1c3   :  { %4435 = vmatpush1.bf16.msra.mxu0 %v4434_v26  ;;  %v2549_v26 = vld [vmem:[#allocation6 + $0x990] sm:$0xff]  ;;  %v2568_v47 = vld [vmem:[#allocation6 + $0xa28] sm:$0xff]  ;;  %v4466_v21 = vpack.c.bf16 %v2575_v15, %v2571_v5  ;;  %v2635_v38 = vld [vmem:[#allocation6 + $0xc40] sm:$0xff] }
 0x1c4   :  { %4819 = vmatpush1.bf16.msra.mxu1 %v4818_v28  ;;  %4437 = vmatprep.subr.bf16.mxu0 %v4436_v27  ;;  %v4836_v28 = vpack.c.bf16 %v2554_v58, %v2550_v32  ;;  %v2553_v27 = vld [vmem:[#allocation6 + $0x9b0] sm:$0xff]  ;;  %v4460_v20 = vpack.c.bf16 %v2568_v47, %v2564_v45  ;;  %v2579_v32 = vld [vmem:[#allocation6 + $0xa80] sm:$0xff]  ;;  %v4476_v47 = vpack.c.bf16 %v2600_v16, %v2596_v56  ;;  %v2612_v5 = vld [vmem:[#allocation6 + $0xb88] sm:$0xff] }
 0x1c5   :  { %4821 = vmatprep.subr.bf16.mxu1 %v4820_v63  ;;  %v2562_v63 = vld [vmem:[#allocation6 + $0x9f8] sm:$0xff]  ;;  %v4838_v4 = vpack.c.bf16 %v2553_v27, %v2549_v26  ;;  %v2583_v58 = vld [vmem:[#allocation6 + $0xaa0] sm:$0xff]  ;;  %v2616_v15 = vld [vmem:[#allocation6 + $0xba8] sm:$0xff] }
 0x1c6   :  { %v2590_v26 = vld [vmem:[#allocation6 + $0xad8] sm:$0xff]  ;;  %v4470_v27 = vpack.c.bf16 %v2583_v58, %v2579_v32  ;;  %v4484_v33 = vpack.c.bf16 %v2616_v15, %v2612_v5  ;;  %v2620_v32 = vld [vmem:[#allocation6 + $0xbc8] sm:$0xff] }
 0x1c7   :  { %4439 = vmatpush1.bf16.msra.mxu0 %v4438_v52  ;;  %v2557_v52 = vld [vmem:[#allocation6 + $0x9d0] sm:$0xff]  ;;  %v2624_v58 = vld [vmem:[#allocation6 + $0xbe8] sm:$0xff] }
 0x1c8   :  { %4823 = vmatpush1.bf16.msra.mxu1 %v4822_v43  ;;  %4441 = vmatprep.subr.bf16.mxu0 %v4440_v44  ;;  %v4840_v43 = vpack.c.bf16 %v2562_v63, %v2558_v10  ;;  %v2561_v44 = vld [vmem:[#allocation6 + $0x9f0] sm:$0xff]  ;;  %v2587_v10 = vld [vmem:[#allocation6 + $0xac0] sm:$0xff]  ;;  %v4488_v41 = vpack.c.bf16 %v2624_v58, %v2620_v32 }
 0x1c9   :  { %4825 = vmatprep.subr.bf16.mxu1 %v4824_v19  ;;  %v2570_v19 = vld [vmem:[#allocation6 + $0xa38] sm:$0xff]  ;;  %v4842_v53 = vpack.c.bf16 %v2561_v44, %v2557_v52  ;;  %v2591_v63 = vld [vmem:[#allocation6 + $0xae0] sm:$0xff] }
 0x1ca   :  { %v2598_v52 = vld [vmem:[#allocation6 + $0xb18] sm:$0xff]  ;;  %v4474_v44 = vpack.c.bf16 %v2591_v63, %v2587_v10  ;;  %v2628_v10 = vld [vmem:[#allocation6 + $0xc08] sm:$0xff]  ;;  %v2651_v58 = vld [vmem:[#allocation6 + $0xcc0] sm:$0xff] }
 0x1cb   :  { %4443 = vmatpush1.bf16.msra.mxu0 %v4442_v59  ;;  %v2565_v59 = vld [vmem:[#allocation6 + $0xa10] sm:$0xff]  ;;  %v2632_v63 = vld [vmem:[#allocation6 + $0xc28] sm:$0xff] }
 0x1cc   :  { %4827 = vmatpush1.bf16.msra.mxu1 %v4826_v42  ;;  %4445 = vmatprep.subr.bf16.mxu0 %v4444_v34  ;;  %v4844_v42 = vpack.c.bf16 %v2570_v19, %v2566_v12  ;;  %v2569_v34 = vld [vmem:[#allocation6 + $0xa30] sm:$0xff]  ;;  %v2595_v12 = vld [vmem:[#allocation6 + $0xb00] sm:$0xff]  ;;  %v4492_v16 = vpack.c.bf16 %v2632_v63, %v2628_v10 }
 0x1cd   :  { %4829 = vmatprep.subr.bf16.mxu1 %v4828_v2  ;;  %v2578_v2 = vld [vmem:[#allocation6 + $0xa78] sm:$0xff]  ;;  %v4846_v57 = vpack.c.bf16 %v2569_v34, %v2565_v59  ;;  %v2599_v19 = vld [vmem:[#allocation6 + $0xb20] sm:$0xff] }
 0x1ce   :  { %v2606_v59 = vld [vmem:[#allocation6 + $0xb58] sm:$0xff]  ;;  %v4478_v34 = vpack.c.bf16 %v2599_v19, %v2595_v12  ;;  %v2636_v12 = vld [vmem:[#allocation6 + $0xc48] sm:$0xff]  ;;  %v2659_v10 = vld [vmem:[#allocation6 + $0xd00] sm:$0xff] }
 0x1cf   :  { %4447 = vmatpush1.bf16.msra.mxu0 %v4446_v14  ;;  %v2573_v14 = vld [vmem:[#allocation6 + $0xa50] sm:$0xff]  ;;  %v2640_v19 = vld [vmem:[#allocation6 + $0xc68] sm:$0xff]  ;;  %v2663_v63 = vld [vmem:[#allocation6 + $0xd20] sm:$0xff] }
 0x1d0   :  { %4831 = vmatpush1.bf16.msra.mxu1 %v4830_v8  ;;  %4449 = vmatprep.subr.bf16.mxu0 %v4448_v6  ;;  %v4848_v8 = vpack.c.bf16 %v2578_v2, %v2574_v48  ;;  %v2577_v6 = vld [vmem:[#allocation6 + $0xa70] sm:$0xff]  ;;  %v2603_v48 = vld [vmem:[#allocation6 + $0xb40] sm:$0xff] }
 0x1d1   :  { %4833 = vmatprep.subr.bf16.mxu1 %v4832_v49  ;;  %v2586_v49 = vld [vmem:[#allocation6 + $0xab8] sm:$0xff]  ;;  %v4850_v13 = vpack.c.bf16 %v2577_v6, %v2573_v14  ;;  %v2607_v2 = vld [vmem:[#allocation6 + $0xb60] sm:$0xff] }
 0x1d2   :  { %v2614_v14 = vld [vmem:[#allocation6 + $0xb98] sm:$0xff]  ;;  %v4482_v6 = vpack.c.bf16 %v2607_v2, %v2603_v48  ;;  %v2648_v48 = vld [vmem:[#allocation6 + $0xca8] sm:$0xff] }
 0x1d3   :  { %4451 = vmatpush1.bf16.msra.mxu0 %v4450_v51  ;;  %v2581_v51 = vld [vmem:[#allocation6 + $0xa90] sm:$0xff] }
 0x1d4   :  { %4835 = vmatpush1.bf16.msra.mxu1 %v4834_v40  ;;  %4453 = vmatprep.subr.bf16.mxu0 %v4452_v29  ;;  %v4852_v40 = vpack.c.bf16 %v2586_v49, %v2582_v62  ;;  %v2585_v29 = vld [vmem:[#allocation6 + $0xab0] sm:$0xff]  ;;  %v2611_v62 = vld [vmem:[#allocation6 + $0xb80] sm:$0xff] }
 0x1d5   :  { %4837 = vmatprep.subr.bf16.mxu1 %v4836_v28  ;;  %v2594_v28 = vld [vmem:[#allocation6 + $0xaf8] sm:$0xff]  ;;  %v4854_v31 = vpack.c.bf16 %v2585_v29, %v2581_v51  ;;  %v2615_v49 = vld [vmem:[#allocation6 + $0xba0] sm:$0xff] }
 0x1d6   :  { %v2622_v51 = vld [vmem:[#allocation6 + $0xbd8] sm:$0xff]  ;;  %v4486_v29 = vpack.c.bf16 %v2615_v49, %v2611_v62  ;;  %v2652_v62 = vld [vmem:[#allocation6 + $0xcc8] sm:$0xff] }
 0x1d7   :  { %4455 = vmatpush1.bf16.msra.mxu0 %v4454_v30  ;;  %v2589_v30 = vld [vmem:[#allocation6 + $0xad0] sm:$0xff]  ;;  %v2656_v49 = vld [vmem:[#allocation6 + $0xce8] sm:$0xff] }
 0x1d8   :  { %4839 = vmatpush1.bf16.msra.mxu1 %v4838_v4  ;;  %4457 = vmatprep.subr.bf16.mxu0 %v4456_v17  ;;  %v4856_v4 = vpack.c.bf16 %v2594_v28, %v2590_v26  ;;  %v2593_v17 = vld [vmem:[#allocation6 + $0xaf0] sm:$0xff]  ;;  %v2619_v26 = vld [vmem:[#allocation6 + $0xbc0] sm:$0xff]  ;;  %v4504_v32 = vpack.c.bf16 %v2656_v49, %v2652_v62 }
 0x1d9   :  { %4841 = vmatprep.subr.bf16.mxu1 %v4840_v43  ;;  %v2602_v43 = vld [vmem:[#allocation6 + $0xb38] sm:$0xff]  ;;  %v4858_v45 = vpack.c.bf16 %v2593_v17, %v2589_v30  ;;  %v2623_v28 = vld [vmem:[#allocation6 + $0xbe0] sm:$0xff] }
 0x1da   :  { %v2630_v30 = vld [vmem:[#allocation6 + $0xc18] sm:$0xff]  ;;  %v4490_v17 = vpack.c.bf16 %v2623_v28, %v2619_v26  ;;  %v2683_v62 = vld [vmem:[#allocation6 + $0xdc0] sm:$0xff] }
 0x1db   :  { %4459 = vmatpush1.bf16.msra.mxu0 %v4458_v54  ;;  %v2597_v54 = vld [vmem:[#allocation6 + $0xb10] sm:$0xff]  ;;  %v2662_v26 = vld [vmem:[#allocation6 + $0xd18] sm:$0xff]  ;;  %v2687_v49 = vld [vmem:[#allocation6 + $0xde0] sm:$0xff] }
 0x1dc   :  { %4843 = vmatpush1.bf16.msra.mxu1 %v4842_v53  ;;  %4461 = vmatprep.subr.bf16.mxu0 %v4460_v20  ;;  %v4860_v53 = vpack.c.bf16 %v2602_v43, %v2598_v52  ;;  %v2601_v20 = vld [vmem:[#allocation6 + $0xb30] sm:$0xff]  ;;  %v2627_v52 = vld [vmem:[#allocation6 + $0xc00] sm:$0xff]  ;;  %v2666_v28 = vld [vmem:[#allocation6 + $0xd38] sm:$0xff] }
 0x1dd   :  { %4845 = vmatprep.subr.bf16.mxu1 %v4844_v42  ;;  %v2610_v42 = vld [vmem:[#allocation6 + $0xb78] sm:$0xff]  ;;  %v4862_v3 = vpack.c.bf16 %v2601_v20, %v2597_v54  ;;  %v2631_v43 = vld [vmem:[#allocation6 + $0xc20] sm:$0xff] }
 0x1de   :  { %v4494_v54 = vpack.c.bf16 %v2631_v43, %v2627_v52  ;;  %v2642_v20 = vld [vmem:[#allocation6 + $0xc78] sm:$0xff] }
 0x1df   :  { %4463 = vmatpush1.bf16.msra.mxu0 %v4462_v39  ;;  %v2605_v39 = vld [vmem:[#allocation6 + $0xb50] sm:$0xff]  ;;  %v2670_v52 = vld [vmem:[#allocation6 + $0xd58] sm:$0xff] }
 0x1e0   :  { %4847 = vmatpush1.bf16.msra.mxu1 %v4846_v57  ;;  %4465 = vmatprep.subr.bf16.mxu0 %v4464_v50  ;;  %v4864_v57 = vpack.c.bf16 %v2610_v42, %v2606_v59  ;;  %v2609_v50 = vld [vmem:[#allocation6 + $0xb70] sm:$0xff]  ;;  %v2639_v59 = vld [vmem:[#allocation6 + $0xc60] sm:$0xff]  ;;  %v2674_v43 = vld [vmem:[#allocation6 + $0xd78] sm:$0xff] }
 0x1e1   :  { %4849 = vmatprep.subr.bf16.mxu1 %v4848_v8  ;;  %v2618_v8 = vld [vmem:[#allocation6 + $0xbb8] sm:$0xff]  ;;  %v4866_v60 = vpack.c.bf16 %v2609_v50, %v2605_v39  ;;  %v2637_v42 = vld [vmem:[#allocation6 + $0xc50] sm:$0xff]  ;;  %v4498_v50 = vpack.c.bf16 %v2639_v59, %v2635_v38  ;;  %v2680_v38 = vld [vmem:[#allocation6 + $0xda8] sm:$0xff] }
 0x1e2   :  { %v2646_v39 = vld [vmem:[#allocation6 + $0xc98] sm:$0xff] }
 0x1e3   :  { %4467 = vmatpush1.bf16.msra.mxu0 %v4466_v21  ;;  %v2613_v21 = vld [vmem:[#allocation6 + $0xb90] sm:$0xff]  ;;  %v2678_v59 = vld [vmem:[#allocation6 + $0xd98] sm:$0xff] }
 0x1e4   :  { %4851 = vmatpush1.bf16.msra.mxu1 %v4850_v13  ;;  %4469 = vmatprep.subr.bf16.mxu0 %v4468_v55  ;;  %v4868_v13 = vpack.c.bf16 %v2618_v8, %v2614_v14  ;;  %v2617_v55 = vld [vmem:[#allocation6 + $0xbb0] sm:$0xff]  ;;  %v2643_v14 = vld [vmem:[#allocation6 + $0xc80] sm:$0xff] }
 0x1e5   :  { %4853 = vmatprep.subr.bf16.mxu1 %v4852_v40  ;;  %v2626_v40 = vld [vmem:[#allocation6 + $0xbf8] sm:$0xff]  ;;  %v4870_v22 = vpack.c.bf16 %v2617_v55, %v2613_v21  ;;  %v2647_v8 = vld [vmem:[#allocation6 + $0xca0] sm:$0xff] }
 0x1e6   :  { %v2654_v21 = vld [vmem:[#allocation6 + $0xcd8] sm:$0xff] }
 0x1e7   :  { %4471 = vmatpush1.bf16.msra.mxu0 %v4470_v27  ;;  %v2621_v27 = vld [vmem:[#allocation6 + $0xbd0] sm:$0xff] }
 0x1e8   :  { %4855 = vmatpush1.bf16.msra.mxu1 %v4854_v31  ;;  %4473 = vmatprep.subr.bf16.mxu0 %v4472_v9  ;;  %v4872_v31 = vpack.c.bf16 %v2626_v40, %v2622_v51  ;;  %v2625_v9 = vld [vmem:[#allocation6 + $0xbf0] sm:$0xff]  ;;  %v2655_v51 = vld [vmem:[#allocation6 + $0xce0] sm:$0xff] }
 0x1e9   :  { %4857 = vmatprep.subr.bf16.mxu1 %v4856_v4  ;;  %v2634_v4 = vld [vmem:[#allocation6 + $0xc38] sm:$0xff]  ;;  %v4874_v56 = vpack.c.bf16 %v2625_v9, %v2621_v27  ;;  %v2653_v40 = vld [vmem:[#allocation6 + $0xcd0] sm:$0xff]  ;;  %v4506_v27 = vpack.c.bf16 %v2655_v51, %v2651_v58 }
 0x1ea   :  { %v2694_v58 = vld [vmem:[#allocation6 + $0xe18] sm:$0xff] }
 0x1eb   :  { %4475 = vmatpush1.bf16.msra.mxu0 %v4474_v44  ;;  %v4876_v44 = vpack.c.bf16 %v2634_v4, %v2630_v30  ;;  %v2661_v30 = vld [vmem:[#allocation6 + $0xd10] sm:$0xff]  ;;  %v4892_v4 = vpack.c.bf16 %v2666_v28, %v2662_v26  ;;  %v2698_v51 = vld [vmem:[#allocation6 + $0xe38] sm:$0xff] }
 0x1ec   :  { %4859 = vmatpush1.bf16.msra.mxu1 %v4858_v45  ;;  %4477 = vmatprep.subr.bf16.mxu0 %v4476_v47  ;;  %v2629_v45 = vld [vmem:[#allocation6 + $0xc10] sm:$0xff]  ;;  %v4908_v28 = vpack.c.bf16 %v2698_v51, %v2694_v58 }
 0x1ed   :  { %4861 = vmatprep.subr.bf16.mxu1 %v4860_v53  ;;  %v2633_v47 = vld [vmem:[#allocation6 + $0xc30] sm:$0xff]  ;;  %v2638_v53 = vld [vmem:[#allocation6 + $0xc58] sm:$0xff] }
 0x1ee   :  { %v4878_v23 = vpack.c.bf16 %v2633_v47, %v2629_v45  ;;  %v4880_v2 = vpack.c.bf16 %v2642_v20, %v2638_v53  ;;  %v4896_v53 = vpack.c.bf16 %v2674_v43, %v2670_v52  ;;  %v2673_v20 = vld [vmem:[#allocation6 + $0xd70] sm:$0xff] }
 0x1ef   :  { %4479 = vmatpush1.bf16.msra.mxu0 %v4478_v34  ;;  %v4496_v34 = vpack.c.bf16 %v2640_v19, %v2636_v12  ;;  %v2667_v12 = vld [vmem:[#allocation6 + $0xd40] sm:$0xff]  ;;  %v2693_v26 = vld [vmem:[#allocation6 + $0xe10] sm:$0xff] }
 0x1f0   :  { %4863 = vmatpush1.bf16.msra.mxu1 %v4862_v3  ;;  %4481 = vmatprep.subr.bf16.mxu0 %v4480_v35  ;;  %v2641_v3 = vld [vmem:[#allocation6 + $0xc70] sm:$0xff]  ;;  %v2644_v35 = vld [vmem:[#allocation6 + $0xc88] sm:$0xff]  ;;  %v2671_v19 = vld [vmem:[#allocation6 + $0xd60] sm:$0xff] }
 0x1f1   :  { %4865 = vmatprep.subr.bf16.mxu1 %v4864_v57  ;;  %v2650_v57 = vld [vmem:[#allocation6 + $0xcb8] sm:$0xff]  ;;  %v4882_v5 = vpack.c.bf16 %v2641_v3, %v2637_v42  ;;  %v4500_v15 = vpack.c.bf16 %v2648_v48, %v2644_v35  ;;  %v2675_v48 = vld [vmem:[#allocation6 + $0xd80] sm:$0xff]  ;;  %v2701_v52 = vld [vmem:[#allocation6 + $0xe50] sm:$0xff] }
 0x1f2   :  { %v2682_v42 = vld [vmem:[#allocation6 + $0xdb8] sm:$0xff]  ;;  %v2725_v58 = vld [vmem:[#allocation6 + $0xf10] sm:$0xff] }
 0x1f3   :  { %4483 = vmatpush1.bf16.msra.mxu0 %v4482_v6  ;;  %v2645_v6 = vld [vmem:[#allocation6 + $0xc90] sm:$0xff] }
 0x1f4   :  { %4867 = vmatpush1.bf16.msra.mxu1 %v4866_v60  ;;  %4485 = vmatprep.subr.bf16.mxu0 %v4484_v33  ;;  %v4884_v60 = vpack.c.bf16 %v2650_v57, %v2646_v39  ;;  %v2649_v33 = vld [vmem:[#allocation6 + $0xcb0] sm:$0xff]  ;;  %v4900_v57 = vpack.c.bf16 %v2682_v42, %v2678_v59 }
 0x1f5   :  { %4869 = vmatprep.subr.bf16.mxu1 %v4868_v13  ;;  %v4502_v13 = vpack.c.bf16 %v2647_v8, %v2643_v14  ;;  %v4886_v55 = vpack.c.bf16 %v2649_v33, %v2645_v6  ;;  %v2677_v39 = vld [vmem:[#allocation6 + $0xd90] sm:$0xff]  ;;  %v2686_v14 = vld [vmem:[#allocation6 + $0xdd8] sm:$0xff] }
 0x1f6   :  { %v2690_v8 = vld [vmem:[#allocation6 + $0xdf8] sm:$0xff]  ;;  %v2709_v59 = vld [vmem:[#allocation6 + $0xe90] sm:$0xff] }
 0x1f7   :  { %4487 = vmatpush1.bf16.msra.mxu0 %v4486_v29 }
 0x1f8   :  { %4871 = vmatpush1.bf16.msra.mxu1 %v4870_v22  ;;  %4489 = vmatprep.subr.bf16.mxu0 %v4488_v41  ;;  %v2660_v22 = vld [vmem:[#allocation6 + $0xd08] sm:$0xff] }
 0x1f9   :  { %4873 = vmatprep.subr.bf16.mxu1 %v4872_v31  ;;  %v2664_v41 = vld [vmem:[#allocation6 + $0xd28] sm:$0xff] }
 0x1fa   :  { %v4508_v9 = vpack.c.bf16 %v2664_v41, %v2660_v22  ;;  %v2691_v22 = vld [vmem:[#allocation6 + $0xe00] sm:$0xff] }
 0x1fb   :  { %4491 = vmatpush1.bf16.msra.mxu0 %v4490_v17  ;;  %v2665_v17 = vld [vmem:[#allocation6 + $0xd30] sm:$0xff]  ;;  %v2695_v41 = vld [vmem:[#allocation6 + $0xe20] sm:$0xff] }
 0x1fc   :  { %4875 = vmatpush1.bf16.msra.mxu1 %v4874_v56  ;;  %4493 = vmatprep.subr.bf16.mxu0 %v4492_v16  ;;  %v2668_v56 = vld [vmem:[#allocation6 + $0xd48] sm:$0xff]  ;;  %v4894_v45 = vpack.c.bf16 %v2665_v17, %v2661_v30  ;;  %v4526_v30 = vpack.c.bf16 %v2695_v41, %v2691_v22  ;;  %v2734_v22 = vld [vmem:[#allocation6 + $0xf58] sm:$0xff] }
 0x1fd   :  { %4877 = vmatprep.subr.bf16.mxu1 %v4876_v44  ;;  %v2672_v16 = vld [vmem:[#allocation6 + $0xd68] sm:$0xff]  ;;  %v4510_v44 = vpack.c.bf16 %v2663_v63, %v2659_v10  ;;  %v2702_v10 = vld [vmem:[#allocation6 + $0xe58] sm:$0xff] }
 0x1fe   :  { %3240 = vmatmul.mubr.f32.vlgmr.msra.gmra.mrb[24].mxu0 %v5850_v36  ;;  %v4512_v47 = vpack.c.bf16 %v2672_v16, %v2668_v56  ;;  %v2706_v63 = vld [vmem:[#allocation6 + $0xe78] sm:$0xff]  ;;  %v2699_v56 = vld [vmem:[#allocation6 + $0xe40] sm:$0xff] }
 0x1ff   :  { %3666 = vmatmul.mubr.f32.vlgmr.msra.gmra.mrb[24].mxu1 %v5850_v36  ;;  %4495 = vmatpush1.bf16.msra.mxu0 %v4494_v54  ;;  %v2658_v36 = vld [vmem:[#allocation6 + $0xcf8] sm:$0xff]  ;;  %v2669_v54 = vld [vmem:[#allocation6 + $0xd50] sm:$0xff]  ;;  %v2703_v16 = vld [vmem:[#allocation6 + $0xe60] sm:$0xff]  ;;  %v4912_v43 = vpack.c.bf16 %v2706_v63, %v2702_v10 }
 0x200   :  { %3310 = vmatprep.mubr.f32.mxu0 %v5913_v37  ;;  %4879 = vmatpush1.bf16.msra.mxu1 %v4878_v23  ;;  %v4888_v29 = vpack.c.bf16 %v2658_v36, %v2654_v21  ;;  %v2676_v23 = vld [vmem:[#allocation6 + $0xd88] sm:$0xff]  ;;  %v4898_v3 = vpack.c.bf16 %v2673_v20, %v2669_v54  ;;  %v2685_v21 = vld [vmem:[#allocation6 + $0xdd0] sm:$0xff]  ;;  %v4904_v36 = vpack.c.bf16 %v2690_v8, %v2686_v14  ;;  %v2738_v41 = vld [vmem:[#allocation6 + $0xf78] sm:$0xff] }
 0x201   :  { %3736 = vmatprep.mubr.f32.mxu1 %v5913_v37  ;;  %4497 = vmatprep.subr.bf16.mxu0 %v4496_v34  ;;  %v2657_v37 = vld [vmem:[#allocation6 + $0xcf0] sm:$0xff]  ;;  %v4514_v34 = vpack.c.bf16 %v2671_v19, %v2667_v12  ;;  %v4516_v35 = vpack.c.bf16 %v2680_v38, %v2676_v23  ;;  %v2710_v12 = vld [vmem:[#allocation6 + $0xe98] sm:$0xff]  ;;  %v4530_v54 = vpack.c.bf16 %v2703_v16, %v2699_v56  ;;  %v2707_v23 = vld [vmem:[#allocation6 + $0xe80] sm:$0xff] }
 0x202   :  { %4881 = vmatprep.subr.bf16.mxu1 %v4880_v2  ;;  %v4890_v31 = vpack.c.bf16 %v2657_v37, %v2653_v40  ;;  %v2679_v2 = vld [vmem:[#allocation6 + $0xda0] sm:$0xff]  ;;  %v4522_v40 = vpack.c.bf16 %v2687_v49, %v2683_v62  ;;  %v2714_v19 = vld [vmem:[#allocation6 + $0xeb8] sm:$0xff]  ;;  %v2717_v14 = vld [vmem:[#allocation6 + $0xed0] sm:$0xff]  ;;  %v4928_v63 = vpack.c.bf16 %v2738_v41, %v2734_v22 }
 0x203   :  { %4499 = vmatpush1.bf16.msra.mxu0 %v4498_v50  ;;  %v2681_v50 = vld [vmem:[#allocation6 + $0xdb0] sm:$0xff]  ;;  %v4518_v6 = vpack.c.bf16 %v2679_v2, %v2675_v48  ;;  %v2711_v38 = vld [vmem:[#allocation6 + $0xea0] sm:$0xff]  ;;  %v4916_v42 = vpack.c.bf16 %v2714_v19, %v2710_v12  ;;  %v2718_v48 = vld [vmem:[#allocation6 + $0xed8] sm:$0xff] }
 0x204   :  { %4883 = vmatpush1.bf16.msra.mxu1 %v4882_v5  ;;  %4501 = vmatprep.subr.bf16.mxu0 %v4500_v15  ;;  %v2684_v5 = vld [vmem:[#allocation6 + $0xdc8] sm:$0xff]  ;;  %v2722_v2 = vld [vmem:[#allocation6 + $0xef8] sm:$0xff]  ;;  %v2733_v10 = vld [vmem:[#allocation6 + $0xf50] sm:$0xff] }
 0x205   :  { %4885 = vmatprep.subr.bf16.mxu1 %v4884_v60  ;;  %v2688_v15 = vld [vmem:[#allocation6 + $0xde8] sm:$0xff]  ;;  %v4902_v60 = vpack.c.bf16 %v2681_v50, %v2677_v39  ;;  %v4534_v39 = vpack.c.bf16 %v2711_v38, %v2707_v23  ;;  %v4920_v8 = vpack.c.bf16 %v2722_v2, %v2718_v48  ;;  %v2726_v62 = vld [vmem:[#allocation6 + $0xf18] sm:$0xff]  ;;  %v2741_v12 = vld [vmem:[#allocation6 + $0xf90] sm:$0xff] }
 0x206   :  { %v4520_v33 = vpack.c.bf16 %v2688_v15, %v2684_v5  ;;  %v2715_v5 = vld [vmem:[#allocation6 + $0xec0] sm:$0xff]  ;;  %v2730_v49 = vld [vmem:[#allocation6 + $0xf38] sm:$0xff]  ;;  %v2749_v48 = vld [vmem:[#allocation6 + $0xfd0] sm:$0xff] }
 0x207   :  { %4503 = vmatpush1.bf16.msra.mxu0 %v4502_v13  ;;  %v2689_v13 = vld [vmem:[#allocation6 + $0xdf0] sm:$0xff]  ;;  %v2719_v15 = vld [vmem:[#allocation6 + $0xee0] sm:$0xff]  ;;  %v4924_v51 = vpack.c.bf16 %v2730_v49, %v2726_v62  ;;  %v2742_v56 = vld [vmem:[#allocation6 + $0xf98] sm:$0xff] }
 0x208   :  { %4887 = vmatpush1.bf16.msra.mxu1 %v4886_v55  ;;  %4505 = vmatprep.subr.bf16.mxu0 %v4504_v32  ;;  %v2692_v55 = vld [vmem:[#allocation6 + $0xe08] sm:$0xff]  ;;  %v2746_v16 = vld [vmem:[#allocation6 + $0xfb8] sm:$0xff]  ;;  %v2757_v49 = vld [vmem:[#allocation6 + $0x1010] sm:$0xff] }
 0x209   :  { %4889 = vmatprep.subr.bf16.mxu1 %v4888_v29  ;;  %v2696_v32 = vld [vmem:[#allocation6 + $0xe28] sm:$0xff]  ;;  %v4906_v29 = vpack.c.bf16 %v2689_v13, %v2685_v21  ;;  %v4538_v21 = vpack.c.bf16 %v2719_v15, %v2715_v5  ;;  %v4932_v19 = vpack.c.bf16 %v2746_v16, %v2742_v56  ;;  %v2750_v23 = vld [vmem:[#allocation6 + $0xfd8] sm:$0xff]  ;;  %v2769_v41 = vld [vmem:[#allocation6 + $0x1070] sm:$0xff] }
 0x20a   :  { %v4524_v37 = vpack.c.bf16 %v2696_v32, %v2692_v55  ;;  %v2723_v55 = vld [vmem:[#allocation6 + $0xf00] sm:$0xff]  ;;  %v2754_v38 = vld [vmem:[#allocation6 + $0xff8] sm:$0xff]  ;;  %v2773_v56 = vld [vmem:[#allocation6 + $0x1090] sm:$0xff] }
 0x20b   :  { %4507 = vmatpush1.bf16.msra.mxu0 %v4506_v27  ;;  %v2697_v27 = vld [vmem:[#allocation6 + $0xe30] sm:$0xff]  ;;  %v2727_v32 = vld [vmem:[#allocation6 + $0xf20] sm:$0xff]  ;;  %v4936_v2 = vpack.c.bf16 %v2754_v38, %v2750_v23  ;;  %v2758_v5 = vld [vmem:[#allocation6 + $0x1018] sm:$0xff] }
 0x20c   :  { %4891 = vmatpush1.bf16.msra.mxu1 %v4890_v31  ;;  %4509 = vmatprep.subr.bf16.mxu0 %v4508_v9  ;;  %v2700_v31 = vld [vmem:[#allocation6 + $0xe48] sm:$0xff]  ;;  %v2762_v15 = vld [vmem:[#allocation6 + $0x1038] sm:$0xff] }
 0x20d   :  { %4893 = vmatprep.subr.bf16.mxu1 %v4892_v4  ;;  %v2704_v9 = vld [vmem:[#allocation6 + $0xe68] sm:$0xff]  ;;  %v4910_v4 = vpack.c.bf16 %v2697_v27, %v2693_v26  ;;  %v4542_v26 = vpack.c.bf16 %v2727_v32, %v2723_v55  ;;  %v4940_v62 = vpack.c.bf16 %v2762_v15, %v2758_v5  ;;  %v2766_v32 = vld [vmem:[#allocation6 + $0x1058] sm:$0xff]  ;;  %v2793_v5 = vld [vmem:[#allocation6 + $0x1130] sm:$0xff] }
 0x20e   :  { %v4528_v17 = vpack.c.bf16 %v2704_v9, %v2700_v31  ;;  %v2731_v31 = vld [vmem:[#allocation6 + $0xf40] sm:$0xff]  ;;  %v2788_v38 = vld [vmem:[#allocation6 + $0x1108] sm:$0xff] }
 0x20f   :  { %4511 = vmatpush1.bf16.msra.mxu0 %v4510_v44  ;;  %v2705_v44 = vld [vmem:[#allocation6 + $0xe70] sm:$0xff]  ;;  %v2735_v9 = vld [vmem:[#allocation6 + $0xf60] sm:$0xff]  ;;  %v2796_v15 = vld [vmem:[#allocation6 + $0x1148] sm:$0xff] }
 0x210   :  { %4895 = vmatpush1.bf16.msra.mxu1 %v4894_v45  ;;  %4513 = vmatprep.subr.bf16.mxu0 %v4512_v47  ;;  %v2708_v45 = vld [vmem:[#allocation6 + $0xe88] sm:$0xff] }
 0x211   :  { %4897 = vmatprep.subr.bf16.mxu1 %v4896_v53  ;;  %v2712_v47 = vld [vmem:[#allocation6 + $0xea8] sm:$0xff]  ;;  %v4914_v53 = vpack.c.bf16 %v2705_v44, %v2701_v52  ;;  %v4546_v52 = vpack.c.bf16 %v2735_v9, %v2731_v31  ;;  %v2774_v31 = vld [vmem:[#allocation6 + $0x1098] sm:$0xff] }
 0x212   :  { %v4532_v20 = vpack.c.bf16 %v2712_v47, %v2708_v45  ;;  %v2739_v45 = vld [vmem:[#allocation6 + $0xf80] sm:$0xff]  ;;  %v2778_v9 = vld [vmem:[#allocation6 + $0x10b8] sm:$0xff] }
 0x213   :  { %4515 = vmatpush1.bf16.msra.mxu0 %v4514_v34  ;;  %v2713_v34 = vld [vmem:[#allocation6 + $0xeb0] sm:$0xff]  ;;  %v2743_v47 = vld [vmem:[#allocation6 + $0xfa0] sm:$0xff]  ;;  %v4948_v16 = vpack.c.bf16 %v2778_v9, %v2774_v31  ;;  %v2812_v9 = vld [vmem:[#allocation6 + $0x11c8] sm:$0xff] }
 0x214   :  { %4899 = vmatpush1.bf16.msra.mxu1 %v4898_v3  ;;  %4517 = vmatprep.subr.bf16.mxu0 %v4516_v35  ;;  %v2716_v3 = vld [vmem:[#allocation6 + $0xec8] sm:$0xff]  ;;  %v2809_v31 = vld [vmem:[#allocation6 + $0x11b0] sm:$0xff] }
 0x215   :  { %4901 = vmatprep.subr.bf16.mxu1 %v4900_v57  ;;  %v2720_v35 = vld [vmem:[#allocation6 + $0xee8] sm:$0xff]  ;;  %v4918_v57 = vpack.c.bf16 %v2713_v34, %v2709_v59  ;;  %v4550_v59 = vpack.c.bf16 %v2743_v47, %v2739_v45  ;;  %v2782_v45 = vld [vmem:[#allocation6 + $0x10d8] sm:$0xff] }
 0x216   :  { %v4536_v50 = vpack.c.bf16 %v2720_v35, %v2716_v3  ;;  %v2747_v3 = vld [vmem:[#allocation6 + $0xfc0] sm:$0xff] }
 0x217   :  { %4519 = vmatpush1.bf16.msra.mxu0 %v4518_v6  ;;  %v2721_v6 = vld [vmem:[#allocation6 + $0xef0] sm:$0xff]  ;;  %v2751_v35 = vld [vmem:[#allocation6 + $0xfe0] sm:$0xff] }
 0x218   :  { %4903 = vmatpush1.bf16.msra.mxu1 %v4902_v60  ;;  %4521 = vmatprep.subr.bf16.mxu0 %v4520_v33  ;;  %v2724_v60 = vld [vmem:[#allocation6 + $0xf08] sm:$0xff] }
 0x219   :  { %4905 = vmatprep.subr.bf16.mxu1 %v4904_v36  ;;  %v2728_v33 = vld [vmem:[#allocation6 + $0xf28] sm:$0xff]  ;;  %v4922_v36 = vpack.c.bf16 %v2721_v6, %v2717_v14  ;;  %v4554_v14 = vpack.c.bf16 %v2751_v35, %v2747_v3 }
 0x21a   :  { %v4540_v13 = vpack.c.bf16 %v2728_v33, %v2724_v60  ;;  %v2755_v60 = vld [vmem:[#allocation6 + $0x1000] sm:$0xff] }
 0x21b   :  { %4523 = vmatpush1.bf16.msra.mxu0 %v4522_v40  ;;  %v2729_v40 = vld [vmem:[#allocation6 + $0xf30] sm:$0xff]  ;;  %v2759_v33 = vld [vmem:[#allocation6 + $0x1020] sm:$0xff] }
 0x21c   :  { %4907 = vmatpush1.bf16.msra.mxu1 %v4906_v29  ;;  %4525 = vmatprep.subr.bf16.mxu0 %v4524_v37  ;;  %v2732_v29 = vld [vmem:[#allocation6 + $0xf48] sm:$0xff]  ;;  %v4558_v55 = vpack.c.bf16 %v2759_v33, %v2755_v60 }
 0x21d   :  { %4909 = vmatprep.subr.bf16.mxu1 %v4908_v28  ;;  %v2736_v37 = vld [vmem:[#allocation6 + $0xf68] sm:$0xff]  ;;  %v4926_v28 = vpack.c.bf16 %v2729_v40, %v2725_v58  ;;  %v2770_v58 = vld [vmem:[#allocation6 + $0x1078] sm:$0xff]  ;;  %v2763_v40 = vld [vmem:[#allocation6 + $0x1040] sm:$0xff] }
 0x21e   :  { %v4544_v27 = vpack.c.bf16 %v2736_v37, %v2732_v29  ;;  %v2767_v29 = vld [vmem:[#allocation6 + $0x1060] sm:$0xff]  ;;  %v2765_v37 = vld [vmem:[#allocation6 + $0x1050] sm:$0xff] }
 0x21f   :  { %4527 = vmatpush1.bf16.msra.mxu0 %v4526_v30  ;;  %v2737_v30 = vld [vmem:[#allocation6 + $0xf70] sm:$0xff] }
 0x220   :  { %4911 = vmatpush1.bf16.msra.mxu1 %v4910_v4  ;;  %4529 = vmatprep.subr.bf16.mxu0 %v4528_v17  ;;  %v2740_v4 = vld [vmem:[#allocation6 + $0xf88] sm:$0xff] }
 0x221   :  { %4913 = vmatprep.subr.bf16.mxu1 %v4912_v43  ;;  %v2744_v17 = vld [vmem:[#allocation6 + $0xfa8] sm:$0xff]  ;;  %v4930_v43 = vpack.c.bf16 %v2737_v30, %v2733_v10  ;;  %v4562_v10 = vpack.c.bf16 %v2767_v29, %v2763_v40  ;;  %v2810_v40 = vld [vmem:[#allocation6 + $0x11b8] sm:$0xff] }
 0x222   :  { %v4548_v44 = vpack.c.bf16 %v2744_v17, %v2740_v4  ;;  %v2771_v4 = vld [vmem:[#allocation6 + $0x1080] sm:$0xff] }
 0x223   :  { %4531 = vmatpush1.bf16.msra.mxu0 %v4530_v54  ;;  %v2745_v54 = vld [vmem:[#allocation6 + $0xfb0] sm:$0xff]  ;;  %v2775_v17 = vld [vmem:[#allocation6 + $0x10a0] sm:$0xff] }
 0x224   :  { %4915 = vmatpush1.bf16.msra.mxu1 %v4914_v53  ;;  %4533 = vmatprep.subr.bf16.mxu0 %v4532_v20  ;;  %v2748_v53 = vld [vmem:[#allocation6 + $0xfc8] sm:$0xff]  ;;  %v4566_v47 = vpack.c.bf16 %v2775_v17, %v2771_v4 }
 0x225   :  { %4917 = vmatprep.subr.bf16.mxu1 %v4916_v42  ;;  %v2752_v20 = vld [vmem:[#allocation6 + $0xfe8] sm:$0xff]  ;;  %v4934_v42 = vpack.c.bf16 %v2745_v54, %v2741_v12  ;;  %v2779_v54 = vld [vmem:[#allocation6 + $0x10c0] sm:$0xff] }
 0x226   :  { %v4552_v34 = vpack.c.bf16 %v2752_v20, %v2748_v53  ;;  %v2783_v53 = vld [vmem:[#allocation6 + $0x10e0] sm:$0xff]  ;;  %v2781_v20 = vld [vmem:[#allocation6 + $0x10d0] sm:$0xff] }
 0x227   :  { %4535 = vmatpush1.bf16.msra.mxu0 %v4534_v39  ;;  %v2753_v39 = vld [vmem:[#allocation6 + $0xff0] sm:$0xff]  ;;  %v4570_v3 = vpack.c.bf16 %v2783_v53, %v2779_v54 }
 0x228   :  { %4919 = vmatpush1.bf16.msra.mxu1 %v4918_v57  ;;  %4537 = vmatprep.subr.bf16.mxu0 %v4536_v50  ;;  %v2756_v57 = vld [vmem:[#allocation6 + $0x1008] sm:$0xff] }
 0x229   :  { %4921 = vmatprep.subr.bf16.mxu1 %v4920_v8  ;;  %v2760_v50 = vld [vmem:[#allocation6 + $0x1028] sm:$0xff]  ;;  %v4938_v8 = vpack.c.bf16 %v2753_v39, %v2749_v48  ;;  %v2791_v39 = vld [vmem:[#allocation6 + $0x1120] sm:$0xff] }
 0x22a   :  { %v4556_v6 = vpack.c.bf16 %v2760_v50, %v2756_v57  ;;  %v2789_v57 = vld [vmem:[#allocation6 + $0x1110] sm:$0xff] }
 0x22b   :  { %4539 = vmatpush1.bf16.msra.mxu0 %v4538_v21  ;;  %v2761_v21 = vld [vmem:[#allocation6 + $0x1030] sm:$0xff]  ;;  %v4958_v33 = vpack.c.bf16 %v2793_v5, %v2789_v57  ;;  %v2831_v5 = vld [vmem:[#allocation6 + $0x1260] sm:$0xff] }
 0x22c   :  { %4923 = vmatpush1.bf16.msra.mxu1 %v4922_v36  ;;  %4541 = vmatprep.subr.bf16.mxu0 %v4540_v13  ;;  %v2764_v36 = vld [vmem:[#allocation6 + $0x1048] sm:$0xff] }
 0x22d   :  { %4925 = vmatprep.subr.bf16.mxu1 %v4924_v51  ;;  %v2768_v13 = vld [vmem:[#allocation6 + $0x1068] sm:$0xff]  ;;  %v4942_v51 = vpack.c.bf16 %v2761_v21, %v2757_v49  ;;  %v2795_v49 = vld [vmem:[#allocation6 + $0x1140] sm:$0xff] }
 0x22e   :  { %v4560_v22 = vpack.c.bf16 %v2768_v13, %v2764_v36  ;;  %v2799_v21 = vld [vmem:[#allocation6 + $0x1160] sm:$0xff]  ;;  %v2797_v36 = vld [vmem:[#allocation6 + $0x1150] sm:$0xff] }
 0x22f   :  { %4543 = vmatpush1.bf16.msra.mxu0 %v4542_v26  ;;  %v2772_v26 = vld [vmem:[#allocation6 + $0x1088] sm:$0xff]  ;;  %v4578_v29 = vpack.c.bf16 %v2799_v21, %v2795_v49 }
 0x230   :  { %4927 = vmatpush1.bf16.msra.mxu1 %v4926_v28  ;;  %4545 = vmatprep.subr.bf16.mxu0 %v4544_v27  ;;  %v2776_v28 = vld [vmem:[#allocation6 + $0x10a8] sm:$0xff]  ;;  %v4944_v27 = vpack.c.bf16 %v2770_v58, %v2766_v32 }
 0x231   :  { %4929 = vmatprep.subr.bf16.mxu1 %v4928_v63  ;;  %v4946_v63 = vpack.c.bf16 %v2769_v41, %v2765_v37  ;;  %v4564_v30 = vpack.c.bf16 %v2776_v28, %v2772_v26  ;;  %v2804_v32 = vld [vmem:[#allocation6 + $0x1188] sm:$0xff]  ;;  %v2803_v41 = vld [vmem:[#allocation6 + $0x1180] sm:$0xff]  ;;  %v2805_v28 = vld [vmem:[#allocation6 + $0x1190] sm:$0xff] }
 0x232   :  { %v2808_v58 = vld [vmem:[#allocation6 + $0x11a8] sm:$0xff]  ;;  %v2807_v26 = vld [vmem:[#allocation6 + $0x11a0] sm:$0xff]  ;;  %v4966_v17 = vpack.c.bf16 %v2809_v31, %v2805_v28 }
 0x233   :  { %4547 = vmatpush1.bf16.msra.mxu0 %v4546_v52  ;;  %v2777_v52 = vld [vmem:[#allocation6 + $0x10b0] sm:$0xff]  ;;  %v4582_v4 = vpack.c.bf16 %v2807_v26, %v2803_v41  ;;  %v2847_v31 = vld [vmem:[#allocation6 + $0x12e0] sm:$0xff] }
 0x234   :  { %4931 = vmatpush1.bf16.msra.mxu1 %v4930_v43  ;;  %4549 = vmatprep.subr.bf16.mxu0 %v4548_v44  ;;  %v2780_v43 = vld [vmem:[#allocation6 + $0x10c8] sm:$0xff]  ;;  %v4950_v12 = vpack.c.bf16 %v2777_v52, %v2773_v56  ;;  %v2815_v52 = vld [vmem:[#allocation6 + $0x11e0] sm:$0xff] }
 0x235   :  { %4933 = vmatprep.subr.bf16.mxu1 %v4932_v19  ;;  %v2784_v44 = vld [vmem:[#allocation6 + $0x10e8] sm:$0xff] }
 0x236   :  { %v4568_v19 = vpack.c.bf16 %v2784_v44, %v2780_v43  ;;  %v2813_v43 = vld [vmem:[#allocation6 + $0x11d0] sm:$0xff] }
 0x237   :  { %4551 = vmatpush1.bf16.msra.mxu0 %v4550_v59  ;;  %v2792_v59 = vld [vmem:[#allocation6 + $0x1128] sm:$0xff] }
 0x238   :  { %4935 = vmatpush1.bf16.msra.mxu1 %v4934_v42  ;;  %4553 = vmatprep.subr.bf16.mxu0 %v4552_v34  ;;  %v2790_v42 = vld [vmem:[#allocation6 + $0x1118] sm:$0xff]  ;;  %v4572_v48 = vpack.c.bf16 %v2792_v59, %v2788_v38  ;;  %v2821_v38 = vld [vmem:[#allocation6 + $0x1210] sm:$0xff] }
 0x239   :  { %4937 = vmatprep.subr.bf16.mxu1 %v4936_v2  ;;  %v2794_v34 = vld [vmem:[#allocation6 + $0x1138] sm:$0xff]  ;;  %v2787_v2 = vld [vmem:[#allocation6 + $0x1100] sm:$0xff] }
 0x23a   :  { %v4956_v50 = vpack.c.bf16 %v2794_v34, %v2790_v42  ;;  %v4574_v60 = vpack.c.bf16 %v2791_v39, %v2787_v2  ;;  %v2825_v42 = vld [vmem:[#allocation6 + $0x1230] sm:$0xff]  ;;  %v2828_v34 = vld [vmem:[#allocation6 + $0x1248] sm:$0xff] }
 0x23b   :  { %4555 = vmatpush1.bf16.msra.mxu0 %v4554_v14  ;;  %v2800_v14 = vld [vmem:[#allocation6 + $0x1168] sm:$0xff]  ;;  %v4974_v39 = vpack.c.bf16 %v2825_v42, %v2821_v38  ;;  %v2863_v42 = vld [vmem:[#allocation6 + $0x1360] sm:$0xff] }
 0x23c   :  { %4939 = vmatpush1.bf16.msra.mxu1 %v4938_v8  ;;  %4557 = vmatprep.subr.bf16.mxu0 %v4556_v6  ;;  %v2798_v8 = vld [vmem:[#allocation6 + $0x1158] sm:$0xff] }
 0x23d   :  { %4941 = vmatprep.subr.bf16.mxu1 %v4940_v62  ;;  %v2802_v6 = vld [vmem:[#allocation6 + $0x1178] sm:$0xff]  ;;  %v4576_v62 = vpack.c.bf16 %v2800_v14, %v2796_v15  ;;  %v2829_v15 = vld [vmem:[#allocation6 + $0x1250] sm:$0xff] }
 0x23e   :  { %3311 = vmatmul.mubr.f32.vlgmr.msra.gmra.mrb[24].mxu0 %v5907_v11  ;;  %v4960_v13 = vpack.c.bf16 %v2802_v6, %v2798_v8  ;;  %v2833_v8 = vld [vmem:[#allocation6 + $0x1270] sm:$0xff]  ;;  %v2836_v6 = vld [vmem:[#allocation6 + $0x1288] sm:$0xff] }
 0x23f   :  { %3737 = vmatmul.mubr.f32.vlgmr.msra.gmra.mrb[24].mxu1 %v5907_v11  ;;  %4559 = vmatpush1.bf16.msra.mxu0 %v4558_v55  ;;  %v2786_v11 = vld [vmem:[#allocation6 + $0x10f8] sm:$0xff]  ;;  %v2801_v55 = vld [vmem:[#allocation6 + $0x1170] sm:$0xff]  ;;  %v4978_v21 = vpack.c.bf16 %v2833_v8, %v2829_v15  ;;  %v2871_v8 = vld [vmem:[#allocation6 + $0x13a0] sm:$0xff] }
 0x240   :  { %3381 = vmatprep.mubr.f32.mxu0 %v5910_v18  ;;  %4943 = vmatpush1.bf16.msra.mxu1 %v4942_v51  ;;  %v4952_v23 = vpack.c.bf16 %v2786_v11, %v2782_v45  ;;  %v2806_v51 = vld [vmem:[#allocation6 + $0x1198] sm:$0xff]  ;;  %v4962_v37 = vpack.c.bf16 %v2801_v55, %v2797_v36  ;;  %v2817_v45 = vld [vmem:[#allocation6 + $0x11f0] sm:$0xff]  ;;  %v2820_v11 = vld [vmem:[#allocation6 + $0x1208] sm:$0xff] }
 0x241   :  { %3807 = vmatprep.mubr.f32.mxu1 %v5910_v18  ;;  %4561 = vmatprep.subr.bf16.mxu0 %v4560_v22  ;;  %v2785_v18 = vld [vmem:[#allocation6 + $0x10f0] sm:$0xff]  ;;  %v4580_v22 = vpack.c.bf16 %v2808_v58, %v2804_v32  ;;  %v4970_v53 = vpack.c.bf16 %v2817_v45, %v2813_v43  ;;  %v2839_v55 = vld [vmem:[#allocation6 + $0x12a0] sm:$0xff] }
 0x242   :  { %4945 = vmatprep.subr.bf16.mxu1 %v4944_v27  ;;  %v4954_v35 = vpack.c.bf16 %v2785_v18, %v2781_v20  ;;  %v4964_v27 = vpack.c.bf16 %v2810_v40, %v2806_v51  ;;  %v2823_v18 = vld [vmem:[#allocation6 + $0x1220] sm:$0xff]  ;;  %v2837_v32 = vld [vmem:[#allocation6 + $0x1290] sm:$0xff]  ;;  %v2844_v40 = vld [vmem:[#allocation6 + $0x12c8] sm:$0xff] }
 0x243   :  { %4563 = vmatpush1.bf16.msra.mxu0 %v4562_v10  ;;  %v2816_v10 = vld [vmem:[#allocation6 + $0x11e8] sm:$0xff]  ;;  %v2841_v51 = vld [vmem:[#allocation6 + $0x12b0] sm:$0xff]  ;;  %v2855_v45 = vld [vmem:[#allocation6 + $0x1320] sm:$0xff] }
 0x244   :  { %4947 = vmatpush1.bf16.msra.mxu1 %v4946_v63  ;;  %4565 = vmatprep.subr.bf16.mxu0 %v4564_v30  ;;  %v2814_v63 = vld [vmem:[#allocation6 + $0x11d8] sm:$0xff]  ;;  %v4584_v56 = vpack.c.bf16 %v2816_v10, %v2812_v9  ;;  %v4982_v26 = vpack.c.bf16 %v2841_v51, %v2837_v32  ;;  %v2845_v9 = vld [vmem:[#allocation6 + $0x12d0] sm:$0xff]  ;;  %v2879_v51 = vld [vmem:[#allocation6 + $0x13e0] sm:$0xff] }
 0x245   :  { %4949 = vmatprep.subr.bf16.mxu1 %v4948_v16  ;;  %v2818_v30 = vld [vmem:[#allocation6 + $0x11f8] sm:$0xff]  ;;  %v2811_v16 = vld [vmem:[#allocation6 + $0x11c0] sm:$0xff] }
 0x246   :  { %v4968_v44 = vpack.c.bf16 %v2818_v30, %v2814_v63  ;;  %v4586_v54 = vpack.c.bf16 %v2815_v52, %v2811_v16  ;;  %v2849_v63 = vld [vmem:[#allocation6 + $0x12f0] sm:$0xff]  ;;  %v2852_v30 = vld [vmem:[#allocation6 + $0x1308] sm:$0xff] }
 0x247   :  { %4567 = vmatpush1.bf16.msra.mxu0 %v4566_v47  ;;  %v2824_v47 = vld [vmem:[#allocation6 + $0x1228] sm:$0xff]  ;;  %v4986_v52 = vpack.c.bf16 %v2849_v63, %v2845_v9  ;;  %v2887_v63 = vld [vmem:[#allocation6 + $0x1420] sm:$0xff] }
 0x248   :  { %4951 = vmatpush1.bf16.msra.mxu1 %v4950_v12  ;;  %4569 = vmatprep.subr.bf16.mxu0 %v4568_v19  ;;  %v2822_v12 = vld [vmem:[#allocation6 + $0x1218] sm:$0xff]  ;;  %v4588_v20 = vpack.c.bf16 %v2824_v47, %v2820_v11  ;;  %v2853_v11 = vld [vmem:[#allocation6 + $0x1310] sm:$0xff] }
 0x249   :  { %4953 = vmatprep.subr.bf16.mxu1 %v4952_v23  ;;  %v2826_v19 = vld [vmem:[#allocation6 + $0x1238] sm:$0xff]  ;;  %v2819_v23 = vld [vmem:[#allocation6 + $0x1200] sm:$0xff] }
 0x24a   :  { %v4972_v59 = vpack.c.bf16 %v2826_v19, %v2822_v12  ;;  %v4590_v2 = vpack.c.bf16 %v2823_v18, %v2819_v23  ;;  %v2857_v12 = vld [vmem:[#allocation6 + $0x1330] sm:$0xff]  ;;  %v2860_v19 = vld [vmem:[#allocation6 + $0x1348] sm:$0xff] }
 0x24b   :  { %4571 = vmatpush1.bf16.msra.mxu0 %v4570_v3  ;;  %v2832_v3 = vld [vmem:[#allocation6 + $0x1268] sm:$0xff]  ;;  %v4990_v18 = vpack.c.bf16 %v2857_v12, %v2853_v11  ;;  %v2891_v11 = vld [vmem:[#allocation6 + $0x1440] sm:$0xff]  ;;  %v2893_v12 = vld [vmem:[#allocation6 + $0x1450] sm:$0xff] }
 0x24c   :  { %4955 = vmatpush1.bf16.msra.mxu1 %v4954_v35  ;;  %4573 = vmatprep.subr.bf16.mxu0 %v4572_v48  ;;  %v2830_v35 = vld [vmem:[#allocation6 + $0x1258] sm:$0xff]  ;;  %v4592_v57 = vpack.c.bf16 %v2832_v3, %v2828_v34  ;;  %v2861_v34 = vld [vmem:[#allocation6 + $0x1350] sm:$0xff] }
 0x24d   :  { %4957 = vmatprep.subr.bf16.mxu1 %v4956_v50  ;;  %v2834_v48 = vld [vmem:[#allocation6 + $0x1278] sm:$0xff]  ;;  %v2827_v50 = vld [vmem:[#allocation6 + $0x1240] sm:$0xff] }
 0x24e   :  { %v4976_v14 = vpack.c.bf16 %v2834_v48, %v2830_v35  ;;  %v4594_v49 = vpack.c.bf16 %v2831_v5, %v2827_v50  ;;  %v2865_v35 = vld [vmem:[#allocation6 + $0x1370] sm:$0xff]  ;;  %v2868_v48 = vld [vmem:[#allocation6 + $0x1388] sm:$0xff] }
 0x24f   :  { %4575 = vmatpush1.bf16.msra.mxu0 %v4574_v60  ;;  %v2840_v60 = vld [vmem:[#allocation6 + $0x12a8] sm:$0xff]  ;;  %v4994_v5 = vpack.c.bf16 %v2865_v35, %v2861_v34  ;;  %v2903_v35 = vld [vmem:[#allocation6 + $0x14a0] sm:$0xff] }
 0x250   :  { %4959 = vmatpush1.bf16.msra.mxu1 %v4958_v33  ;;  %4577 = vmatprep.subr.bf16.mxu0 %v4576_v62  ;;  %v2838_v33 = vld [vmem:[#allocation6 + $0x1298] sm:$0xff]  ;;  %v4596_v36 = vpack.c.bf16 %v2840_v60, %v2836_v6  ;;  %v2869_v6 = vld [vmem:[#allocation6 + $0x1390] sm:$0xff] }
 0x251   :  { %4961 = vmatprep.subr.bf16.mxu1 %v4960_v13  ;;  %v2842_v62 = vld [vmem:[#allocation6 + $0x12b8] sm:$0xff]  ;;  %v2835_v13 = vld [vmem:[#allocation6 + $0x1280] sm:$0xff] }
 0x252   :  { %v4980_v58 = vpack.c.bf16 %v2842_v62, %v2838_v33  ;;  %v4598_v41 = vpack.c.bf16 %v2839_v55, %v2835_v13  ;;  %v2873_v33 = vld [vmem:[#allocation6 + $0x13b0] sm:$0xff]  ;;  %v2876_v62 = vld [vmem:[#allocation6 + $0x13c8] sm:$0xff] }
 0x253   :  { %4579 = vmatpush1.bf16.msra.mxu0 %v4578_v29  ;;  %v2848_v29 = vld [vmem:[#allocation6 + $0x12e8] sm:$0xff]  ;;  %v4998_v55 = vpack.c.bf16 %v2873_v33, %v2869_v6  ;;  %v2907_v6 = vld [vmem:[#allocation6 + $0x14c0] sm:$0xff]  ;;  %v2909_v33 = vld [vmem:[#allocation6 + $0x14d0] sm:$0xff] }
 0x254   :  { %4963 = vmatpush1.bf16.msra.mxu1 %v4962_v37  ;;  %4581 = vmatprep.subr.bf16.mxu0 %v4580_v22  ;;  %v2846_v37 = vld [vmem:[#allocation6 + $0x12d8] sm:$0xff]  ;;  %v4600_v28 = vpack.c.bf16 %v2848_v29, %v2844_v40  ;;  %v2877_v40 = vld [vmem:[#allocation6 + $0x13d0] sm:$0xff] }
 0x255   :  { %4965 = vmatprep.subr.bf16.mxu1 %v4964_v27  ;;  %v2850_v22 = vld [vmem:[#allocation6 + $0x12f8] sm:$0xff]  ;;  %v2843_v27 = vld [vmem:[#allocation6 + $0x12c0] sm:$0xff] }
 0x256   :  { %v4984_v10 = vpack.c.bf16 %v2850_v22, %v2846_v37  ;;  %v4602_v16 = vpack.c.bf16 %v2847_v31, %v2843_v27  ;;  %v2881_v37 = vld [vmem:[#allocation6 + $0x13f0] sm:$0xff]  ;;  %v2884_v22 = vld [vmem:[#allocation6 + $0x1408] sm:$0xff] }
 0x257   :  { %4583 = vmatpush1.bf16.msra.mxu0 %v4582_v4  ;;  %v2856_v4 = vld [vmem:[#allocation6 + $0x1328] sm:$0xff]  ;;  %v5002_v31 = vpack.c.bf16 %v2881_v37, %v2877_v40  ;;  %v2919_v40 = vld [vmem:[#allocation6 + $0x1520] sm:$0xff] }
 0x258   :  { %4967 = vmatpush1.bf16.msra.mxu1 %v4966_v17  ;;  %4585 = vmatprep.subr.bf16.mxu0 %v4584_v56  ;;  %v2854_v17 = vld [vmem:[#allocation6 + $0x1318] sm:$0xff]  ;;  %v4604_v43 = vpack.c.bf16 %v2856_v4, %v2852_v30  ;;  %v2885_v4 = vld [vmem:[#allocation6 + $0x1410] sm:$0xff] }
 0x259   :  { %4969 = vmatprep.subr.bf16.mxu1 %v4968_v44  ;;  %v2858_v56 = vld [vmem:[#allocation6 + $0x1338] sm:$0xff]  ;;  %v2851_v44 = vld [vmem:[#allocation6 + $0x1300] sm:$0xff] }
 0x25a   :  { %v4988_v47 = vpack.c.bf16 %v2858_v56, %v2854_v17  ;;  %v4606_v23 = vpack.c.bf16 %v2855_v45, %v2851_v44  ;;  %v2889_v17 = vld [vmem:[#allocation6 + $0x1430] sm:$0xff]  ;;  %v2892_v56 = vld [vmem:[#allocation6 + $0x1448] sm:$0xff]  ;;  %v2898_v44 = vld [vmem:[#allocation6 + $0x1478] sm:$0xff] }
 0x25b   :  { %4587 = vmatpush1.bf16.msra.mxu0 %v4586_v54  ;;  %v2864_v54 = vld [vmem:[#allocation6 + $0x1368] sm:$0xff]  ;;  %v5006_v45 = vpack.c.bf16 %v2889_v17, %v2885_v4  ;;  %v2925_v4 = vld [vmem:[#allocation6 + $0x1550] sm:$0xff] }
 0x25c   :  { %4971 = vmatpush1.bf16.msra.mxu1 %v4970_v53  ;;  %4589 = vmatprep.subr.bf16.mxu0 %v4588_v20  ;;  %v2862_v53 = vld [vmem:[#allocation6 + $0x1358] sm:$0xff]  ;;  %v4608_v38 = vpack.c.bf16 %v2864_v54, %v2860_v19  ;;  %v2897_v54 = vld [vmem:[#allocation6 + $0x1470] sm:$0xff] }
 0x25d   :  { %4973 = vmatprep.subr.bf16.mxu1 %v4972_v59  ;;  %v2866_v20 = vld [vmem:[#allocation6 + $0x1378] sm:$0xff]  ;;  %v2859_v59 = vld [vmem:[#allocation6 + $0x1340] sm:$0xff] }
 0x25e   :  { %v4992_v3 = vpack.c.bf16 %v2866_v20, %v2862_v53  ;;  %v4610_v50 = vpack.c.bf16 %v2863_v42, %v2859_v59  ;;  %v2900_v53 = vld [vmem:[#allocation6 + $0x1488] sm:$0xff]  ;;  %v5010_v42 = vpack.c.bf16 %v2897_v54, %v2893_v12  ;;  %v2931_v12 = vld [vmem:[#allocation6 + $0x1580] sm:$0xff]  ;;  %v2933_v54 = vld [vmem:[#allocation6 + $0x1590] sm:$0xff] }
 0x25f   :  { %4591 = vmatpush1.bf16.msra.mxu0 %v4590_v2  ;;  %v2872_v2 = vld [vmem:[#allocation6 + $0x13a8] sm:$0xff] }
 0x260   :  { %4975 = vmatpush1.bf16.msra.mxu1 %v4974_v39  ;;  %4593 = vmatprep.subr.bf16.mxu0 %v4592_v57  ;;  %v2870_v39 = vld [vmem:[#allocation6 + $0x1398] sm:$0xff]  ;;  %v4612_v15 = vpack.c.bf16 %v2872_v2, %v2868_v48  ;;  %v2904_v20 = vld [vmem:[#allocation6 + $0x14a8] sm:$0xff]  ;;  %v2901_v48 = vld [vmem:[#allocation6 + $0x1490] sm:$0xff] }
 0x261   :  { %4977 = vmatprep.subr.bf16.mxu1 %v4976_v14  ;;  %v2874_v57 = vld [vmem:[#allocation6 + $0x13b8] sm:$0xff]  ;;  %v2867_v14 = vld [vmem:[#allocation6 + $0x1380] sm:$0xff]  ;;  %v4628_v34 = vpack.c.bf16 %v2904_v20, %v2900_v53  ;;  %v2937_v20 = vld [vmem:[#allocation6 + $0x15b0] sm:$0xff] }
 0x262   :  { %v4996_v60 = vpack.c.bf16 %v2874_v57, %v2870_v39  ;;  %v4614_v13 = vpack.c.bf16 %v2871_v8, %v2867_v14  ;;  %v2905_v39 = vld [vmem:[#allocation6 + $0x14b0] sm:$0xff]  ;;  %v2908_v57 = vld [vmem:[#allocation6 + $0x14c8] sm:$0xff] }
 0x263   :  { %4595 = vmatpush1.bf16.msra.mxu0 %v4594_v49  ;;  %v2880_v49 = vld [vmem:[#allocation6 + $0x13e8] sm:$0xff]  ;;  %v5014_v14 = vpack.c.bf16 %v2905_v39, %v2901_v48  ;;  %v2943_v48 = vld [vmem:[#allocation6 + $0x15e0] sm:$0xff] }
 0x264   :  { %4979 = vmatpush1.bf16.msra.mxu1 %v4978_v21  ;;  %4597 = vmatprep.subr.bf16.mxu0 %v4596_v36  ;;  %v2878_v21 = vld [vmem:[#allocation6 + $0x13d8] sm:$0xff]  ;;  %v4616_v32 = vpack.c.bf16 %v2880_v49, %v2876_v62  ;;  %v2916_v49 = vld [vmem:[#allocation6 + $0x1508] sm:$0xff] }
 0x265   :  { %4981 = vmatprep.subr.bf16.mxu1 %v4980_v58  ;;  %v2882_v36 = vld [vmem:[#allocation6 + $0x13f8] sm:$0xff]  ;;  %v2875_v58 = vld [vmem:[#allocation6 + $0x13c0] sm:$0xff] }
 0x266   :  { %v5000_v29 = vpack.c.bf16 %v2882_v36, %v2878_v21  ;;  %v4618_v27 = vpack.c.bf16 %v2879_v51, %v2875_v58  ;;  %v2920_v21 = vld [vmem:[#allocation6 + $0x1528] sm:$0xff]  ;;  %v2918_v36 = vld [vmem:[#allocation6 + $0x1518] sm:$0xff]  ;;  %v2915_v51 = vld [vmem:[#allocation6 + $0x1500] sm:$0xff] }
 0x267   :  { %4599 = vmatpush1.bf16.msra.mxu0 %v4598_v41  ;;  %v2888_v41 = vld [vmem:[#allocation6 + $0x1428] sm:$0xff]  ;;  %v4636_v58 = vpack.c.bf16 %v2920_v21, %v2916_v49  ;;  %v2953_v49 = vld [vmem:[#allocation6 + $0x1630] sm:$0xff] }
 0x268   :  { %4983 = vmatpush1.bf16.msra.mxu1 %v4982_v26  ;;  %4601 = vmatprep.subr.bf16.mxu0 %v4600_v28  ;;  %v2886_v26 = vld [vmem:[#allocation6 + $0x1418] sm:$0xff]  ;;  %v4620_v9 = vpack.c.bf16 %v2888_v41, %v2884_v22  ;;  %v2921_v22 = vld [vmem:[#allocation6 + $0x1530] sm:$0xff]  ;;  %v2924_v41 = vld [vmem:[#allocation6 + $0x1548] sm:$0xff] }
 0x269   :  { %4985 = vmatprep.subr.bf16.mxu1 %v4984_v10  ;;  %v2890_v28 = vld [vmem:[#allocation6 + $0x1438] sm:$0xff]  ;;  %v2883_v10 = vld [vmem:[#allocation6 + $0x1400] sm:$0xff]  ;;  %v2956_v21 = vld [vmem:[#allocation6 + $0x1648] sm:$0xff] }
 0x26a   :  { %v5004_v30 = vpack.c.bf16 %v2890_v28, %v2886_v26  ;;  %v2928_v26 = vld [vmem:[#allocation6 + $0x1568] sm:$0xff]  ;;  %v2926_v28 = vld [vmem:[#allocation6 + $0x1558] sm:$0xff] }
 0x26b   :  { %4603 = vmatpush1.bf16.msra.mxu0 %v4602_v16  ;;  %v2896_v16 = vld [vmem:[#allocation6 + $0x1468] sm:$0xff] }
 0x26c   :  { %4987 = vmatpush1.bf16.msra.mxu1 %v4986_v52  ;;  %4605 = vmatprep.subr.bf16.mxu0 %v4604_v43  ;;  %v4622_v52 = vpack.c.bf16 %v2887_v63, %v2883_v10  ;;  %v2894_v43 = vld [vmem:[#allocation6 + $0x1458] sm:$0xff]  ;;  %v4624_v19 = vpack.c.bf16 %v2896_v16, %v2892_v56  ;;  %v4640_v10 = vpack.c.bf16 %v2928_v26, %v2924_v41  ;;  %v2923_v63 = vld [vmem:[#allocation6 + $0x1540] sm:$0xff]  ;;  %v2929_v56 = vld [vmem:[#allocation6 + $0x1570] sm:$0xff] }
 0x26d   :  { %4989 = vmatprep.subr.bf16.mxu1 %v4988_v47  ;;  %v2895_v47 = vld [vmem:[#allocation6 + $0x1460] sm:$0xff]  ;;  %v2932_v16 = vld [vmem:[#allocation6 + $0x1588] sm:$0xff]  ;;  %v2961_v41 = vld [vmem:[#allocation6 + $0x1670] sm:$0xff] }
 0x26e   :  { %v4626_v59 = vpack.c.bf16 %v2895_v47, %v2891_v11  ;;  %v5026_v11 = vpack.c.bf16 %v2929_v56, %v2925_v4  ;;  %v2964_v26 = vld [vmem:[#allocation6 + $0x1688] sm:$0xff]  ;;  %v2967_v4 = vld [vmem:[#allocation6 + $0x16a0] sm:$0xff] }
 0x26f   :  { %4607 = vmatpush1.bf16.msra.mxu0 %v4606_v23  ;;  %v5008_v23 = vpack.c.bf16 %v2898_v44, %v2894_v43  ;;  %v2934_v43 = vld [vmem:[#allocation6 + $0x1598] sm:$0xff] }
 0x270   :  { %4991 = vmatpush1.bf16.msra.mxu1 %v4990_v18  ;;  %4609 = vmatprep.subr.bf16.mxu0 %v4608_v38  ;;  %v2902_v18 = vld [vmem:[#allocation6 + $0x1498] sm:$0xff] }
 0x271   :  { %4993 = vmatprep.subr.bf16.mxu1 %v4992_v3  ;;  %v2906_v38 = vld [vmem:[#allocation6 + $0x14b8] sm:$0xff]  ;;  %v2899_v3 = vld [vmem:[#allocation6 + $0x1480] sm:$0xff] }
 0x272   :  { %v5012_v2 = vpack.c.bf16 %v2906_v38, %v2902_v18  ;;  %v2938_v44 = vld [vmem:[#allocation6 + $0x15b8] sm:$0xff]  ;;  %v2944_v18 = vld [vmem:[#allocation6 + $0x15e8] sm:$0xff] }
 0x273   :  { %4611 = vmatpush1.bf16.msra.mxu0 %v4610_v50  ;;  %v2912_v50 = vld [vmem:[#allocation6 + $0x14e8] sm:$0xff]  ;;  %v5028_v53 = vpack.c.bf16 %v2938_v44, %v2934_v43  ;;  %v2942_v38 = vld [vmem:[#allocation6 + $0x15d8] sm:$0xff] }
 0x274   :  { %4995 = vmatpush1.bf16.msra.mxu1 %v4994_v5  ;;  %4613 = vmatprep.subr.bf16.mxu0 %v4612_v15  ;;  %v2910_v5 = vld [vmem:[#allocation6 + $0x14d8] sm:$0xff]  ;;  %v4630_v15 = vpack.c.bf16 %v2903_v35, %v2899_v3  ;;  %v4632_v8 = vpack.c.bf16 %v2912_v50, %v2908_v57  ;;  %v2939_v35 = vld [vmem:[#allocation6 + $0x15c0] sm:$0xff]  ;;  %v2945_v57 = vld [vmem:[#allocation6 + $0x15f0] sm:$0xff] }
 0x275   :  { %4997 = vmatprep.subr.bf16.mxu1 %v4996_v60  ;;  %v2911_v60 = vld [vmem:[#allocation6 + $0x14e0] sm:$0xff]  ;;  %v2948_v50 = vld [vmem:[#allocation6 + $0x1608] sm:$0xff]  ;;  %v2974_v44 = vld [vmem:[#allocation6 + $0x16d8] sm:$0xff] }
 0x276   :  { %v2976_v43 = vld [vmem:[#allocation6 + $0x16e8] sm:$0xff] }
 0x277   :  { %4615 = vmatpush1.bf16.msra.mxu0 %v4614_v13  ;;  %v2922_v13 = vld [vmem:[#allocation6 + $0x1538] sm:$0xff] }
 0x278   :  { %4999 = vmatpush1.bf16.msra.mxu1 %v4998_v55  ;;  %4617 = vmatprep.subr.bf16.mxu0 %v4616_v32  ;;  %v4634_v55 = vpack.c.bf16 %v2911_v60, %v2907_v6  ;;  %v5020_v37 = vpack.c.bf16 %v2922_v13, %v2918_v36  ;;  %v2947_v60 = vld [vmem:[#allocation6 + $0x1600] sm:$0xff]  ;;  %v2960_v36 = vld [vmem:[#allocation6 + $0x1668] sm:$0xff]  ;;  %v2958_v13 = vld [vmem:[#allocation6 + $0x1658] sm:$0xff] }
 0x279   :  { %5001 = vmatprep.subr.bf16.mxu1 %v5000_v29  ;;  %v2917_v29 = vld [vmem:[#allocation6 + $0x1510] sm:$0xff] }
 0x27b   :  { %4619 = vmatpush1.bf16.msra.mxu0 %v4618_v27  ;;  %v2930_v27 = vld [vmem:[#allocation6 + $0x1578] sm:$0xff] }
 0x27c   :  { %5003 = vmatpush1.bf16.msra.mxu1 %v5002_v31  ;;  %4621 = vmatprep.subr.bf16.mxu0 %v4620_v9  ;;  %v4638_v31 = vpack.c.bf16 %v2919_v40, %v2915_v51  ;;  %v5022_v9 = vpack.c.bf16 %v2921_v22, %v2917_v29  ;;  %v5024_v17 = vpack.c.bf16 %v2930_v27, %v2926_v28  ;;  %v2955_v40 = vld [vmem:[#allocation6 + $0x1640] sm:$0xff]  ;;  %v2968_v28 = vld [vmem:[#allocation6 + $0x16a8] sm:$0xff]  ;;  %v2966_v27 = vld [vmem:[#allocation6 + $0x1698] sm:$0xff] }
 0x27d   :  { %5005 = vmatprep.subr.bf16.mxu1 %v5004_v30  ;;  %v2927_v30 = vld [vmem:[#allocation6 + $0x1560] sm:$0xff]  ;;  %v4656_v51 = vpack.c.bf16 %v2960_v36, %v2956_v21  ;;  %v2993_v21 = vld [vmem:[#allocation6 + $0x1770] sm:$0xff]  ;;  %v2996_v36 = vld [vmem:[#allocation6 + $0x1788] sm:$0xff] }
 0x27e   :  { %3382 = vmatmul.mubr.f32.vlgmr.msra.gmra.mrb[24].mxu0 %v5878_v61  ;;  %v2959_v29 = vld [vmem:[#allocation6 + $0x1660] sm:$0xff] }
 0x27f   :  { %3808 = vmatmul.mubr.f32.vlgmr.msra.gmra.mrb[24].mxu1 %v5878_v61  ;;  %4623 = vmatpush1.bf16.msra.mxu0 %v4622_v52  ;;  %v2914_v61 = vld [vmem:[#allocation6 + $0x14f8] sm:$0xff]  ;;  %v2936_v52 = vld [vmem:[#allocation6 + $0x15a8] sm:$0xff] }
 0x280   :  { %3452 = vmatprep.mubr.f32.mxu0 %v5919_v7  ;;  %5007 = vmatpush1.bf16.msra.mxu1 %v5006_v45  ;;  %v5016_v62 = vpack.c.bf16 %v2914_v61, %v2910_v5  ;;  %v4642_v45 = vpack.c.bf16 %v2927_v30, %v2923_v63  ;;  %v4644_v47 = vpack.c.bf16 %v2936_v52, %v2932_v16  ;;  %v2952_v5 = vld [vmem:[#allocation6 + $0x1628] sm:$0xff]  ;;  %v2950_v61 = vld [vmem:[#allocation6 + $0x1618] sm:$0xff]  ;;  %v2963_v30 = vld [vmem:[#allocation6 + $0x1680] sm:$0xff] }
 0x281   :  { %3878 = vmatprep.mubr.f32.mxu1 %v5919_v7  ;;  %4625 = vmatprep.subr.bf16.mxu0 %v4624_v19  ;;  %v2913_v7 = vld [vmem:[#allocation6 + $0x14f0] sm:$0xff]  ;;  %v2935_v19 = vld [vmem:[#allocation6 + $0x15a0] sm:$0xff]  ;;  %v4652_v6 = vpack.c.bf16 %v2952_v5, %v2948_v50  ;;  %v4660_v63 = vpack.c.bf16 %v2968_v28, %v2964_v26  ;;  %v2972_v52 = vld [vmem:[#allocation6 + $0x16c8] sm:$0xff] }
 0x282   :  { %5009 = vmatprep.subr.bf16.mxu1 %v5008_v23  ;;  %v5018_v32 = vpack.c.bf16 %v2913_v7, %v2909_v33  ;;  %v2940_v23 = vld [vmem:[#allocation6 + $0x15c8] sm:$0xff]  ;;  %v2951_v33 = vld [vmem:[#allocation6 + $0x1620] sm:$0xff]  ;;  %v2969_v16 = vld [vmem:[#allocation6 + $0x16b0] sm:$0xff] }
 0x283   :  { %4627 = vmatpush1.bf16.msra.mxu0 %v4626_v59  ;;  %v2946_v59 = vld [vmem:[#allocation6 + $0x15f8] sm:$0xff]  ;;  %v4648_v3 = vpack.c.bf16 %v2944_v18, %v2940_v23  ;;  %v2977_v23 = vld [vmem:[#allocation6 + $0x16f0] sm:$0xff]  ;;  %v2980_v18 = vld [vmem:[#allocation6 + $0x1708] sm:$0xff] }
 0x284   :  { %5011 = vmatpush1.bf16.msra.mxu1 %v5010_v42  ;;  %4629 = vmatprep.subr.bf16.mxu0 %v4628_v34  ;;  %v4646_v42 = vpack.c.bf16 %v2935_v19, %v2931_v12  ;;  %v5030_v34 = vpack.c.bf16 %v2937_v20, %v2933_v54  ;;  %v5032_v39 = vpack.c.bf16 %v2946_v59, %v2942_v38  ;;  %v2971_v19 = vld [vmem:[#allocation6 + $0x16c0] sm:$0xff]  ;;  %v2984_v38 = vld [vmem:[#allocation6 + $0x1728] sm:$0xff]  ;;  %v2982_v59 = vld [vmem:[#allocation6 + $0x1718] sm:$0xff] }
 0x285   :  { %5013 = vmatprep.subr.bf16.mxu1 %v5012_v2  ;;  %v2941_v2 = vld [vmem:[#allocation6 + $0x15d0] sm:$0xff]  ;;  %v4664_v12 = vpack.c.bf16 %v2976_v43, %v2972_v52  ;;  %v2975_v54 = vld [vmem:[#allocation6 + $0x16e0] sm:$0xff]  ;;  %v2988_v5 = vld [vmem:[#allocation6 + $0x1748] sm:$0xff] }
 0x286   :  { %v2985_v50 = vld [vmem:[#allocation6 + $0x1730] sm:$0xff]  ;;  %v3004_v28 = vld [vmem:[#allocation6 + $0x17c8] sm:$0xff] }
 0x287   :  { %4631 = vmatpush1.bf16.msra.mxu0 %v4630_v15  ;;  %v2954_v15 = vld [vmem:[#allocation6 + $0x1638] sm:$0xff]  ;;  %v3001_v26 = vld [vmem:[#allocation6 + $0x17b0] sm:$0xff]  ;;  %v3905_v43 = vld [vmem:[#allocation9 + $0x80] sm:$0xff] }
 0x288   :  { %5015 = vmatpush1.bf16.msra.mxu1 %v5014_v14  ;;  %4633 = vmatprep.subr.bf16.mxu0 %v4632_v8  ;;  %v4650_v14 = vpack.c.bf16 %v2943_v48, %v2939_v35  ;;  %v5034_v8 = vpack.c.bf16 %v2945_v57, %v2941_v2  ;;  %v5036_v7 = vpack.c.bf16 %v2954_v15, %v2950_v61  ;;  %v2979_v48 = vld [vmem:[#allocation6 + $0x1700] sm:$0xff]  ;;  %v2992_v61 = vld [vmem:[#allocation6 + $0x1768] sm:$0xff]  ;;  %v2990_v15 = vld [vmem:[#allocation6 + $0x1758] sm:$0xff] }
 0x289   :  { %5017 = vmatprep.subr.bf16.mxu1 %v5016_v62  ;;  %v2949_v62 = vld [vmem:[#allocation6 + $0x1610] sm:$0xff]  ;;  %v4668_v35 = vpack.c.bf16 %v2984_v38, %v2980_v18  ;;  %v2983_v2 = vld [vmem:[#allocation6 + $0x1720] sm:$0xff] }
 0x28a   :  { %v3009_v52 = vld [vmem:[#allocation6 + $0x17f0] sm:$0xff] }
 0x28b   :  { %4635 = vmatpush1.bf16.msra.mxu0 %v4634_v55  ;;  %v2962_v55 = vld [vmem:[#allocation6 + $0x1678] sm:$0xff]  ;;  %v3922_v18 = vld [vmem:[#allocation9 + $0x108] sm:$0xff] }
 0x28c   :  { %5019 = vmatpush1.bf16.msra.mxu1 %v5018_v32  ;;  %4637 = vmatprep.subr.bf16.mxu0 %v4636_v58  ;;  %v4654_v32 = vpack.c.bf16 %v2951_v33, %v2947_v60  ;;  %v5038_v58 = vpack.c.bf16 %v2953_v49, %v2949_v62  ;;  %v5040_v22 = vpack.c.bf16 %v2962_v55, %v2958_v13  ;;  %v2987_v33 = vld [vmem:[#allocation6 + $0x1740] sm:$0xff]  ;;  %v3000_v13 = vld [vmem:[#allocation6 + $0x17a8] sm:$0xff]  ;;  %v2998_v55 = vld [vmem:[#allocation6 + $0x1798] sm:$0xff] }
 0x28d   :  { %5021 = vmatprep.subr.bf16.mxu1 %v5020_v37  ;;  %v2957_v37 = vld [vmem:[#allocation6 + $0x1650] sm:$0xff]  ;;  %v4672_v60 = vpack.c.bf16 %v2992_v61, %v2988_v5  ;;  %v2991_v62 = vld [vmem:[#allocation6 + $0x1760] sm:$0xff] }
 0x28e   :  { %v3907_v38 = vld [vmem:[#allocation9 + $0x90] sm:$0xff]  ;;  %v3924_v5 = vld [vmem:[#allocation9 + $0x118] sm:$0xff]  ;;  %v3909_v61 = vld [vmem:[#allocation9 + $0xa0] sm:$0xff] }
 0x28f   :  { %4639 = vmatpush1.bf16.msra.mxu0 %v4638_v31  ;;  %v2970_v31 = vld [vmem:[#allocation6 + $0x16b8] sm:$0xff] }
 0x290   :  { %5023 = vmatpush1.bf16.msra.mxu1 %v5022_v9  ;;  %4641 = vmatprep.subr.bf16.mxu0 %v4640_v10  ;;  %v4658_v9 = vpack.c.bf16 %v2959_v29, %v2955_v40  ;;  %v5042_v10 = vpack.c.bf16 %v2961_v41, %v2957_v37  ;;  %v5044_v56 = vpack.c.bf16 %v2970_v31, %v2966_v27  ;;  %v2995_v29 = vld [vmem:[#allocation6 + $0x1780] sm:$0xff]  ;;  %v3008_v27 = vld [vmem:[#allocation6 + $0x17e8] sm:$0xff]  ;;  %v3006_v31 = vld [vmem:[#allocation6 + $0x17d8] sm:$0xff] }
 0x291   :  { %5025 = vmatprep.subr.bf16.mxu1 %v5024_v17  ;;  %v2965_v17 = vld [vmem:[#allocation6 + $0x1690] sm:$0xff]  ;;  %v4676_v40 = vpack.c.bf16 %v3000_v13, %v2996_v36  ;;  %v2999_v37 = vld [vmem:[#allocation6 + $0x17a0] sm:$0xff] }
 0x292   :  { %v3926_v36 = vld [vmem:[#allocation9 + $0x128] sm:$0xff]  ;;  %v3911_v13 = vld [vmem:[#allocation9 + $0xb0] sm:$0xff] }
 0x293   :  { %4643 = vmatpush1.bf16.msra.mxu0 %v4642_v45  ;;  %v2978_v45 = vld [vmem:[#allocation6 + $0x16f8] sm:$0xff] }
 0x294   :  { %5027 = vmatpush1.bf16.msra.mxu1 %v5026_v11  ;;  %4645 = vmatprep.subr.bf16.mxu0 %v4644_v47  ;;  %v4662_v11 = vpack.c.bf16 %v2967_v4, %v2963_v30  ;;  %v5046_v47 = vpack.c.bf16 %v2969_v16, %v2965_v17  ;;  %v5048_v20 = vpack.c.bf16 %v2978_v45, %v2974_v44  ;;  %v3003_v4 = vld [vmem:[#allocation6 + $0x17c0] sm:$0xff]  ;;  %v3906_v44 = vld [vmem:[#allocation9 + $0x88] sm:$0xff] }
 0x295   :  { %5029 = vmatprep.subr.bf16.mxu1 %v5028_v53  ;;  %v2973_v53 = vld [vmem:[#allocation6 + $0x16d0] sm:$0xff]  ;;  %v4680_v30 = vpack.c.bf16 %v3008_v27, %v3004_v28  ;;  %v3007_v17 = vld [vmem:[#allocation6 + $0x17e0] sm:$0xff] }
 0x296   :  { %v3937_v45 = vld [vmem:[#allocation9 + $0x180] sm:$0xff]  ;;  %v3914_v27 = vld [vmem:[#allocation9 + $0xc8] sm:$0xff] }
 0x297   :  { %4647 = vmatpush1.bf16.msra.mxu0 %v4646_v42  ;;  %v2986_v42 = vld [vmem:[#allocation6 + $0x1738] sm:$0xff]  ;;  %v3913_v28 = vld [vmem:[#allocation9 + $0xc0] sm:$0xff] }
 0x298   :  { %5031 = vmatpush1.bf16.msra.mxu1 %v5030_v34  ;;  %4649 = vmatprep.subr.bf16.mxu0 %v4648_v3  ;;  %v4666_v34 = vpack.c.bf16 %v2975_v54, %v2971_v19  ;;  %v5050_v3 = vpack.c.bf16 %v2977_v23, %v2973_v53  ;;  %v5052_v57 = vpack.c.bf16 %v2986_v42, %v2982_v59  ;;  %v3889_v54 = vld [vmem:[#allocation9] sm:$0xff]  ;;  %v3890_v53 = vld [vmem:[#allocation9 + $0x8] sm:$0xff]  ;;  %v3908_v59 = vld [vmem:[#allocation9 + $0x98] sm:$0xff] }
 0x299   :  { %5033 = vmatprep.subr.bf16.mxu1 %v5032_v39  ;;  %v2981_v39 = vld [vmem:[#allocation6 + $0x1710] sm:$0xff]  ;;  %v5068_v19 = vpack.c.bf16 %v3906_v44, %v3905_v43  ;;  %v3916_v44 = vld [vmem:[#allocation9 + $0xd8] sm:$0xff] }
 0x29a   :  { %v3939_v42 = vld [vmem:[#allocation9 + $0x190] sm:$0xff] }
 0x29b   :  { %4651 = vmatpush1.bf16.msra.mxu0 %v4650_v14  ;;  %v2994_v14 = vld [vmem:[#allocation6 + $0x1778] sm:$0xff] }
 0x29c   :  { %5035 = vmatpush1.bf16.msra.mxu1 %v5034_v8  ;;  %4653 = vmatprep.subr.bf16.mxu0 %v4652_v6  ;;  %v4670_v8 = vpack.c.bf16 %v2983_v2, %v2979_v48  ;;  %v5054_v6 = vpack.c.bf16 %v2985_v50, %v2981_v39  ;;  %v5056_v49 = vpack.c.bf16 %v2994_v14, %v2990_v15  ;;  %v3891_v2 = vld [vmem:[#allocation9 + $0x10] sm:$0xff]  ;;  %v3892_v39 = vld [vmem:[#allocation9 + $0x18] sm:$0xff]  ;;  %v3910_v15 = vld [vmem:[#allocation9 + $0xa8] sm:$0xff] }
 0x29d   :  { %5037 = vmatprep.subr.bf16.mxu1 %v5036_v7  ;;  %v2989_v7 = vld [vmem:[#allocation6 + $0x1750] sm:$0xff]  ;;  %v5072_v48 = vpack.c.bf16 %v3908_v59, %v3907_v38  ;;  %v3941_v14 = vld [vmem:[#allocation9 + $0x1a0] sm:$0xff] }
 0x29e   :  { %v3915_v43 = vld [vmem:[#allocation9 + $0xd0] sm:$0xff]  ;;  %v3917_v38 = vld [vmem:[#allocation9 + $0xe0] sm:$0xff]  ;;  %v3918_v59 = vld [vmem:[#allocation9 + $0xe8] sm:$0xff] }
 0x29f   :  { %4655 = vmatpush1.bf16.msra.mxu0 %v4654_v32  ;;  %v3002_v32 = vld [vmem:[#allocation6 + $0x17b8] sm:$0xff] }
 0x2a0   :  { %5039 = vmatpush1.bf16.msra.mxu1 %v5038_v58  ;;  %4657 = vmatprep.subr.bf16.mxu0 %v4656_v51  ;;  %v4674_v58 = vpack.c.bf16 %v2991_v62, %v2987_v33  ;;  %v5058_v51 = vpack.c.bf16 %v2993_v21, %v2989_v7  ;;  %v5060_v41 = vpack.c.bf16 %v3002_v32, %v2998_v55  ;;  %v3893_v62 = vld [vmem:[#allocation9 + $0x20] sm:$0xff]  ;;  %v3894_v7 = vld [vmem:[#allocation9 + $0x28] sm:$0xff]  ;;  %v3912_v55 = vld [vmem:[#allocation9 + $0xb8] sm:$0xff] }
 0x2a1   :  { %5041 = vmatprep.subr.bf16.mxu1 %v5040_v22  ;;  %v2997_v22 = vld [vmem:[#allocation6 + $0x1790] sm:$0xff]  ;;  %v5076_v33 = vpack.c.bf16 %v3910_v15, %v3909_v61 }
 0x2a2   :  { %v3943_v32 = vld [vmem:[#allocation9 + $0x1b0] sm:$0xff]  ;;  %v3934_v61 = vld [vmem:[#allocation9 + $0x168] sm:$0xff] }
 0x2a3   :  { %4659 = vmatpush1.bf16.msra.mxu0 %v4658_v9  ;;  %v3010_v9 = vld [vmem:[#allocation6 + $0x17f8] sm:$0xff] }
 0x2a4   :  { %5043 = vmatpush1.bf16.msra.mxu1 %v5042_v10  ;;  %4661 = vmatprep.subr.bf16.mxu0 %v4660_v63  ;;  %v4678_v10 = vpack.c.bf16 %v2999_v37, %v2995_v29  ;;  %v5062_v63 = vpack.c.bf16 %v3001_v26, %v2997_v22  ;;  %v5064_v16 = vpack.c.bf16 %v3010_v9, %v3006_v31  ;;  %v3895_v29 = vld [vmem:[#allocation9 + $0x30] sm:$0xff]  ;;  %v3896_v37 = vld [vmem:[#allocation9 + $0x38] sm:$0xff]  ;;  %v3945_v31 = vld [vmem:[#allocation9 + $0x1c0] sm:$0xff] }
 0x2a5   :  { %5045 = vmatprep.subr.bf16.mxu1 %v5044_v56  ;;  %v3005_v56 = vld [vmem:[#allocation6 + $0x17d0] sm:$0xff]  ;;  %v3928_v26 = vld [vmem:[#allocation9 + $0x138] sm:$0xff] }
 0x2a6   :  { %v3927_v22 = vld [vmem:[#allocation9 + $0x130] sm:$0xff]  ;;  %v3946_v9 = vld [vmem:[#allocation9 + $0x1c8] sm:$0xff] }
 0x2a7   :  { %4663 = vmatpush1.bf16.msra.mxu0 %v4662_v11  ;;  %v3938_v11 = vld [vmem:[#allocation9 + $0x188] sm:$0xff] }
 0x2a8   :  { %5047 = vmatpush1.bf16.msra.mxu1 %v5046_v47  ;;  %4665 = vmatprep.subr.bf16.mxu0 %v4664_v12  ;;  %v4682_v47 = vpack.c.bf16 %v3007_v17, %v3003_v4  ;;  %v5066_v12 = vpack.c.bf16 %v3009_v52, %v3005_v56  ;;  %v5100_v23 = vpack.c.bf16 %v3938_v11, %v3937_v45  ;;  %v3897_v4 = vld [vmem:[#allocation9 + $0x40] sm:$0xff]  ;;  %v3898_v17 = vld [vmem:[#allocation9 + $0x48] sm:$0xff]  ;;  %v3947_v45 = vld [vmem:[#allocation9 + $0x1d0] sm:$0xff] }
 0x2a9   :  { %5049 = vmatprep.subr.bf16.mxu1 %v5048_v20  ;;  %v3921_v20 = vld [vmem:[#allocation9 + $0x100] sm:$0xff]  ;;  %v3930_v52 = vld [vmem:[#allocation9 + $0x148] sm:$0xff]  ;;  %v3948_v11 = vld [vmem:[#allocation9 + $0x1d8] sm:$0xff] }
 0x2aa   :  { %v3929_v56 = vld [vmem:[#allocation9 + $0x140] sm:$0xff] }
 0x2ab   :  { %4667 = vmatpush1.bf16.msra.mxu0 %v4666_v34  ;;  %v3940_v34 = vld [vmem:[#allocation9 + $0x198] sm:$0xff] }
 0x2ac   :  { %5051 = vmatpush1.bf16.msra.mxu1 %v5050_v3  ;;  %4669 = vmatprep.subr.bf16.mxu0 %v4668_v35  ;;  %v5070_v3 = vpack.c.bf16 %v3890_v53, %v3889_v54  ;;  %v5102_v35 = vpack.c.bf16 %v3922_v18, %v3921_v20  ;;  %v5104_v50 = vpack.c.bf16 %v3940_v34, %v3939_v42  ;;  %v3899_v54 = vld [vmem:[#allocation9 + $0x50] sm:$0xff]  ;;  %v3900_v53 = vld [vmem:[#allocation9 + $0x58] sm:$0xff]  ;;  %v3949_v42 = vld [vmem:[#allocation9 + $0x1e0] sm:$0xff] }
 0x2ad   :  { %5053 = vmatprep.subr.bf16.mxu1 %v5052_v57  ;;  %v3923_v57 = vld [vmem:[#allocation9 + $0x110] sm:$0xff]  ;;  %v3932_v18 = vld [vmem:[#allocation9 + $0x158] sm:$0xff]  ;;  %v3950_v34 = vld [vmem:[#allocation9 + $0x1e8] sm:$0xff] }
 0x2ae   :  { %v3931_v20 = vld [vmem:[#allocation9 + $0x150] sm:$0xff] }
 0x2af   :  { %4671 = vmatpush1.bf16.msra.mxu0 %v4670_v8  ;;  %v3942_v8 = vld [vmem:[#allocation9 + $0x1a8] sm:$0xff] }
 0x2b0   :  { %5055 = vmatpush1.bf16.msra.mxu1 %v5054_v6  ;;  %4673 = vmatprep.subr.bf16.mxu0 %v4672_v60  ;;  %v5074_v6 = vpack.c.bf16 %v3892_v39, %v3891_v2  ;;  %v5106_v60 = vpack.c.bf16 %v3924_v5, %v3923_v57  ;;  %v5108_v21 = vpack.c.bf16 %v3942_v8, %v3941_v14  ;;  %v3901_v39 = vld [vmem:[#allocation9 + $0x60] sm:$0xff]  ;;  %v3902_v57 = vld [vmem:[#allocation9 + $0x68] sm:$0xff]  ;;  %v3919_v14 = vld [vmem:[#allocation9 + $0xf0] sm:$0xff] }
 0x2b1   :  { %5057 = vmatprep.subr.bf16.mxu1 %v5056_v49  ;;  %v3925_v49 = vld [vmem:[#allocation9 + $0x120] sm:$0xff]  ;;  %v5124_v2 = vpack.c.bf16 %v3950_v34, %v3949_v42  ;;  %v5094_v5 = vpack.c.bf16 %v3902_v57, %v3901_v39  ;;  %v3920_v8 = vld [vmem:[#allocation9 + $0xf8] sm:$0xff] }
 0x2b3   :  { %4675 = vmatpush1.bf16.msra.mxu0 %v4674_v58  ;;  %v3944_v58 = vld [vmem:[#allocation9 + $0x1b8] sm:$0xff] }
 0x2b4   :  { %5059 = vmatpush1.bf16.msra.mxu1 %v5058_v51  ;;  %4677 = vmatprep.subr.bf16.mxu0 %v4676_v40  ;;  %v5078_v51 = vpack.c.bf16 %v3894_v7, %v3893_v62  ;;  %v5080_v40 = vpack.c.bf16 %v3912_v55, %v3911_v13  ;;  %v3903_v62 = vld [vmem:[#allocation9 + $0x70] sm:$0xff]  ;;  %v3904_v7 = vld [vmem:[#allocation9 + $0x78] sm:$0xff] }
 0x2b5   :  { %5061 = vmatprep.subr.bf16.mxu1 %v5060_v41  ;;  %v5112_v41 = vpack.c.bf16 %v3944_v58, %v3943_v32  ;;  %v3936_v13 = vld [vmem:[#allocation9 + $0x178] sm:$0xff] }
 0x2b6   :  { %v3011_v32 = vld [vmem:[#allocation7] sm:$0xf] }
 0x2b7   :  { %4679 = vmatpush1.bf16.msra.mxu0 %v4678_v10  ;;  %v5082_v10 = vpack.c.bf16 %v3896_v37, %v3895_v29  ;;  %v3016_v58 = vrot.slane %v3011_v32, %v5568_v0 }
 0x2b8   :  { %5063 = vmatpush1.bf16.msra.mxu1 %v5062_v63  ;;  %4681 = vmatprep.subr.bf16.mxu0 %v4680_v30  ;;  %v5114_v63 = vpack.c.bf16 %v3928_v26, %v3927_v22  ;;  %v5084_v30 = vpack.c.bf16 %v3914_v27, %v3913_v28 }
 0x2b9   :  { %5065 = vmatprep.subr.bf16.mxu1 %v5064_v16  ;;  %v5116_v16 = vpack.c.bf16 %v3946_v9, %v3945_v31 }
 0x2bb   :  { %4683 = vmatpush1.bf16.msra.mxu0 %v4682_v47  ;;  %v5086_v47 = vpack.c.bf16 %v3898_v17, %v3897_v4 }
 0x2bc   :  { %5067 = vmatpush1.bf16.msra.mxu1 %v5066_v12  ;;  %5069 = vmatprep.subr.bf16.mxu0 %v5068_v19  ;;  %v5118_v12 = vpack.c.bf16 %v3930_v52, %v3929_v56  ;;  %v5088_v19 = vpack.c.bf16 %v3916_v44, %v3915_v43 }
 0x2bd   :  { %5101 = vmatprep.subr.bf16.mxu1 %v5100_v23  ;;  %v5120_v23 = vpack.c.bf16 %v3948_v11, %v3947_v45 }
 0x2be   :  { %3453 = vmatmul.mubr.f32.vlgmr.msra.gmra.mrb[24].mxu0 %v5916_v46 }
 0x2bf   :  { %3879 = vmatmul.mubr.f32.vlgmr.msra.gmra.mrb[24].mxu1 %v5916_v46  ;;  %5071 = vmatpush3.bf16.msra.mxu0 %v5070_v3  ;;  %v5110_v46 = vpack.c.bf16 %v3926_v36, %v3925_v49  ;;  %v5090_v3 = vpack.c.bf16 %v3900_v53, %v3899_v54  ;;  %v3935_v36 = vld [vmem:[#allocation9 + $0x170] sm:$0xff] }
 0x2c0   :  { %5103 = vmatpush3.bf16.msra.mxu1 %v5102_v35  ;;  %5073 = vmatprep.subr.bf16.mxu0 %v5072_v48  ;;  %v5122_v35 = vpack.c.bf16 %v3932_v18, %v3931_v20  ;;  %v5092_v48 = vpack.c.bf16 %v3918_v59, %v3917_v38  ;;  %v5130_v55 = vpack.c.bf16 %v3936_v13, %v3935_v36 }
 0x2c1   :  { %5105 = vmatprep.subr.bf16.mxu1 %v5104_v50  ;;  %v3933_v50 = vld [vmem:[#allocation9 + $0x160] sm:$0xff] }
 0x2c2   :  { %v5126_v15 = vpack.c.bf16 %v3934_v61, %v3933_v50 }
 0x2c3   :  { %5075 = vmatpush3.bf16.msra.mxu0 %v5074_v6  ;;  %v3951_v6 = vld [vmem:[#allocation9 + $0x1f0] sm:$0xff] }
 0x2c4   :  { %5107 = vmatpush3.bf16.msra.mxu1 %v5106_v60  ;;  %5077 = vmatprep.subr.bf16.mxu0 %v5076_v33  ;;  %v5096_v60 = vpack.c.bf16 %v3920_v8, %v3919_v14  ;;  %v3952_v33 = vld [vmem:[#allocation9 + $0x1f8] sm:$0xff] }
 0x2c5   :  { %5109 = vmatprep.subr.bf16.mxu1 %v5108_v21  ;;  %v5128_v49 = vpack.c.bf16 %v3952_v33, %v3951_v6  ;;  %v5098_v21 = vpack.c.bf16 %v3904_v7, %v3903_v62 }
 0x2c7   :  { %5079 = vmatpush3.bf16.msra.mxu0 %v5078_v51  ;;  %v3024_v51 = vrot.slane %v3011_v32, %v5598_v24  ;;  %v4133_v24 = vld [vmem:[#allocation10] ss:$0 sm:$0xff] }
 0x2c8   :  { %5111 = vmatpush3.bf16.msra.mxu1 %v5110_v46  ;;  %5081 = vmatprep.subr.bf16.mxu0 %v5080_v40  ;;  %v3020_v46 = vrot.slane %v3011_v32, %v5571_v1  ;;  %v3028_v40 = vrot.slane %v3011_v32, %v5601_v25 }
 0x2c9   :  { %5113 = vmatprep.subr.bf16.mxu1 %v5112_v41 }
 0x2cb   :  { %5083 = vmatpush3.bf16.msra.mxu0 %v5082_v10 }
 0x2cc   :  { %5115 = vmatpush3.bf16.msra.mxu1 %v5114_v63  ;;  %5085 = vmatprep.subr.bf16.mxu0 %v5084_v30 }
 0x2cd   :  { %5117 = vmatprep.subr.bf16.mxu1 %v5116_v16 }
 0x2cf   :  { %5087 = vmatpush3.bf16.msra.mxu0 %v5086_v47 }
 0x2d0   :  { %5119 = vmatpush3.bf16.msra.mxu1 %v5118_v12  ;;  %5089 = vmatprep.subr.bf16.mxu0 %v5088_v19 }
 0x2d1   :  { %5121 = vmatprep.subr.bf16.mxu1 %v5120_v23 }
 0x2d3   :  { %5091 = vmatpush3.bf16.msra.mxu0 %v5090_v3 }
 0x2d4   :  { %5123 = vmatpush3.bf16.msra.mxu1 %v5122_v35  ;;  %5093 = vmatprep.subr.bf16.mxu0 %v5092_v48 }
 0x2d5   :  { %5125 = vmatprep.subr.bf16.mxu1 %v5124_v2 }
 0x2d7   :  { %5095 = vmatpush3.bf16.msra.mxu0 %v5094_v5 }
 0x2d8   :  { %5127 = vmatpush3.bf16.msra.mxu1 %v5126_v15  ;;  %5097 = vmatprep.subr.bf16.mxu0 %v5096_v60 }
 0x2d9   :  { %5129 = vmatprep.subr.bf16.mxu1 %v5128_v49 }
 0x2db   :  { %5099 = vmatpush3.bf16.msra.mxu0 %v5098_v21 }
 0x2dc   :  { %5131 = vmatpush3.bf16.msra.mxu1 %v5130_v55 }
 0x391   :  { %v3454_v29 = vpop.f32.mrb[24].mxu0 }
 0x392   :  { %v5132_v37 = vadd.f32 %v3454_v29, %v3016_v58  ;;  %v3880_v22 = vpop.f32.mrb[24].mxu1  ;;  %v3456_v41 = vpop.f32.mrb[25].mxu0 }
 0x393   :  { %v5134_v26 = vadd.f32 %v3880_v22, %v3024_v51  ;;  %v5133_v28 = vadd.f32 %v3456_v41, %v3020_v46  ;;  %v3882_v27 = vpop.f32.mrb[25].mxu1 }
 0x394   :  { %v5135_v31 = vadd.f32 %v3882_v27, %v3028_v40  ;;  %v3885_v10 = vmax.f32 %v5132_v37, 0.0 }
 0x395   :  { %v3886_v9 = vmax.f32 %v5133_v28, 0.0  ;;  %v3887_v30 = vmax.f32 %v5134_v26, 0.0 }
 0x396   :  { %v3888_v63 = vmax.f32 %v5135_v31, 0.0 }
 0x397   :  { %4024 = vmatprep.mubr.f32.mxu0 %v3886_v9 }
 0x398   :  { %4094 = vmatprep.mubr.f32.mxu1 %v3888_v63  ;;  %4025 = vmatmul.mubr.f32.vlgmr.msra.gmra.mrb[26].mxu0 %v3885_v10 }
 0x399   :  { %4095 = vmatmul.mubr.f32.vlgmr.msra.gmra.mrb[26].mxu1 %v3887_v30 }
 0x46b   :  { %v4166_v0 = vpop.f32.mrb[26].mxu0 }
 0x46c   :  { %v4201_v1 = vpop.f32.mrb[26].mxu1  ;;  %v4167_v25 = vpop.f32.mrb[27].mxu0 }
 0x46d   :  { %v4168_v4 = vadd.f32 %v4167_v25, %v4166_v0  ;;  %v4202_v17 = vpop.f32.mrb[27].mxu1 }
 0x46e   :  { %v4203_v56 = vadd.f32 %v4202_v17, %v4201_v1 }
 0x46f   :  { %v4027_v16 = vadd.f32 %v4168_v4, %v4133_v24 }
 0x471   :  { %v4097_v52 = vadd.f32 %v4203_v56, %v4027_v16 }
 0x473   :  { %4100 = vst [vmem:[%s5953_s7] sm:$0xff] %v4097_v52 }
 0x474   :  { %4105 = vsyncpa [#allocation3], 1 }
 0x475   :  { %4106 = vsyncpa [#allocation5], 1 }
 0x476   :  { %4107 = vsyncpa [#allocation8], 1 }
 0x477   :  { %4108 = vsyncpa [#allocation11], 1 }

</bundles_post_ra>
